<compile_context>
chip_gen: v6e
topology: v6e:2x2x1
jax: 0.10.0
libtpu: 0.0.40
codegen_flags: <defaults>
</compile_context>

<pallas_src>
import functools

import jax
import jax.numpy as jnp
from jax.experimental import pallas as pl
from jax.experimental.pallas import tpu as pltpu


def _silu(h, ew_dtype):
    # SiLU(h) = h * sigmoid(h) = h / (1 + exp(-h)).  exp goes to the EUP slot.
    # f32 path: approximate EUP reciprocal keeps the divide off the VALU slots.
    # bf16 path: plain bf16 divide (pl.reciprocal approx lowering is f32-only).
    denom = 1.0 + jnp.exp(-h)
    if ew_dtype == jnp.float32:
        return h * pl.reciprocal(denom, approx=True)
    return h / denom


def _edge_mlp_kernel(n_layers, ew_dtype,
                     xT_ref,                 # [D, TM]  edge features, feature-major
                     w_in_ref, b_in_ref,     # [H, D], [H, 1]   (torch [out, in] layout)
                     w_h_ref, b_h_ref,       # [L, H, H], [L, H, 1]
                     w_out_ref, b_out_ref,   # [O, H], [O, 1]
                     o_ref):                 # [2, TM]  row0 = y[:,0], row1 = ||y[:,1:]||
    mm_dtype = w_in_ref.dtype                # MXU input dtype (bf16 fast path or f32)

    def layer(w, z, b):
        acc = jnp.dot(w, z, preferred_element_type=jnp.float32)      # f32 accumulate
        h = acc.astype(ew_dtype) + b                                  # bias + SiLU in ew dtype
        return _silu(h, ew_dtype)

    h = layer(w_in_ref[...], xT_ref[...], b_in_ref[...])              # [H, TM]
    for i in range(n_layers):                                         # small -> static unroll
        h = layer(w_h_ref[i], h.astype(mm_dtype), b_h_ref[i])

    # Output layer, still feature-major so the final store is lane-dense.
    y = jnp.dot(w_out_ref[...], h.astype(mm_dtype),
                preferred_element_type=jnp.float32) + b_out_ref[...]  # [O, TM] f32

    # Fused epilogue: squared norm of rows 1..O-1 via a [1,O] selector matmul (the
    # cross-sublane reduction rides the MXU, which has slack), then one (2, TM) store.
    O = y.shape[0]
    sel = (jax.lax.broadcasted_iota(jnp.int32, (1, O), 1) > 0).astype(jnp.float32)
    nrm2 = jnp.dot(sel, y * y, preferred_element_type=jnp.float32)    # [1, TM], >= 0 exactly
    o_ref[...] = jnp.concatenate([y[0:1, :], jnp.sqrt(nrm2)], axis=0).astype(o_ref.dtype)


def _choose_tile_m(n_rows, max_tile=2048):
    # Largest lane-dense tile (multiple of 128) that still gives >= 2 grid blocks so both
    # v7x TensorCores get work; when the block count is small and odd, drop to the largest
    # smaller tile with an even block count so the 2-TC split is balanced.
    max_tile = max(128, (max_tile // 128) * 128)
    candidates, tm = [], max_tile
    while tm >= 128:
        if tm % 128 == 0:
            candidates.append(tm)
        tm //= 2
    if not candidates:
        candidates = [128]
    base = next((t for t in candidates if pl.cdiv(n_rows, t) >= 2), candidates[-1])
    blocks = pl.cdiv(n_rows, base)
    if blocks % 2 == 0 or blocks > 8:
        return base
    for t in candidates:
        if t < base and pl.cdiv(n_rows, t) % 2 == 0:
            return t
    return base


def _bf16_elementwise_default():
    # bf16 VALU/EUP exist on v6e/v7x; keep elementwise math in f32 on v5e and older.
    try:
        kind = jax.devices()[0].device_kind.lower()
    except Exception:
        return False
    return ("v6" in kind) or ("v7" in kind)


def egnn_edge_mlp_forward(ligand_h, protein_h, edge_index, params, *,
                          n_layers, tile_m=2048, use_bf16=True, elementwise_bf16=None):
    # Data-dependent row gather stays in XLA.  Gather from pre-transposed [D, N] node
    # tables so the edge stream is produced feature-major ([D, E]) and no [E, D] -> [D, E]
    # transpose of the big edge stream materializes in HBM.
    # TODO(synk): out-of-range edge indices follow XLA's default OOB gather policy
    #             (clamped/dropped) rather than being flagged like torch indexing would.
    xT = (jnp.take(ligand_h.T, edge_index[0], axis=1)
          - jnp.take(protein_h.T, edge_index[1], axis=1))                    # [D, E]
    D, E = xT.shape
    H = params["w_in"].shape[0]
    O = params["w_out"].shape[0]
    L = n_layers

    tm = _choose_tile_m(E, tile_m)
    E_pad = pl.cdiv(E, tm) * tm
    if E_pad != E:
        xT = jnp.pad(xT, ((0, 0), (0, E_pad - E)))   # zero cols -> finite outputs, sliced off

    mm_dtype = jnp.bfloat16 if use_bf16 else jnp.float32
    if elementwise_bf16 is None:
        elementwise_bf16 = use_bf16 and _bf16_elementwise_default()
    ew_dtype = jnp.bfloat16 if (use_bf16 and elementwise_bf16) else jnp.float32

    xT = xT.astype(mm_dtype)
    w_in = params["w_in"].astype(mm_dtype)
    w_h = params["w_h"].astype(mm_dtype)
    w_out = params["w_out"].astype(mm_dtype)
    b_in = params["b_in"].astype(ew_dtype)
    b_h = params["b_h"].astype(ew_dtype)
    b_out = params["b_out"]                           # final bias stays f32 (f32 epilogue)

    flops = 2 * E_pad * (D * H + L * H * H + H * O + O)
    transcendentals = E_pad * H * (L + 1)             # one exp per activation element
    bytes_accessed = int(
        xT.size * xT.dtype.itemsize
        + sum(int(a.size) * a.dtype.itemsize for a in (w_in, b_in, w_h, b_h, w_out, b_out))
        + 2 * E_pad * 4)

    kernel = functools.partial(_edge_mlp_kernel, L, ew_dtype)

    out = pl.pallas_call(
        kernel,
        out_shape=jax.ShapeDtypeStruct((2, E_pad), jnp.float32),
        grid_spec=pltpu.PrefetchScalarGridSpec(
            num_scalar_prefetch=0,
            grid=(E_pad // tm,),
            in_specs=[
                pl.BlockSpec((D, tm), lambda i: (0, i)),        # edge-stream tile (only tiled input)
                # Grid-invariant weights/biases: constant block index => the pipeline keeps
                # the already-fetched block (no per-step DMA); ~0.15 MiB extra buffer is
                # negligible, so no pl.Buffered(1) override.
                pl.BlockSpec((H, D), lambda i: (0, 0)),         # w_in
                pl.BlockSpec((H, 1), lambda i: (0, 0)),         # b_in
                pl.BlockSpec((L, H, H), lambda i: (0, 0, 0)),   # stacked hidden weights
                pl.BlockSpec((L, H, 1), lambda i: (0, 0, 0)),   # stacked hidden biases
                pl.BlockSpec((O, H), lambda i: (0, 0)),         # w_out
                pl.BlockSpec((O, 1), lambda i: (0, 0)),         # b_out
            ],
            out_specs=pl.BlockSpec((2, tm), lambda i: (0, i)),  # lane-dense (2, E_pad) output
        ),
        compiler_params=pltpu.CompilerParams(
            dimension_semantics=("parallel",),                  # megacore-shards on v7x
            vmem_limit_bytes=32 * 1024 * 1024),
        cost_estimate=pl.CostEstimate(flops=flops,
                                      transcendentals=transcendentals,
                                      bytes_accessed=bytes_accessed),
    )(xT, w_in, b_in, w_h, b_h, w_out, b_out)

    # Back to the module's [E, 2] layout (col 0 = raw first channel, col 1 = norm).
    return out[:, :E].T


def init_params(key, input_dim, hidden_dim, n_layers, out_dim=25):
    # torch.nn.Linear default init: U[-1/sqrt(fan_in), 1/sqrt(fan_in)]; weights in
    # torch [out_features, in_features] layout, biases as column vectors.
    def lin(k, fan_in, fan_out):
        kw, kb = jax.random.split(k)
        bound = 1.0 / (fan_in ** 0.5)
        w = jax.random.uniform(kw, (fan_out, fan_in), jnp.float32, -bound, bound)
        b = jax.random.uniform(kb, (fan_out, 1), jnp.float32, -bound, bound)
        return w, b

    keys = jax.random.split(key, n_layers + 2)
    w_in, b_in = lin(keys[0], input_dim, hidden_dim)
    w_hs, b_hs = [], []
    for i in range(n_layers):
        w, b = lin(keys[1 + i], hidden_dim, hidden_dim)
        w_hs.append(w)
        b_hs.append(b)
    w_out, b_out = lin(keys[-1], hidden_dim, out_dim)
    return {"w_in": w_in, "b_in": b_in,
            "w_h": jnp.stack(w_hs, axis=0), "b_h": jnp.stack(b_hs, axis=0),
            "w_out": w_out, "b_out": b_out}


def egnn_edge_mlp_reference(ligand_h, protein_h, edge_index, params, *, n_layers):
    x = ligand_h[edge_index[0]] - protein_h[edge_index[1]]
    h = jax.nn.silu(x @ params["w_in"].T + params["b_in"].T)
    for i in range(n_layers):
        h = jax.nn.silu(h @ params["w_h"][i].T + params["b_h"][i].T)
    y = h @ params["w_out"].T + params["b_out"].T
    return jnp.stack([y[:, 0], jnp.linalg.norm(y[:, 1:], axis=1)], axis=1)


if __name__ == "__main__":
    input_dim, hidden_dim, n_layers = 16, 128, 2
    n_lig, n_prot, n_edges = 32, 24, 1000       # non-multiple of the tile -> exercises padding

    key = jax.random.PRNGKey(0)
    k_lig, k_prot, k_e0, k_e1, k_par = jax.random.split(key, 5)

    ligand_h = jax.random.normal(k_lig, (n_lig, input_dim), jnp.float32)
    protein_h = jax.random.normal(k_prot, (n_prot, input_dim), jnp.float32)
    edge_index = jnp.stack([
        jax.random.randint(k_e0, (n_edges,), 0, n_lig),
        jax.random.randint(k_e1, (n_edges,), 0, n_prot),
    ], axis=0)                                  # [2, E]

    params = init_params(k_par, input_dim, hidden_dim, n_layers)
    ref = egnn_edge_mlp_reference(ligand_h, protein_h, edge_index, params, n_layers=n_layers)

    # f32 matmul path (tight check; SiLU uses the approximate EUP reciprocal, hence 1e-2).
    out_f32 = egnn_edge_mlp_forward(ligand_h, protein_h, edge_index, params,
                                    n_layers=n_layers, use_bf16=False)
    out_f32 = jax.block_until_ready(out_f32)
    assert out_f32.shape == (n_edges, 2)
    assert jnp.allclose(out_f32, ref, atol=1e-2, rtol=1e-2), "f32 kernel mismatch vs reference"

    # Production default: bf16 matmuls with f32 accumulation (+ bf16 bias/SiLU on v6e/v7x).
    out_bf16 = egnn_edge_mlp_forward(ligand_h, protein_h, edge_index, params,
                                     n_layers=n_layers)
    out_bf16 = jax.block_until_ready(out_bf16)
    assert out_bf16.shape == (n_edges, 2)
    assert jnp.allclose(out_bf16, ref, atol=2e-1, rtol=1e-1), "bf16 kernel mismatch vs reference"

    print("KERNEL_OK")
</pallas_src>

<mosaic_0001>
module attributes {stable_mosaic.version = 11 : i64} {
  func.func @_edge_mlp_kernel(%arg0: i32, %arg1: memref<16x512xf32, #tpu.memory_space<vmem>>, %arg2: memref<128x16xf32, #tpu.memory_space<vmem>>, %arg3: memref<128x1xf32, #tpu.memory_space<vmem>>, %arg4: memref<2x128x128xf32, #tpu.memory_space<vmem>>, %arg5: memref<2x128x1xf32, #tpu.memory_space<vmem>>, %arg6: memref<25x128xf32, #tpu.memory_space<vmem>>, %arg7: memref<25x1xf32, #tpu.memory_space<vmem>>, %arg8: memref<2x512xf32, #tpu.memory_space<vmem>>) attributes {dimension_semantics = [#tpu.dimension_semantics<parallel>], iteration_bounds = array<i64: 2>, scalar_prefetch = 0 : i64, scratch_operands = 0 : i64, tpu.core_type = #tpu.core_type<tc>, window_params = [{transform_indices = @transform_0, window_bounds = array<i64: 16, 512>}, {pipeline_mode = #tpu.pipeline_mode<synchronous>, transform_indices = @transform_1, window_bounds = array<i64: 128, 16>}, {pipeline_mode = #tpu.pipeline_mode<synchronous>, transform_indices = @transform_2, window_bounds = array<i64: 128, 1>}, {pipeline_mode = #tpu.pipeline_mode<synchronous>, transform_indices = @transform_3, window_bounds = array<i64: 2, 128, 128>}, {pipeline_mode = #tpu.pipeline_mode<synchronous>, transform_indices = @transform_4, window_bounds = array<i64: 2, 128, 1>}, {pipeline_mode = #tpu.pipeline_mode<synchronous>, transform_indices = @transform_5, window_bounds = array<i64: 25, 128>}, {pipeline_mode = #tpu.pipeline_mode<synchronous>, transform_indices = @transform_6, window_bounds = array<i64: 25, 1>}, {transform_indices = @transform_7, window_bounds = array<i64: 2, 512>}]} {
    %c0 = arith.constant 0 : index
    %c0_0 = arith.constant 0 : index
    %0 = vector.load %arg2[%c0, %c0_0] : memref<128x16xf32, #tpu.memory_space<vmem>>, vector<128x16xf32>
    %c0_1 = arith.constant 0 : index
    %c0_2 = arith.constant 0 : index
    %1 = vector.load %arg1[%c0_1, %c0_2] : memref<16x512xf32, #tpu.memory_space<vmem>>, vector<16x512xf32>
    %c0_3 = arith.constant 0 : index
    %c0_4 = arith.constant 0 : index
    %2 = vector.load %arg3[%c0_3, %c0_4] : memref<128x1xf32, #tpu.memory_space<vmem>>, vector<128x1xf32>
    %cst = arith.constant dense<0.000000e+00> : vector<128x512xf32>
    %3 = tpu.matmul %0, %1, %cst {dimension_numbers = #tpu.dot_dimension_numbers<[1], [0], [0], [1], [0, 0, 1, 1], [], []>} : vector<128x16xf32>, vector<16x512xf32>, vector<128x512xf32> -> vector<128x512xf32>
    %4 = vector.broadcast %2 : vector<128x1xf32> to vector<128x512xf32>
    %5 = arith.addf %3, %4 : vector<128x512xf32>
    %cst_5 = arith.constant 0.000000e+00 : f32
    %6 = vector.broadcast %cst_5 : f32 to vector<128x512xf32>
    %7 = arith.subf %6, %5 : vector<128x512xf32>
    %8 = math.exp %7 : vector<128x512xf32>
    %cst_6 = arith.constant 1.000000e+00 : f32
    %9 = vector.broadcast %cst_6 : f32 to vector<128x512xf32>
    %10 = arith.addf %9, %8 : vector<128x512xf32>
    %11 = tpu.reciprocal %10 {approx = true} : vector<128x512xf32> -> vector<128x512xf32>
    %12 = arith.mulf %5, %11 : vector<128x512xf32>
    %c0_7 = arith.constant 0 : index
    %c0_8 = arith.constant 0 : index
    %c0_9 = arith.constant 0 : index
    %13 = vector.load %arg4[%c0_7, %c0_8, %c0_9] : memref<2x128x128xf32, #tpu.memory_space<vmem>>, vector<1x128x128xf32>
    %14 = vector.shape_cast %13 : vector<1x128x128xf32> to vector<128x128xf32>
    %c0_10 = arith.constant 0 : index
    %c0_11 = arith.constant 0 : index
    %c0_12 = arith.constant 0 : index
    %15 = vector.load %arg5[%c0_10, %c0_11, %c0_12] : memref<2x128x1xf32, #tpu.memory_space<vmem>>, vector<1x128x1xf32>
    %16 = vector.shape_cast %15 : vector<1x128x1xf32> to vector<128x1xf32>
    %cst_13 = arith.constant dense<0.000000e+00> : vector<128x512xf32>
    %17 = tpu.matmul %14, %12, %cst_13 {dimension_numbers = #tpu.dot_dimension_numbers<[1], [0], [0], [1], [0, 0, 1, 1], [], []>} : vector<128x128xf32>, vector<128x512xf32>, vector<128x512xf32> -> vector<128x512xf32>
    %18 = vector.broadcast %16 : vector<128x1xf32> to vector<128x512xf32>
    %19 = arith.addf %17, %18 : vector<128x512xf32>
    %cst_14 = arith.constant 0.000000e+00 : f32
    %20 = vector.broadcast %cst_14 : f32 to vector<128x512xf32>
    %21 = arith.subf %20, %19 : vector<128x512xf32>
    %22 = math.exp %21 : vector<128x512xf32>
    %cst_15 = arith.constant 1.000000e+00 : f32
    %23 = vector.broadcast %cst_15 : f32 to vector<128x512xf32>
    %24 = arith.addf %23, %22 : vector<128x512xf32>
    %25 = tpu.reciprocal %24 {approx = true} : vector<128x512xf32> -> vector<128x512xf32>
    %26 = arith.mulf %19, %25 : vector<128x512xf32>
    %c1 = arith.constant 1 : index
    %c0_16 = arith.constant 0 : index
    %c0_17 = arith.constant 0 : index
    %27 = vector.load %arg4[%c1, %c0_16, %c0_17] : memref<2x128x128xf32, #tpu.memory_space<vmem>>, vector<1x128x128xf32>
    %28 = vector.shape_cast %27 : vector<1x128x128xf32> to vector<128x128xf32>
    %c1_18 = arith.constant 1 : index
    %c0_19 = arith.constant 0 : index
    %c0_20 = arith.constant 0 : index
    %29 = vector.load %arg5[%c1_18, %c0_19, %c0_20] : memref<2x128x1xf32, #tpu.memory_space<vmem>>, vector<1x128x1xf32>
    %30 = vector.shape_cast %29 : vector<1x128x1xf32> to vector<128x1xf32>
    %cst_21 = arith.constant dense<0.000000e+00> : vector<128x512xf32>
    %31 = tpu.matmul %28, %26, %cst_21 {dimension_numbers = #tpu.dot_dimension_numbers<[1], [0], [0], [1], [0, 0, 1, 1], [], []>} : vector<128x128xf32>, vector<128x512xf32>, vector<128x512xf32> -> vector<128x512xf32>
    %32 = vector.broadcast %30 : vector<128x1xf32> to vector<128x512xf32>
    %33 = arith.addf %31, %32 : vector<128x512xf32>
    %cst_22 = arith.constant 0.000000e+00 : f32
    %34 = vector.broadcast %cst_22 : f32 to vector<128x512xf32>
    %35 = arith.subf %34, %33 : vector<128x512xf32>
    %36 = math.exp %35 : vector<128x512xf32>
    %cst_23 = arith.constant 1.000000e+00 : f32
    %37 = vector.broadcast %cst_23 : f32 to vector<128x512xf32>
    %38 = arith.addf %37, %36 : vector<128x512xf32>
    %39 = tpu.reciprocal %38 {approx = true} : vector<128x512xf32> -> vector<128x512xf32>
    %40 = arith.mulf %33, %39 : vector<128x512xf32>
    %c0_24 = arith.constant 0 : index
    %c0_25 = arith.constant 0 : index
    %41 = vector.load %arg6[%c0_24, %c0_25] : memref<25x128xf32, #tpu.memory_space<vmem>>, vector<25x128xf32>
    %cst_26 = arith.constant dense<0.000000e+00> : vector<25x512xf32>
    %42 = tpu.matmul %41, %40, %cst_26 {dimension_numbers = #tpu.dot_dimension_numbers<[1], [0], [0], [1], [0, 0, 1, 1], [], []>} : vector<25x128xf32>, vector<128x512xf32>, vector<25x512xf32> -> vector<25x512xf32>
    %c0_27 = arith.constant 0 : index
    %c0_28 = arith.constant 0 : index
    %43 = vector.load %arg7[%c0_27, %c0_28] : memref<25x1xf32, #tpu.memory_space<vmem>>, vector<25x1xf32>
    %44 = vector.broadcast %43 : vector<25x1xf32> to vector<25x512xf32>
    %45 = arith.addf %42, %44 : vector<25x512xf32>
    %46 = tpu.iota {dimensions = array<i32: 1>} : vector<1x25xi32>
    %c0_i32 = arith.constant 0 : i32
    %47 = vector.broadcast %c0_i32 : i32 to vector<1x25xi32>
    %48 = arith.cmpi sgt, %46, %47 : vector<1x25xi32>
    %49 = arith.extui %48 : vector<1x25xi1> to vector<1x25xi32>
    %50 = arith.sitofp %49 : vector<1x25xi32> to vector<1x25xf32>
    %51 = arith.mulf %45, %45 : vector<25x512xf32>
    %cst_29 = arith.constant dense<0.000000e+00> : vector<1x512xf32>
    %52 = tpu.matmul %50, %51, %cst_29 {dimension_numbers = #tpu.dot_dimension_numbers<[1], [0], [0], [1], [0, 0, 1, 1], [], []>} : vector<1x25xf32>, vector<25x512xf32>, vector<1x512xf32> -> vector<1x512xf32>
    %53 = vector.extract_strided_slice %45 {offsets = [0, 0], sizes = [1, 512], strides = [1, 1]} : vector<25x512xf32> to vector<1x512xf32>
    %54 = math.sqrt %52 : vector<1x512xf32>
    %55 = tpu.concatenate %53, %54 in 0 : vector<1x512xf32>, vector<1x512xf32> -> vector<2x512xf32>
    %c0_30 = arith.constant 0 : index
    %c0_31 = arith.constant 0 : index
    %56 = vector.load %arg8[%c0_30, %c0_31] : memref<2x512xf32, #tpu.memory_space<vmem>>, vector<2x512xf32>
    tpu.vector_store %arg8[%c0_30, %c0_31], %55 {strides = array<i32>} : memref<2x512xf32, #tpu.memory_space<vmem>>, vector<2x512xf32>,
    return
  }
  func.func @transform_0(%arg0: i32) -> (i32, i32) {
    %c0_i32 = arith.constant 0 : i32
    %c0_i32_0 = arith.constant 0 : i32
    return %c0_i32, %arg0 : i32, i32
  }
  func.func @transform_1(%arg0: i32) -> (i32, i32) {
    %c0_i32 = arith.constant 0 : i32
    %c0_i32_0 = arith.constant 0 : i32
    %c0_i32_1 = arith.constant 0 : i32
    return %c0_i32, %c0_i32_0 : i32, i32
  }
  func.func @transform_2(%arg0: i32) -> (i32, i32) {
    %c0_i32 = arith.constant 0 : i32
    %c0_i32_0 = arith.constant 0 : i32
    %c0_i32_1 = arith.constant 0 : i32
    return %c0_i32, %c0_i32_0 : i32, i32
  }
  func.func @transform_3(%arg0: i32) -> (i32, i32, i32) {
    %c0_i32 = arith.constant 0 : i32
    %c0_i32_0 = arith.constant 0 : i32
    %c0_i32_1 = arith.constant 0 : i32
    %c0_i32_2 = arith.constant 0 : i32
    return %c0_i32, %c0_i32_0, %c0_i32_1 : i32, i32, i32
  }
  func.func @transform_4(%arg0: i32) -> (i32, i32, i32) {
    %c0_i32 = arith.constant 0 : i32
    %c0_i32_0 = arith.constant 0 : i32
    %c0_i32_1 = arith.constant 0 : i32
    %c0_i32_2 = arith.constant 0 : i32
    return %c0_i32, %c0_i32_0, %c0_i32_1 : i32, i32, i32
  }
  func.func @transform_5(%arg0: i32) -> (i32, i32) {
    %c0_i32 = arith.constant 0 : i32
    %c0_i32_0 = arith.constant 0 : i32
    %c0_i32_1 = arith.constant 0 : i32
    return %c0_i32, %c0_i32_0 : i32, i32
  }
  func.func @transform_6(%arg0: i32) -> (i32, i32) {
    %c0_i32 = arith.constant 0 : i32
    %c0_i32_0 = arith.constant 0 : i32
    %c0_i32_1 = arith.constant 0 : i32
    return %c0_i32, %c0_i32_0 : i32, i32
  }
  func.func @transform_7(%arg0: i32) -> (i32, i32) {
    %c0_i32 = arith.constant 0 : i32
    %c0_i32_0 = arith.constant 0 : i32
    return %c0_i32, %arg0 : i32, i32
  }
}

</mosaic_0001>

<bundles_post_ra>
// kernel: tpu_custom_call.1
= control target key start
LH: loop header
LB: loop body
LE: loop exit
PB: predicated region body
PF: predicated region fallthrough
CT: control target
= control target key end

     0   :  { %12 = vsyncpa [#allocation4], 0  ;;  %s6750_s0 = inlined_call_operand.vmem [shape: f32[16,1024], index: 0, kind: input, shape index: {}]   ;;  %s6751_s1 = inlined_call_operand.vmem [shape: f32[128,16], index: 1, kind: input, shape index: {}]   ;;  %s6752_s2 = inlined_call_operand.vmem [shape: f32[128,1], index: 2, kind: input, shape index: {}]   ;;  %s6753_s3 = inlined_call_operand.vmem [shape: f32[2,128,128], index: 3, kind: input, shape index: {}]   ;;  %s6754_s4 = inlined_call_operand.vmem [shape: f32[2,128,1], index: 4, kind: input, shape index: {}]   ;;  %s6755_s5 = inlined_call_operand.vmem [shape: f32[25,128], index: 5, kind: input, shape index: {}]   ;;  %s6756_s6 = inlined_call_operand.vmem [shape: f32[25,1], index: 6, kind: input, shape index: {}]   ;;  %s6757_s7 = inlined_call_operand.hbm [shape: f32[2,1024], index: 7, kind: output, shape index: {}]  }
   0x1   :  { %14 = vsyncpa [#allocation4 + $0x1], 0  ;;  %s4372_s24 = smov 0   ;;  %s4374_s25 = smov 0  }
   0x2   :  { %s4376_s26 = smov 0   ;;  %s4378_s27 = smov 0  }
   0x3 LB: > { %s3358_s28 = sadd.s32 4294967295, %s4326_s27   ;;  %s3359_s29 = sadd.s32 4294967294, %s4326_s27   ;;  %s4326_s27 = sphi %s4378_s27, %s7292_s27   ;;  %s4322_s26 = sphi %s4376_s26, %s7291_s26   ;;  %s4318_s25 = sphi %s4374_s25, %s7290_s25   ;;  %s4314_s24 = sphi %s4372_s24, %s7289_s24  }
   0x4   : > { %s4395_s30 = sadd.s32 1, %s4326_s27   ;;  %s27_s8 = sadd.s32 1, %s4322_s26 }
   0x5   : > { %s24_s9 = ssub.s32 %s4326_s27, %s4395_s30  ;;  %p34_p0 = scmp.ne.s32.totalorder %s4322_s26, %s4318_s25 }
   0x6   : > { %p25_p1 = scmp.eq.s32.totalorder %s24_s9, 0  ;;  %p35_p2 = scmp.eq.s32.totalorder %s4326_s27, 0 }
   0x7   : > { %p190_p3 = scmp.eq.s32.totalorder %s3358_s28, 1  ;;  %p195_p4 = scmp.ne.s32.totalorder %s4318_s25, %s4314_s24 }
   0x8   : > { %s4408_s10 = scalar_select %p25_p1, %s4322_s26, %s27_s8  }
   0x9   : > { %p36_p5 = por %p35_p2, %p34_p0  ;;  %p4410_p6 = por %p190_p3, %p34_p0 }
   0xa   : > { %p196_p7 = scmp.eq.s32.totalorder %s3359_s29, 1  ;;  %p6892_p9 = scmp.ge.s32.totalorder %s4326_s27, 2 }
   0xc   : > { %p4414_p8 = por %p196_p7, %p195_p4  ;;  %230 = sbr.rel (%p6892_p9) target bundleno = 25 (0x19), region = 40 }
  0x11   : > { %233 = sbr.rel (!%p36_p5) target bundleno = 25 (0x19), region = 44  ;;  %s235_s13 = sand.u32 (%p36_p5), 1, %s4322_s26  }
  0x12   : > { %s3444_s14 = sshll.u32 (%p36_p5), %s4326_s27, 5  ;;  %s3362_s15 = sshll.u32 (%p36_p5), %s235_s13, 6 }
  0x13   : > { %s240_s18 = scalar_lea.vmem (%p36_p5), %s6750_s0, %s3444_s14  ;;  %s237_s19 = scalar_lea.vmem (%p36_p5), [#allocation2], %s3362_s15 }
  0x14   : > { %v253_v0 = vld [vmem:[%s240_s18] sm:$0xff] (%p36_p5)  ;;  %v255_v1 = vld [vmem:[%s240_s18 + $0x8] sm:$0xff] (%p36_p5)  ;;  %v257_v2 = vld [vmem:[%s240_s18 + $0x10] sm:$0xff] (%p36_p5) }
  0x15   : > { %254 = vst [vmem:[%s237_s19] sm:$0xff] (%p36_p5), %v253_v0  ;;  %256 = vst [vmem:[%s237_s19 + $0x8] sm:$0xff] (%p36_p5), %v255_v1  ;;  %v259_v3 = vld [vmem:[%s240_s18 + $0x18] sm:$0xff] (%p36_p5)  ;;  %v261_v4 = vld [vmem:[%s240_s18 + $0x40] sm:$0xff] (%p36_p5) }
  0x16   : > { %258 = vst [vmem:[%s237_s19 + $0x10] sm:$0xff] %v257_v2  ;;  %v263_v5 = vld [vmem:[%s240_s18 + $0x48] sm:$0xff]  ;;  %260 = vst [vmem:[%s237_s19 + $0x18] sm:$0xff] %v259_v3  ;;  %v265_v6 = vld [vmem:[%s240_s18 + $0x50] sm:$0xff] }
  0x17   : > { %262 = vst [vmem:[%s237_s19 + $0x20] sm:$0xff] %v261_v4  ;;  %264 = vst [vmem:[%s237_s19 + $0x28] sm:$0xff] %v263_v5  ;;  %v267_v7 = vld [vmem:[%s240_s18 + $0x58] sm:$0xff] }
  0x18   : > { %266 = vst [vmem:[%s237_s19 + $0x30] sm:$0xff] %v265_v6  ;;  %268 = vst [vmem:[%s237_s19 + $0x38] sm:$0xff] %v267_v7 }
  0x19 PF: > { %p3365_p10 = scmp.ge.s32.totalorder %s4326_s27, 1  ;;  %p273_p11 = scmp.lt.s32.totalorder %s4326_s27, 3 }
  0x1b   : > { %p274_p12 = pnand %p3365_p10, %p273_p11 }
  0x1d   : > { %277 = sbr.rel (%p274_p12) target bundleno = 1556 (0x614), region = 67 }
  0x22   : > { %s4429_s20 = sand.u32 1, %s4318_s25   ;;  %v6758_v8 = vmov 0.0   ;;  %v4329_v9 = vmov 0   ;;  %v352_v10 = vld [vmem:[%s6752_s2 + $0x78] sm:$0xff]  ;;  %v313_v19 = vld [vmem:[%s6751_s1] sm:$0xff]  ;;  %vm433_vm0 = vcmask 130048  }
  0x23   : > { %s3366_s21 = sshll.u32 %s4429_s20, 6  ;;  %546 = vmatprep.mubr.f32.mxu0 %v6758_v8  ;;  %707 = vmatprep.mubr.f32.mxu1 %v6758_v8  ;;  %v351_v20 = vld [vmem:[%s6752_s2 + $0x70] sm:$0xff]  ;;  %v350_v21 = vld [vmem:[%s6752_s2 + $0x68] sm:$0xff]  ;;  %v349_v23 = vld [vmem:[%s6752_s2 + $0x60] sm:$0xff]  ;;  %vm3057_vm1 = vcmask 1040384   ;;  %vm3053_vm3 = vcmask 203776  }
  0x24   : > { %3488 = vset.pattern.permute.xlu0 %v4329_v9  ;;  %3489 = vset.pattern.permute.xlu1 %v4329_v9  ;;  %s282_s29 = scalar_lea.vmem [#allocation2], %s3366_s21  ;;  %v314_v22 = vld [vmem:[%s6751_s1 + $0x8] sm:$0xff]  ;;  %v348_v24 = vld [vmem:[%s6752_s2 + $0x58] sm:$0xff]  ;;  %v315_v25 = vld [vmem:[%s6751_s1 + $0x10] sm:$0xff]  ;;  %s3367_s23 = sshll.u32 %s4429_s20, 3 }
  0x25   : > { %v334_v11 = vld [vmem:[%s282_s29 + $0x28] sm:$0xff]  ;;  %v336_v12 = vld [vmem:[%s282_s29 + $0x38] sm:$0xff]  ;;  %v333_v13 = vld [vmem:[%s282_s29 + $0x20] sm:$0xff]  ;;  %430 = vperm.xlu0 %3488, %v352_v10   ;;  %420 = vperm.xlu1 %3489, %v350_v21   ;;  %s310_s8 = scalar_lea.vmem [#allocation3], %s3367_s23  ;;  %s3280_s16 = scalar_lea.sflag [#allocation4], %s4429_s20 }
  0x26   : > { %510 = vmatprep.subr.mxu0 %v334_v11  ;;  %671 = vmatprep.subr.mxu1 %v336_v12  ;;  %v335_v14 = vld [vmem:[%s282_s29 + $0x30] sm:$0xff]  ;;  %v330_v15 = vld [vmem:[%s282_s29 + $0x8] sm:$0xff]  ;;  %v332_v16 = vld [vmem:[%s282_s29 + $0x18] sm:$0xff]  ;;  %s3294_s9 = sshll.u32 %s310_s8, 4  ;;  %s4331_s18 = smov [#allocation3]   ;;  %s3295_s9 = int_to_ptr.vmem [resolvable:$true] %s3294_s9 }
  0x27   : > { %511 = vmatpush1.msra.mxu0 %v333_v13  ;;  %672 = vmatpush1.msra.mxu1 %v335_v14  ;;  %v329_v17 = vld [vmem:[%s282_s29] sm:$0xff]  ;;  %v331_v18 = vld [vmem:[%s282_s29 + $0x10] sm:$0xff]  ;;  %v346_v27 = vld [vmem:[%s6752_s2 + $0x48] sm:$0xff]  ;;  %s3445_s29 = sshll.u32 %s3358_s28, 7  ;;  %s4266_s17 = scalar_lea.vmem %s3295_s9, 128 }
  0x28   : > { %512 = vmatprep.subr.mxu0 %v330_v15  ;;  %673 = vmatprep.subr.mxu1 %v332_v16  ;;  %v347_v26 = vld [vmem:[%s6752_s2 + $0x50] sm:$0xff]  ;;  %v316_v28 = vld [vmem:[%s6751_s1 + $0x18] sm:$0xff]  ;;  %v345_v29 = vld [vmem:[%s6752_s2 + $0x40] sm:$0xff]  ;;  %s3292_s15 = scalar_lea.hbm %s6757_s7, %s3445_s29  ;;  %p4267_p13 = scmp.ne.s32.totalorder %s3295_s9, %s4266_s17 }
  0x29   : > { %513 = vmatpush1.msra.mxu0 %v329_v17  ;;  %674 = vmatpush1.msra.mxu1 %v331_v18  ;;  %v344_v30 = vld [vmem:[%s6752_s2 + $0x38] sm:$0xff]  ;;  %v317_v31 = vld [vmem:[%s6751_s1 + $0x20] sm:$0xff]  ;;  %v343_v32 = vld [vmem:[%s6752_s2 + $0x30] sm:$0xff]  ;;  %s4270_s19 = sshll.u32 %s4331_s18, 4  ;;  %s4271_s19 = int_to_ptr.vmem [resolvable:$false] %s4270_s19 }
  0x2a   : > { %3368 = vmatmul.mubr.msk.f32.vlgmr.msra.gmra.mxu0 %vm433_vm0, %v313_v19  ;;  %3384 = vmatmul.mubr.msk.f32.vlgmr.msra.gmra.mxu1 %vm433_vm0, %v313_v19  ;;  %v342_v33 = vld [vmem:[%s6752_s2 + $0x28] sm:$0xff]  ;;  %v341_v35 = vld [vmem:[%s6752_s2 + $0x20] sm:$0xff]  ;;  %v340_v36 = vld [vmem:[%s6752_s2 + $0x18] sm:$0xff]  ;;  %p4268_p0 = pnand %p4267_p13, %p4410_p6  ;;  %s4272_s28 = scalar_lea.vmem %s4271_s19, 256 }
  0x2b   : > { %552 = vmatprep.mubr.f32.mxu0 %v6758_v8  ;;  %713 = vmatprep.mubr.f32.mxu1 %v6758_v8  ;;  %v318_v34 = vld [vmem:[%s6751_s1 + $0x28] sm:$0xff]  ;;  %v319_v37 = vld [vmem:[%s6751_s1 + $0x30] sm:$0xff]  ;;  %v320_v40 = vld [vmem:[%s6751_s1 + $0x38] sm:$0xff]  ;;  %p4273_p2 = scmp.lt.s32.totalorder %s3295_s9, %s4271_s19  ;;  %p4274_p3 = scmp.lt.s32.totalorder %s4272_s28, %s4266_s17 }
  0x2c   : > { %425 = vperm.xlu0 %3488, %v351_v20   ;;  %415 = vperm.xlu1 %3489, %v349_v23   ;;  %v339_v38 = vld [vmem:[%s6752_s2 + $0x10] sm:$0xff]  ;;  %v338_v39 = vld [vmem:[%s6752_s2 + $0x8] sm:$0xff]  ;;  %v1219_v41 = vld [vmem:[%s6754_s4 + $0x78] sm:$0xff]  ;;  %p4269_p1 = pneg %p4268_p0 }
  0x2d   : > { %v337_v42 = vld [vmem:[%s6752_s2] sm:$0xff]  ;;  %v1217_v44 = vld [vmem:[%s6754_s4 + $0x68] sm:$0xff]  ;;  %v1218_v45 = vld [vmem:[%s6754_s4 + $0x70] sm:$0xff]  ;;  %p4275_p4 = por %p4274_p3, %p4273_p2 }
  0x2e   : > { %3369 = vmatmul.mubr.msk.f32.gmra.mxu0 %vm433_vm0, %v314_v22  ;;  %3385 = vmatmul.mubr.msk.f32.gmra.mxu1 %vm433_vm0, %v314_v22  ;;  %v321_v43 = vld [vmem:[%s6751_s1 + $0x40] sm:$0xff]  ;;  %v322_v46 = vld [vmem:[%s6751_s1 + $0x48] sm:$0xff]  ;;  %v1215_v47 = vld [vmem:[%s6754_s4 + $0x58] sm:$0xff] }
  0x2f   : > { %558 = vmatprep.mubr.f32.mxu0 %v6758_v8  ;;  %719 = vmatprep.mubr.f32.mxu1 %v6758_v8  ;;  %v1216_v48 = vld [vmem:[%s6754_s4 + $0x60] sm:$0xff]  ;;  %v323_v49 = vld [vmem:[%s6751_s1 + $0x50] sm:$0xff]  ;;  %v1213_v50 = vld [vmem:[%s6754_s4 + $0x48] sm:$0xff]  ;;  %p4276_p5 = pnand %p4275_p4, %p4269_p1 }
  0x30   : > { %410 = vperm.xlu0 %3488, %v348_v24   ;;  %405 = vperm.xlu1 %3489, %v347_v26   ;;  %v1214_v51 = vld [vmem:[%s6754_s4 + $0x50] sm:$0xff]  ;;  %v324_v52 = vld [vmem:[%s6751_s1 + $0x58] sm:$0xff]  ;;  %v1212_v54 = vld [vmem:[%s6754_s4 + $0x40] sm:$0xff] }
  0x31   : > { %v1211_v53 = vld [vmem:[%s6754_s4 + $0x38] sm:$0xff]  ;;  %v325_v55 = vld [vmem:[%s6751_s1 + $0x60] sm:$0xff]  ;;  %v1209_v56 = vld [vmem:[%s6754_s4 + $0x28] sm:$0xff] }
  0x32   : > { %3370 = vmatmul.mubr.msk.f32.gmra.mxu0 %vm433_vm0, %v315_v25  ;;  %3386 = vmatmul.mubr.msk.f32.gmra.mxu1 %vm433_vm0, %v315_v25  ;;  %v1210_v57 = vld [vmem:[%s6754_s4 + $0x30] sm:$0xff]  ;;  %v326_v58 = vld [vmem:[%s6751_s1 + $0x68] sm:$0xff]  ;;  %v1207_v59 = vld [vmem:[%s6754_s4 + $0x18] sm:$0xff] }
  0x33   : > { %564 = vmatprep.mubr.f32.mxu0 %v6758_v8  ;;  %725 = vmatprep.mubr.f32.mxu1 %v6758_v8  ;;  %v1208_v60 = vld [vmem:[%s6754_s4 + $0x20] sm:$0xff]  ;;  %v327_v61 = vld [vmem:[%s6751_s1 + $0x70] sm:$0xff]  ;;  %v1205_v62 = vld [vmem:[%s6754_s4 + $0x8] sm:$0xff] }
  0x34   : > { %400 = vperm.xlu0 %3488, %v346_v27   ;;  %395 = vperm.xlu1 %3489, %v345_v29   ;;  %v1206_v63 = vld [vmem:[%s6754_s4 + $0x10] sm:$0xff]  ;;  %v328_v0 = vld [vmem:[%s6751_s1 + $0x78] sm:$0xff]  ;;  %v1204_v2 = vld [vmem:[%s6754_s4] sm:$0xff] }
  0x35   : > { %v3431_v1 = vld [vmem:[%s6754_s4 + $0xf8] sm:$0xff]  ;;  %v3429_v3 = vld [vmem:[%s6754_s4 + $0xe8] sm:$0xff]  ;;  %v3430_v4 = vld [vmem:[%s6754_s4 + $0xf0] sm:$0xff] }
  0x36   : > { %3371 = vmatmul.mubr.msk.f32.gmra.mxu0 %vm433_vm0, %v316_v28  ;;  %3387 = vmatmul.mubr.msk.f32.gmra.mxu1 %vm433_vm0, %v316_v28  ;;  %v3427_v5 = vld [vmem:[%s6754_s4 + $0xd8] sm:$0xff]  ;;  %v3428_v6 = vld [vmem:[%s6754_s4 + $0xe0] sm:$0xff]  ;;  %v3425_v7 = vld [vmem:[%s6754_s4 + $0xc8] sm:$0xff] }
  0x37   : > { %570 = vmatprep.mubr.f32.mxu0 %v6758_v8  ;;  %731 = vmatprep.mubr.f32.mxu1 %v6758_v8  ;;  %v3426_v9 = vld [vmem:[%s6754_s4 + $0xd0] sm:$0xff]  ;;  %v3423_v10 = vld [vmem:[%s6754_s4 + $0xb8] sm:$0xff]  ;;  %v3424_v11 = vld [vmem:[%s6754_s4 + $0xc0] sm:$0xff] }
  0x38   : > { %390 = vperm.xlu0 %3488, %v344_v30   ;;  %385 = vperm.xlu1 %3489, %v343_v32   ;;  %v3421_v12 = vld [vmem:[%s6754_s4 + $0xa8] sm:$0xff]  ;;  %v3422_v13 = vld [vmem:[%s6754_s4 + $0xb0] sm:$0xff]  ;;  %v3419_v14 = vld [vmem:[%s6754_s4 + $0x98] sm:$0xff] }
  0x39   : > { %v3420_v15 = vld [vmem:[%s6754_s4 + $0xa0] sm:$0xff]  ;;  %v3417_v16 = vld [vmem:[%s6754_s4 + $0x88] sm:$0xff]  ;;  %v3418_v17 = vld [vmem:[%s6754_s4 + $0x90] sm:$0xff] }
  0x3a   : > { %3372 = vmatmul.mubr.msk.f32.gmra.mxu0 %vm433_vm0, %v317_v31  ;;  %3388 = vmatmul.mubr.msk.f32.gmra.mxu1 %vm433_vm0, %v317_v31  ;;  %v2833_v18 = vld [vmem:[%s6756_s6 + $0x18] sm:$0x1]  ;;  %v3416_v19 = vld [vmem:[%s6754_s4 + $0x80] sm:$0xff]  ;;  %v2831_v20 = vld [vmem:[%s6756_s6 + $0x8] sm:$0xff] }
  0x3b   : > { %576 = vmatprep.mubr.f32.mxu0 %v6758_v8  ;;  %737 = vmatprep.mubr.f32.mxu1 %v6758_v8  ;;  %v2832_v21 = vld [vmem:[%s6756_s6 + $0x10] sm:$0xff]  ;;  %v2830_v22 = vld [vmem:[%s6756_s6] sm:$0xff] }
  0x3c   : > { %380 = vperm.xlu0 %3488, %v342_v33   ;;  %375 = vperm.xlu1 %3489, %v341_v35  }
  0x3e   : > { %3373 = vmatmul.mubr.msk.f32.gmra.mxu0 %vm433_vm0, %v318_v34  ;;  %3389 = vmatmul.mubr.msk.f32.gmra.mxu1 %vm433_vm0, %v318_v34 }
  0x3f   : > { %582 = vmatprep.mubr.f32.mxu0 %v6758_v8  ;;  %743 = vmatprep.mubr.f32.mxu1 %v6758_v8 }
  0x40   : > { %370 = vperm.xlu0 %3488, %v340_v36   ;;  %365 = vperm.xlu1 %3489, %v339_v38  }
  0x42   : > { %3374 = vmatmul.mubr.msk.f32.gmra.mxu0 %vm433_vm0, %v319_v37  ;;  %3390 = vmatmul.mubr.msk.f32.gmra.mxu1 %vm433_vm0, %v319_v37 }
  0x43   : > { %588 = vmatprep.mubr.f32.mxu0 %v6758_v8  ;;  %749 = vmatprep.mubr.f32.mxu1 %v6758_v8 }
  0x44   : > { %360 = vperm.xlu0 %3488, %v338_v39   ;;  %355 = vperm.xlu1 %3489, %v337_v42  }
  0x46   : > { %3375 = vmatmul.mubr.msk.f32.gmra.mxu0 %vm433_vm0, %v320_v40  ;;  %3391 = vmatmul.mubr.msk.f32.gmra.mxu1 %vm433_vm0, %v320_v40 }
  0x47   : > { %594 = vmatprep.mubr.f32.mxu0 %v6758_v8  ;;  %755 = vmatprep.mubr.f32.mxu1 %v6758_v8 }
  0x48   : > { %1297 = vperm.xlu0 %3488, %v1219_v41   ;;  %1292 = vperm.xlu1 %3489, %v1218_v45  }
  0x4a   : > { %3376 = vmatmul.mubr.msk.f32.gmra.mxu0 %vm433_vm0, %v321_v43  ;;  %3392 = vmatmul.mubr.msk.f32.gmra.mxu1 %vm433_vm0, %v321_v43 }
  0x4b   : > { %600 = vmatprep.mubr.f32.mxu0 %v6758_v8  ;;  %761 = vmatprep.mubr.f32.mxu1 %v6758_v8 }
  0x4c   : > { %1287 = vperm.xlu0 %3488, %v1217_v44   ;;  %1282 = vperm.xlu1 %3489, %v1216_v48  }
  0x4e   : > { %3377 = vmatmul.mubr.msk.f32.gmra.mxu0 %vm433_vm0, %v322_v46  ;;  %3393 = vmatmul.mubr.msk.f32.gmra.mxu1 %vm433_vm0, %v322_v46 }
  0x4f   : > { %606 = vmatprep.mubr.f32.mxu0 %v6758_v8  ;;  %767 = vmatprep.mubr.f32.mxu1 %v6758_v8 }
  0x50   : > { %1277 = vperm.xlu0 %3488, %v1215_v47   ;;  %1272 = vperm.xlu1 %3489, %v1214_v51  }
  0x52   : > { %3378 = vmatmul.mubr.msk.f32.gmra.mxu0 %vm433_vm0, %v323_v49  ;;  %3394 = vmatmul.mubr.msk.f32.gmra.mxu1 %vm433_vm0, %v323_v49 }
  0x53   : > { %612 = vmatprep.mubr.f32.mxu0 %v6758_v8  ;;  %773 = vmatprep.mubr.f32.mxu1 %v6758_v8 }
  0x54   : > { %1267 = vperm.xlu0 %3488, %v1213_v50   ;;  %1262 = vperm.xlu1 %3489, %v1212_v54  }
  0x56   : > { %3379 = vmatmul.mubr.msk.f32.gmra.mxu0 %vm433_vm0, %v324_v52  ;;  %3395 = vmatmul.mubr.msk.f32.gmra.mxu1 %vm433_vm0, %v324_v52 }
  0x57   : > { %618 = vmatprep.mubr.f32.mxu0 %v6758_v8  ;;  %779 = vmatprep.mubr.f32.mxu1 %v6758_v8 }
  0x58   : > { %1257 = vperm.xlu0 %3488, %v1211_v53   ;;  %1252 = vperm.xlu1 %3489, %v1210_v57  }
  0x5a   : > { %3380 = vmatmul.mubr.msk.f32.gmra.mxu0 %vm433_vm0, %v325_v55  ;;  %3396 = vmatmul.mubr.msk.f32.gmra.mxu1 %vm433_vm0, %v325_v55 }
  0x5b   : > { %624 = vmatprep.mubr.f32.mxu0 %v6758_v8  ;;  %785 = vmatprep.mubr.f32.mxu1 %v6758_v8 }
  0x5c   : > { %1247 = vperm.xlu0 %3488, %v1209_v56   ;;  %1242 = vperm.xlu1 %3489, %v1208_v60  }
  0x5e   : > { %3381 = vmatmul.mubr.msk.f32.gmra.mxu0 %vm433_vm0, %v326_v58  ;;  %3397 = vmatmul.mubr.msk.f32.gmra.mxu1 %vm433_vm0, %v326_v58 }
  0x5f   : > { %630 = vmatprep.mubr.f32.mxu0 %v6758_v8  ;;  %791 = vmatprep.mubr.f32.mxu1 %v6758_v8 }
  0x60   : > { %1237 = vperm.xlu0 %3488, %v1207_v59   ;;  %1232 = vperm.xlu1 %3489, %v1206_v63  }
  0x62   : > { %3382 = vmatmul.mubr.msk.f32.gmra.mxu0 %vm433_vm0, %v327_v61  ;;  %3398 = vmatmul.mubr.msk.f32.gmra.mxu1 %vm433_vm0, %v327_v61 }
  0x63   : > { %636 = vmatprep.mubr.f32.mxu0 %v6758_v8  ;;  %797 = vmatprep.mubr.f32.mxu1 %v6758_v8 }
  0x64   : > { %1227 = vperm.xlu0 %3488, %v1205_v62   ;;  %1222 = vperm.xlu1 %3489, %v1204_v2  }
  0x66   : > { %3383 = vmatmul.mubr.msk.f32.gmra.mxu0 %vm433_vm0, %v328_v0  ;;  %3399 = vmatmul.mubr.msk.f32.gmra.mxu1 %vm433_vm0, %v328_v0 }
  0x67   : > { %1364 = vmatprep.mubr.f32.mxu0 %v6758_v8  ;;  %1525 = vmatprep.mubr.f32.mxu1 %v6758_v8 }
  0x68   : > { %2117 = vperm.xlu0 %3488, %v3431_v1   ;;  %2112 = vperm.xlu1 %3489, %v3430_v4  }
  0x6c   : > { %2107 = vperm.xlu0 %3488, %v3429_v3   ;;  %2102 = vperm.xlu1 %3489, %v3428_v6  }
  0x70   : > { %2097 = vperm.xlu0 %3488, %v3427_v5   ;;  %2092 = vperm.xlu1 %3489, %v3426_v9  }
  0x74   : > { %2087 = vperm.xlu0 %3488, %v3425_v7   ;;  %2082 = vperm.xlu1 %3489, %v3424_v11  }
  0x78   : > { %2077 = vperm.xlu0 %3488, %v3423_v10   ;;  %2072 = vperm.xlu1 %3489, %v3422_v13  }
  0x7c   : > { %2067 = vperm.xlu0 %3488, %v3421_v12   ;;  %2062 = vperm.xlu1 %3489, %v3420_v15  }
  0x80   : > { %2057 = vperm.xlu0 %3488, %v3419_v14   ;;  %2052 = vperm.xlu1 %3489, %v3418_v17  }
  0x84   : > { %2047 = vperm.xlu0 %3488, %v3417_v16   ;;  %2042 = vperm.xlu1 %3489, %v3416_v19  }
  0x88   : > { %2851 = vperm.xlu0 %3488, %v2833_v18   ;;  %2846 = vperm.xlu1 %3489, %v2832_v21  }
  0x8c   : > { %2841 = vperm.xlu0 %3488, %v2831_v20   ;;  %2836 = vperm.xlu1 %3489, %v2830_v22  }
  0xa0   : > { %v4702_v23 = vpop.permute.xlu1 %420  ;;  %v4704_v24 = vpop.permute.xlu0 %430 }
  0xa7   : > { %v4706_v25 = vpop.permute.xlu1 %415  ;;  %v4708_v26 = vpop.permute.xlu0 %425 }
  0xab   : > { %v4710_v27 = vpop.permute.xlu1 %405  ;;  %v4712_v28 = vpop.permute.xlu0 %410 }
  0xaf   : > { %v4714_v29 = vpop.permute.xlu1 %395  ;;  %v4716_v32 = vpop.permute.xlu0 %400 }
  0xb3   : > { %v4718_v37 = vpop.permute.xlu1 %385  ;;  %v4720_v40 = vpop.permute.xlu0 %390 }
  0xb7   : > { %v4722_v45 = vpop.permute.xlu1 %375  ;;  %v4724_v48 = vpop.permute.xlu0 %380 }
  0xbb   : > { %v366_v53 = vpop.permute.xlu1 %365  ;;  %v371_v56 = vpop.permute.xlu0 %370 }
  0xbf   : > { %v356_v59 = vpop.permute.xlu1 %355  ;;  %v361_v63 = vpop.permute.xlu0 %360 }
  0xea   : > { %v548_v30 = vpop.f32.mrf.mxu0  ;;  %v709_v31 = vpop.f32.mrf.mxu1 }
  0xeb   : > { %v4742_v61 = vadd.f32 %v548_v30, %v356_v59  ;;  %v4775_v21 = vadd.f32 %v709_v31, %v356_v59 }
  0xec   : > { %v550_v33 = vpop.f32.mrf.mxu0  ;;  %v711_v34 = vpop.f32.mrf.mxu1 }
  0xed   : > { %6895 = vst [vmem:[#allocation6_spill] sm:$0xff] %v4742_v61  ;;  %v4744_v62 = vadd.f32 %v550_v33, %v356_v59  ;;  %v804_v3 = vsub.f32 0.0, %v4742_v61  ;;  %6903 = vst [vmem:[#allocation14_spill] sm:$0xff] %v4775_v21  ;;  %v4778_v30 = vadd.f32 %v711_v34, %v356_v59 }
  0xee   : > { %v554_v35 = vpop.f32.mrf.mxu0  ;;  %v715_v36 = vpop.f32.mrf.mxu1 }
  0xef   : > { %6896 = vst [vmem:[#allocation7_spill] sm:$0xff] %v4744_v62  ;;  %v4748_v1 = vadd.f32 %v554_v35, %v361_v63  ;;  %v805_v4 = vsub.f32 0.0, %v4744_v62  ;;  %v868_v10 = vmul.f32 1.442695, %v804_v3  ;;  %6904 = vst [vmem:[#allocation15_spill] sm:$0xff] %v4778_v30  ;;  %v806_v3 = vsub.f32 0.0, %v4775_v21 }
  0xf0   : > { %v556_v38 = vpop.f32.mrf.mxu0  ;;  %v717_v39 = vpop.f32.mrf.mxu1  ;;  %v807_v59 = vsub.f32 0.0, %v4778_v30 }
  0xf1   : > { %6897 = vst [vmem:[#allocation8_spill] sm:$0xff] %v4748_v1  ;;  %v4754_v5 = vadd.f32 %v556_v38, %v361_v63  ;;  %v808_v7 = vsub.f32 0.0, %v4748_v1  ;;  %v870_v12 = vmul.f32 1.442695, %v805_v4  ;;  %3490 = vpow2.f32 %v868_v10 }
  0xf2   : > { %v560_v41 = vpop.f32.mrf.mxu0  ;;  %v721_v42 = vpop.f32.mrf.mxu1  ;;  %v4782_v38 = vadd.f32 %v715_v36, %v361_v63 }
  0xf3   : > { %6898 = vst [vmem:[#allocation9_spill] sm:$0xff] %v4754_v5  ;;  %v4761_v11 = vadd.f32 %v560_v41, %v366_v53  ;;  %v809_v14 = vsub.f32 0.0, %v4754_v5  ;;  %v876_v16 = vmul.f32 1.442695, %v808_v7  ;;  %3492 = vpow2.f32 %v870_v12 }
  0xf4   : > { %v562_v43 = vpop.f32.mrf.mxu0  ;;  %v723_v44 = vpop.f32.mrf.mxu1  ;;  %6905 = vst [vmem:[#allocation16_spill] sm:$0xff] %v4782_v38  ;;  %v4791_v4 = vadd.f32 %v721_v42, %v366_v53  ;;  %v810_v10 = vsub.f32 0.0, %v4782_v38 }
  0xf5   : > { %6899 = vst [vmem:[#allocation10_spill] sm:$0xff] %v4761_v11  ;;  %v4763_v13 = vadd.f32 %v562_v43, %v366_v53  ;;  %v812_v19 = vsub.f32 0.0, %v4761_v11  ;;  %v878_v33 = vmul.f32 1.442695, %v809_v14  ;;  %3494 = vpow2.f32 %v876_v16 }
  0xf6   : > { %v566_v46 = vpop.f32.mrf.mxu0  ;;  %v727_v47 = vpop.f32.mrf.mxu1  ;;  %6907 = vst [vmem:[#allocation18_spill] sm:$0xff] %v4791_v4  ;;  %v4794_v7 = vadd.f32 %v723_v44, %v366_v53  ;;  %v872_v16 = vmul.f32 1.442695, %v806_v3 }
  0xf7   : > { %6900 = vst [vmem:[#allocation11_spill] sm:$0xff] %v4763_v13  ;;  %v4768_v17 = vadd.f32 %v566_v46, %v371_v56  ;;  %v813_v22 = vsub.f32 0.0, %v4763_v13  ;;  %v4787_v46 = vadd.f32 %v717_v39, %v361_v63  ;;  %3496 = vpow2.f32 %v878_v33 }
  0xf8   : > { %v568_v49 = vpop.f32.mrf.mxu0  ;;  %v4726_v50 = vpop.f32.mrf.mxu1  ;;  %6908 = vst [vmem:[#allocation19_spill] sm:$0xff] %v4794_v7  ;;  %v4799_v39 = vadd.f32 %v727_v47, %v371_v56  ;;  %v815_v44 = vsub.f32 0.0, %v4794_v7  ;;  %v880_v47 = vmul.f32 1.442695, %v810_v10 }
  0xf9   : > { %6901 = vst [vmem:[#allocation12_spill] sm:$0xff] %v4768_v17  ;;  %v4773_v20 = vadd.f32 %v568_v49, %v371_v56  ;;  %v816_v41 = vsub.f32 0.0, %v4768_v17  ;;  %6906 = vst [vmem:[#allocation17_spill] sm:$0xff] %v4787_v46  ;;  %v884_v49 = vmul.f32 1.442695, %v812_v19  ;;  %v811_v14 = vsub.f32 0.0, %v4787_v46 }
  0xfa   : > { %v4728_v51 = vpop.f32.mrf.mxu0  ;;  %v4730_v52 = vpop.f32.mrf.mxu1  ;;  %v886_v34 = vmul.f32 1.442695, %v813_v22  ;;  %6909 = vst [vmem:[#allocation20_spill] sm:$0xff] %v4799_v39  ;;  %v814_v19 = vsub.f32 0.0, %v4791_v4  ;;  %v874_v22 = vmul.f32 1.442695, %v807_v59  ;;  %v4807_v53 = vadd.f32 %v4726_v50, %v371_v56 }
  0xfb   : > { %6902 = vst [vmem:[#allocation13_spill] sm:$0xff] %v4773_v20  ;;  %v817_v31 = vsub.f32 0.0, %v4773_v20  ;;  %v892_v12 = vmul.f32 1.442695, %v816_v41  ;;  %3498 = vpow2.f32 %v884_v49  ;;  %v818_v41 = vsub.f32 0.0, %v4799_v39 }
  0xfc   : > { %v4732_v54 = vpop.f32.mrf.mxu0  ;;  %v4734_v55 = vpop.f32.mrf.mxu1  ;;  %3500 = vpow2.f32 %v886_v34  ;;  %6910 = vst [vmem:[#allocation21_spill] sm:$0xff] %v4807_v53  ;;  %v882_v49 = vmul.f32 1.442695, %v811_v14  ;;  %v888_v34 = vmul.f32 1.442695, %v814_v19  ;;  %v819_v10 = vsub.f32 0.0, %v4807_v53 }
  0xfd   : > { %v894_v42 = vmul.f32 1.442695, %v817_v31  ;;  %3502 = vpow2.f32 %v892_v12  ;;  %v4816_v31 = vadd.f32 %v4728_v51, %v4722_v45  ;;  %v4820_v50 = vadd.f32 %v4732_v54, %v4722_v45 }
  0xfe   : > { %v4736_v57 = vpop.f32.mrf.mxu0  ;;  %v4738_v58 = vpop.f32.mrf.mxu1  ;;  %v890_v59 = vmul.f32 1.442695, %v815_v44  ;;  %v896_v14 = vmul.f32 1.442695, %v818_v41  ;;  %v898_v44 = vmul.f32 1.442695, %v819_v10  ;;  %v4865_v4 = vadd.f32 %v4730_v52, %v4722_v45 }
  0xff   : > { %3504 = vpow2.f32 %v894_v42  ;;  %6911 = vst [vmem:[#allocation22_spill] sm:$0xff] %v4816_v31  ;;  %v3491_v3 = vpop.eup %3490  ;;  %6912 = vst [vmem:[#allocation23_spill] sm:$0xff] %v4820_v50  ;;  %v4827_v51 = vadd.f32 %v4736_v57, %v4724_v48  ;;  %v820_v54 = vsub.f32 0.0, %v4816_v31  ;;  %v4881_v52 = vadd.f32 %v4738_v58, %v4724_v48 }
 0x100   : > { %v4740_v60 = vpop.f32.mrf.mxu0  ;;  %v4746_v0 = vpop.f32.mrf.mxu1  ;;  %3506 = vpow2.f32 %v872_v16  ;;  %v996_v19 = vadd.f32 1.0, %v3491_v3  ;;  %6919 = vst [vmem:[#allocation30_spill] sm:$0xff] %v4865_v4  ;;  %v822_v58 = vsub.f32 0.0, %v4865_v4 }
 0x101   : > { %v3493_v56 = vpop.eup %3492  ;;  %3508 = vpow2.f32 %v874_v22  ;;  %6913 = vst [vmem:[#allocation24_spill] sm:$0xff] %v4827_v51  ;;  %v821_v22 = vsub.f32 0.0, %v4820_v50  ;;  %v824_v3 = vsub.f32 0.0, %v4827_v51  ;;  %6923 = vst [vmem:[#allocation34_spill] sm:$0xff] %v4881_v52 }
 0x102   : > { %v4750_v2 = vpop.f32.mrf.mxu0  ;;  %v4756_v6 = vpop.f32.mrf.mxu1  ;;  %3510 = vpow2.f32 %v880_v47  ;;  %v997_v21 = vadd.f32 1.0, %v3493_v56  ;;  %v4835_v47 = vadd.f32 %v4740_v60, %v4724_v48  ;;  %v900_v56 = vmul.f32 1.442695, %v820_v54 }
 0x103   : > { %v3495_v16 = vpop.eup %3494  ;;  %3512 = vpow2.f32 %v882_v49  ;;  %v902_v38 = vmul.f32 1.442695, %v821_v22  ;;  %v4898_v39 = vadd.f32 %v4756_v6, %v4718_v37  ;;  %v904_v4 = vmul.f32 1.442695, %v822_v58 }
 0x104   : > { %v4759_v9 = vpop.f32.mrf.mxu0  ;;  %v4766_v15 = vpop.f32.mrf.mxu1  ;;  %3514 = vpow2.f32 %v888_v34  ;;  %6914 = vst [vmem:[#allocation25_spill] sm:$0xff] %v4835_v47  ;;  %v1000_v30 = vadd.f32 1.0, %v3495_v16  ;;  %v825_v46 = vsub.f32 0.0, %v4835_v47 }
 0x105   : > { %3516 = vpow2.f32 %v890_v59  ;;  %v3497_v57 = vpop.eup %3496  ;;  %v4844_v59 = vadd.f32 %v4750_v2, %v4718_v37  ;;  %6926 = vst [vmem:[#allocation37_spill] sm:$0xff] %v4898_v39 }
 0x106   : > { %v4770_v18 = vpop.f32.mrf.mxu0  ;;  %v4780_v35 = vpop.f32.mrf.mxu1  ;;  %3518 = vpow2.f32 %v896_v14  ;;  %v1001_v10 = vadd.f32 1.0, %v3497_v57  ;;  %v4849_v14 = vadd.f32 %v4759_v9, %v4718_v37 }
 0x107   : > { %3520 = vrcp.f32 %v996_v19  ;;  %6915 = vst [vmem:[#allocation26_spill] sm:$0xff] %v4844_v59  ;;  %v908_v19 = vmul.f32 1.442695, %v824_v3  ;;  %v4872_v3 = vadd.f32 %v4734_v55, %v4722_v45  ;;  %v4890_v55 = vadd.f32 %v4746_v0, %v4724_v48 }
 0x108   : > { %v4785_v43 = vpop.f32.mrf.mxu0  ;;  %v4796_v36 = vpop.f32.mrf.mxu1  ;;  %3522 = vrcp.f32 %v997_v21  ;;  %6916 = vst [vmem:[#allocation27_spill] sm:$0xff] %v4849_v14  ;;  %v4855_v21 = vadd.f32 %v4770_v18, %v4720_v40  ;;  %v4905_v48 = vadd.f32 %v4766_v15, %v4718_v37  ;;  %v4914_v6 = vadd.f32 %v4780_v35, %v4720_v40 }
 0x109   : > { %v3499_v34 = vpop.eup %3498  ;;  %3524 = vpow2.f32 %v898_v44  ;;  %v4861_v44 = vadd.f32 %v4785_v43, %v4720_v40  ;;  %6921 = vst [vmem:[#allocation32_spill] sm:$0xff] %v4872_v3  ;;  %v829_v43 = vsub.f32 0.0, %v4849_v14  ;;  %6925 = vst [vmem:[#allocation36_spill] sm:$0xff] %v4890_v55  ;;  %v827_v37 = vsub.f32 0.0, %v4890_v55 }
 0x10a   : > { %v4801_v63 = vpop.f32.mrf.mxu0  ;;  %v4809_v33 = vpop.f32.mrf.mxu1  ;;  %3526 = vrcp.f32 %v1000_v30  ;;  %6917 = vst [vmem:[#allocation28_spill] sm:$0xff] %v4855_v21  ;;  %v1004_v22 = vadd.f32 1.0, %v3499_v34  ;;  %v828_v30 = vsub.f32 0.0, %v4844_v59  ;;  %6927 = vst [vmem:[#allocation38_spill] sm:$0xff] %v4905_v48  ;;  %v831_v35 = vsub.f32 0.0, %v4905_v48 }
 0x10b   : > { %v3501_v60 = vpop.eup %3500  ;;  %3528 = vpow2.f32 %v900_v56  ;;  %6918 = vst [vmem:[#allocation29_spill] sm:$0xff] %v4861_v44  ;;  %v910_v56 = vmul.f32 1.442695, %v825_v46  ;;  %v833_v46 = vsub.f32 0.0, %v4861_v44  ;;  %6928 = vst [vmem:[#allocation39_spill] sm:$0xff] %v4914_v6  ;;  %v834_v58 = vsub.f32 0.0, %v4914_v6 }
 0x10c   : > { %v4812_v8 = vpop.f32.mrf.mxu0  ;;  %v4823_v12 = vpop.f32.mrf.mxu1  ;;  %v1005_v9 = vadd.f32 1.0, %v3501_v60  ;;  %3530 = vpow2.f32 %v902_v38  ;;  %v832_v38 = vsub.f32 0.0, %v4855_v21 }
 0x10d   : > { %v3503_v2 = vpop.eup %3502  ;;  %3532 = vrcp.f32 %v1001_v10  ;;  %v926_v15 = vmul.f32 1.442695, %v833_v46 }
 0x10e   : > { %v4829_v42 = vpop.f32.mrf.mxu0  ;;  %v4837_v41 = vpop.f32.mrf.mxu1  ;;  %v1008_v7 = vadd.f32 1.0, %v3503_v2  ;;  %3534 = vpow2.f32 %v908_v19  ;;  %v916_v19 = vmul.f32 1.442695, %v828_v30  ;;  %v826_v30 = vsub.f32 0.0, %v4881_v52 }
 0x10f   : > { %v3505_v57 = vpop.eup %3504  ;;  %3536 = vrcp.f32 %v1004_v22  ;;  %v823_v22 = vsub.f32 0.0, %v4872_v3  ;;  %v924_v53 = vmul.f32 1.442695, %v832_v38  ;;  %v4929_v3 = vadd.f32 %v4796_v36, %v4720_v40 }
 0x110   : > { %v4840_v49 = vpop.f32.mrf.mxu0  ;;  %v4851_v16 = vpop.f32.mrf.mxu1  ;;  %v1009_v45 = vadd.f32 1.0, %v3505_v57  ;;  %v918_v57 = vmul.f32 1.442695, %v829_v43  ;;  %v912_v46 = vmul.f32 1.442695, %v826_v30 }
 0x111   : > { %v4868_v18 = vpop.eup %3506  ;;  %3538 = vrcp.f32 %v1005_v9  ;;  %v906_v38 = vmul.f32 1.442695, %v823_v22  ;;  %6931 = vst [vmem:[#allocation42_spill] sm:$0xff] %v4929_v3  ;;  %v914_v22 = vmul.f32 1.442695, %v827_v37  ;;  %v835_v52 = vsub.f32 0.0, %v4929_v3 }
 0x112   : > { %v4857_v54 = vpop.f32.mrf.mxu0  ;;  %6920 = vst [vmem:[#allocation31_spill] sm:$0xff] %v4868_v18  ;;  %v4875_v34 = vpop.f32.mrf.mxu1  ;;  %v922_v30 = vmul.f32 1.442695, %v831_v35  ;;  %v4962_v35 = vadd.f32 %v4840_v49, %v4716_v32 }
 0x113   : > { %v4877_v60 = vpop.eup %3508  ;;  %3540 = vpow2.f32 %v910_v56 }
 0x114   : > { %6922 = vst [vmem:[#allocation33_spill] sm:$0xff] %v4877_v60  ;;  %v4884_v10 = vpop.f32.mrf.mxu0  ;;  %v4886_v61 = vpop.eup %3510  ;;  %3542 = vrcp.f32 %v1008_v7  ;;  %v830_v7 = vsub.f32 0.0, %v4898_v39 }
 0x115   : > { %6924 = vst [vmem:[#allocation35_spill] sm:$0xff] %v4886_v61  ;;  %v4893_v2 = vpop.eup %3512  ;;  %v4907_v0 = vpop.f32.mrf.mxu1  ;;  %3544 = vrcp.f32 %v1009_v45 }
 0x116   : > { %v4900_v62 = vpop.eup %3514  ;;  %v4916_v1 = vpop.f32.mrf.mxu0  ;;  %3546 = vpow2.f32 %v916_v19  ;;  %v920_v36 = vmul.f32 1.442695, %v830_v7  ;;  %v5027_v48 = vadd.f32 %v4907_v0, %v4710_v27 }
 0x117   : > { %v4909_v9 = vpop.eup %3516  ;;  %3548 = vpow2.f32 %v918_v57  ;;  %v4931_v45 = vpop.f32.mrf.mxu1  ;;  %v4942_v57 = vadd.f32 %v4801_v63, %v4714_v29  ;;  %v4955_v63 = vadd.f32 %v4829_v42, %v4716_v32  ;;  %v930_v42 = vmul.f32 1.442695, %v835_v52 }
 0x118   : > { %v4918_v56 = vpop.eup %3518  ;;  %3550 = vpow2.f32 %v924_v53  ;;  %v4936_v19 = vpop.f32.mrf.mxu0  ;;  %v4981_v52 = vadd.f32 %v4809_v33, %v4714_v29  ;;  %6946 = vst [vmem:[#allocation57_spill] sm:$0xff] %v5027_v48 }
 0x119   : > { %v4921_v43 = vpop.eup %3520  ;;  %3552 = vpow2.f32 %v926_v15  ;;  %6933 = vst [vmem:[#allocation44_spill] sm:$0xff] %v4942_v57  ;;  %v4949_v13 = vpop.f32.mrf.mxu1  ;;  %v928_v15 = vmul.f32 1.442695, %v834_v58  ;;  %6936 = vst [vmem:[#allocation47_spill] sm:$0xff] %v4955_v63  ;;  %v840_v17 = vsub.f32 0.0, %v4955_v63 }
 0x11a   : > { %6929 = vst [vmem:[#allocation40_spill] sm:$0xff] %v4921_v43  ;;  %v4924_v5 = vpop.eup %3522  ;;  %3554 = vpow2.f32 %v904_v4  ;;  %v4957_v4 = vpop.f32.mrf.mxu0  ;;  %6941 = vst [vmem:[#allocation52_spill] sm:$0xff] %v4981_v52 }
 0x11b   : > { %6930 = vst [vmem:[#allocation41_spill] sm:$0xff] %v4924_v5  ;;  %v4933_v11 = vpop.eup %3524  ;;  %v4946_v5 = vadd.f32 %v4812_v8, %v4714_v29  ;;  %3556 = vpow2.f32 %v906_v38  ;;  %v836_v38 = vsub.f32 0.0, %v4942_v57  ;;  %v4969_v55 = vpop.f32.mrf.mxu1 }
 0x11c   : > { %v4938_v43 = vpop.eup %3526  ;;  %3558 = vpow2.f32 %v912_v46  ;;  %v4972_v39 = vpop.f32.mrf.mxu0 }
 0x11d   : > { %6932 = vst [vmem:[#allocation43_spill] sm:$0xff] %v4938_v43  ;;  %v3529_v40 = vpop.eup %3528  ;;  %6934 = vst [vmem:[#allocation45_spill] sm:$0xff] %v4946_v5  ;;  %3560 = vpow2.f32 %v914_v22  ;;  %v837_v46 = vsub.f32 0.0, %v4946_v5 }
 0x11e   : > { %v3531_v53 = vpop.eup %3530  ;;  %v1012_v8 = vadd.f32 1.0, %v3529_v40  ;;  %3562 = vpow2.f32 %v920_v36  ;;  %v841_v36 = vsub.f32 0.0, %v4962_v35 }
 0x11f   : > { %v4951_v37 = vpop.eup %3532  ;;  %3564 = vpow2.f32 %v922_v30  ;;  %v934_v30 = vmul.f32 1.442695, %v837_v46 }
 0x120   : > { %6935 = vst [vmem:[#allocation46_spill] sm:$0xff] %v4951_v37  ;;  %v3535_v7 = vpop.eup %3534  ;;  %v1013_v37 = vadd.f32 1.0, %v3531_v53  ;;  %3566 = vpow2.f32 %v928_v15  ;;  %v932_v53 = vmul.f32 1.442695, %v836_v38  ;;  %v940_v38 = vmul.f32 1.442695, %v840_v17 }
 0x121   : > { %v4964_v43 = vpop.eup %3536  ;;  %v1016_v22 = vadd.f32 1.0, %v3535_v7  ;;  %3568 = vrcp.f32 %v1012_v8  ;;  %v942_v46 = vmul.f32 1.442695, %v841_v36  ;;  %v5002_v17 = vadd.f32 %v4857_v54, %v4710_v27 }
 0x122   : > { %6937 = vst [vmem:[#allocation48_spill] sm:$0xff] %v4964_v43  ;;  %v4967_v58 = vpop.eup %3538  ;;  %3570 = vrcp.f32 %v1013_v37  ;;  %v4991_v37 = vadd.f32 %v4837_v41, %v4716_v32  ;;  %v5009_v36 = vadd.f32 %v4875_v34, %v4710_v27  ;;  %v5018_v54 = vadd.f32 %v4884_v10, %v4710_v27 }
 0x123   : > { %6938 = vst [vmem:[#allocation49_spill] sm:$0xff] %v4967_v58  ;;  %v3541_v40 = vpop.eup %3540  ;;  %3572 = vpow2.f32 %v930_v42  ;;  %v4985_v58 = vadd.f32 %v4823_v12, %v4714_v29  ;;  %v4997_v42 = vadd.f32 %v4851_v16, %v4716_v32  ;;  %v844_v31 = vsub.f32 0.0, %v5002_v17 }
 0x124   : > { %v4974_v49 = vpop.eup %3542  ;;  %v1017_v15 = vadd.f32 1.0, %v3541_v40  ;;  %3574 = vrcp.f32 %v1016_v22  ;;  %6943 = vst [vmem:[#allocation54_spill] sm:$0xff] %v4991_v37  ;;  %v838_v40 = vsub.f32 0.0, %v4981_v52  ;;  %6945 = vst [vmem:[#allocation56_spill] sm:$0xff] %v5009_v36  ;;  %v5034_v10 = vadd.f32 %v4916_v1, %v4712_v28 }
 0x125   : > { %6939 = vst [vmem:[#allocation50_spill] sm:$0xff] %v4974_v49  ;;  %v4977_v43 = vpop.eup %3544  ;;  %6942 = vst [vmem:[#allocation53_spill] sm:$0xff] %v4985_v58  ;;  %v4987_v49 = vpop.f32.mrf.mxu1  ;;  %3576 = vpow2.f32 %v932_v53  ;;  %v839_v53 = vsub.f32 0.0, %v4985_v58  ;;  %v843_v34 = vsub.f32 0.0, %v4997_v42  ;;  %v5041_v27 = vadd.f32 %v4931_v45, %v4712_v28 }
 0x126   : > { %6940 = vst [vmem:[#allocation51_spill] sm:$0xff] %v4977_v43  ;;  %v3547_v7 = vpop.eup %3546  ;;  %v4993_v43 = vpop.f32.mrf.mxu0  ;;  %6944 = vst [vmem:[#allocation55_spill] sm:$0xff] %v4997_v42  ;;  %3578 = vpow2.f32 %v934_v30  ;;  %v842_v30 = vsub.f32 0.0, %v4991_v37  ;;  %v845_v50 = vsub.f32 0.0, %v5018_v54  ;;  %v5050_v1 = vadd.f32 %v4936_v19, %v4712_v28 }
 0x127   : > { %v3549_v8 = vpop.eup %3548  ;;  %v1020_v12 = vadd.f32 1.0, %v3547_v7  ;;  %3580 = vrcp.f32 %v1017_v15  ;;  %v5011_v32 = vpop.f32.mrf.mxu1  ;;  %6947 = vst [vmem:[#allocation58_spill] sm:$0xff] %v5041_v27  ;;  %v946_v3 = vmul.f32 1.442695, %v843_v34  ;;  %v847_v45 = vsub.f32 0.0, %v5027_v48 }
 0x128   : > { %v3551_v33 = vpop.eup %3550  ;;  %v1021_v22 = vadd.f32 1.0, %v3549_v8  ;;  %3582 = vpow2.f32 %v940_v38  ;;  %v5020_v15 = vpop.f32.mrf.mxu0  ;;  %v936_v38 = vmul.f32 1.442695, %v838_v40  ;;  %v944_v40 = vmul.f32 1.442695, %v842_v30 }
 0x129   : > { %v3553_v29 = vpop.eup %3552  ;;  %v1024_v7 = vadd.f32 1.0, %v3551_v33  ;;  %3584 = vpow2.f32 %v942_v46  ;;  %v938_v46 = vmul.f32 1.442695, %v839_v53  ;;  %v5043_v0 = vpop.f32.mrf.mxu1  ;;  %v948_v52 = vmul.f32 1.442695, %v844_v31 }
 0x12a   : > { %v5004_v41 = vpop.eup %3554  ;;  %v1025_v20 = vadd.f32 1.0, %v3553_v29  ;;  %3586 = vrcp.f32 %v1020_v12  ;;  %v846_v29 = vsub.f32 0.0, %v5009_v36  ;;  %v850_v19 = vsub.f32 0.0, %v5041_v27 }
 0x12b   : > { %v5013_v16 = vpop.eup %3556  ;;  %3588 = vrcp.f32 %v1021_v22  ;;  %v632_v22 = vpop.f32.mrf.mxu0  ;;  %v5063_v58 = vadd.f32 %v4949_v13, %v4712_v28  ;;  %v849_v31 = vsub.f32 0.0, %v5050_v1  ;;  %v5074_v28 = vadd.f32 %v4957_v4, %v4706_v25 }
 0x12c   : > { %v5022_v8 = vpop.eup %3558  ;;  %3590 = vrcp.f32 %v1024_v7  ;;  %v848_v7 = vsub.f32 0.0, %v5034_v10  ;;  %v952_v47 = vmul.f32 1.442695, %v846_v29  ;;  %v960_v37 = vmul.f32 1.442695, %v850_v19 }
 0x12d   : > { %v5029_v33 = vpop.eup %3560  ;;  %3592 = vrcp.f32 %v1025_v20  ;;  %6950 = vst [vmem:[#allocation61_spill] sm:$0xff] %v5063_v58  ;;  %v5065_v20 = vpop.f32.mrf.mxu1  ;;  %v852_v42 = vsub.f32 0.0, %v5074_v28 }
 0x12e   : > { %v5036_v6 = vpop.eup %3562  ;;  %3594 = vpow2.f32 %v936_v38  ;;  %v634_v38 = vpop.f32.mrf.mxu0 }
 0x12f   : > { %v5045_v12 = vpop.eup %3564  ;;  %3596 = vpow2.f32 %v938_v46  ;;  %v954_v46 = vmul.f32 1.442695, %v847_v45  ;;  %v795_v14 = vpop.f32.mrf.mxu1 }
 0x130   : > { %v5052_v53 = vpop.eup %3566  ;;  %3598 = vpow2.f32 %v944_v40  ;;  %v851_v40 = vsub.f32 0.0, %v5063_v58  ;;  %v638_v4 = vpop.f32.mrf.mxu0 }
 0x131   : > { %v5055_v51 = vpop.eup %3568  ;;  %3600 = vpow2.f32 %v946_v3  ;;  %v958_v3 = vmul.f32 1.442695, %v849_v31 }
 0x132   : > { %6948 = vst [vmem:[#allocation59_spill] sm:$0xff] %v5055_v51  ;;  %v5058_v30 = vpop.eup %3570  ;;  %v950_v51 = vmul.f32 1.442695, %v845_v50  ;;  %3602 = vpow2.f32 %v948_v52  ;;  %v5079_v50 = vadd.f32 %v4972_v39, %v4706_v25  ;;  %v5085_v52 = vadd.f32 %v4993_v43, %v4702_v23 }
 0x133   : > { %6949 = vst [vmem:[#allocation60_spill] sm:$0xff] %v5058_v30  ;;  %v5067_v34 = vpop.eup %3572  ;;  %v956_v30 = vmul.f32 1.442695, %v848_v7  ;;  %3604 = vpow2.f32 %v952_v47  ;;  %v5089_v47 = vadd.f32 %v5020_v15, %v4702_v23  ;;  %v962_v43 = vmul.f32 1.442695, %v851_v40 }
 0x134   : > { %v5070_v59 = vpop.eup %3574  ;;  %3606 = vpow2.f32 %v950_v51  ;;  %v5093_v51 = vadd.f32 %v632_v22, %v4708_v26  ;;  %v640_v22 = vpop.f32.mrf.mxu0 }
 0x135   : > { %6951 = vst [vmem:[#allocation62_spill] sm:$0xff] %v5070_v59  ;;  %v3577_v29 = vpop.eup %3576  ;;  %3608 = vpow2.f32 %v954_v46  ;;  %v5099_v46 = vadd.f32 %v634_v38, %v4708_v26  ;;  %v857_v40 = vsub.f32 0.0, %v5089_v47  ;;  %v5111_v38 = vadd.f32 %v638_v4, %v4704_v24 }
 0x136   : > { %v3579_v13 = vpop.eup %3578  ;;  %v1028_v7 = vadd.f32 1.0, %v3577_v29  ;;  %3610 = vpow2.f32 %v956_v30  ;;  %v799_v29 = vpop.f32.mrf.mxu1  ;;  %v856_v30 = vsub.f32 0.0, %v5085_v52 }
 0x137   : > { %v5081_v59 = vpop.eup %3580  ;;  %v1029_v39 = vadd.f32 1.0, %v3579_v13  ;;  %3612 = vpow2.f32 %v960_v37  ;;  %v5105_v13 = vadd.f32 %v795_v14, %v4708_v26 }
 0x138   : > { %6952 = vst [vmem:[#allocation63_spill] sm:$0xff] %v5081_v59  ;;  %v3583_v45 = vpop.eup %3582  ;;  %v853_v59 = vsub.f32 0.0, %v5079_v50  ;;  %3614 = vpow2.f32 %v958_v3  ;;  %v860_v3 = vsub.f32 0.0, %v5093_v51  ;;  %v801_v44 = vpop.f32.mrf.mxu1 }
 0x139   : > { %v3585_v19 = vpop.eup %3584  ;;  %v1032_v21 = vadd.f32 1.0, %v3583_v45  ;;  %3616 = vrcp.f32 %v1028_v7  ;;  %v964_v45 = vmul.f32 1.442695, %v852_v42  ;;  %v861_v7 = vsub.f32 0.0, %v5099_v46 }
 0x13a   : > { %v5095_v31 = vpop.eup %3586  ;;  %v1033_v37 = vadd.f32 1.0, %v3585_v19  ;;  %3618 = vrcp.f32 %v1029_v39  ;;  %v5123_v19 = vadd.f32 %v640_v22, %v4704_v24  ;;  %v5129_v42 = vadd.f32 %v4987_v49, %v4706_v25 }
 0x13b   : > { %6953 = vst [vmem:[#allocation64_spill] sm:$0xff] %v5095_v31  ;;  %v5101_v15 = vpop.eup %3588  ;;  %3620 = vpow2.f32 %v962_v43  ;;  %v972_v39 = vmul.f32 1.442695, %v856_v30  ;;  %v974_v43 = vmul.f32 1.442695, %v857_v40  ;;  %v864_v22 = vsub.f32 0.0, %v5111_v38 }
 0x13c   : > { %6954 = vst [vmem:[#allocation65_spill] sm:$0xff] %v5101_v15  ;;  %v5107_v36 = vpop.eup %3590  ;;  %v5117_v15 = vadd.f32 %v799_v29, %v4704_v24  ;;  %3622 = vrcp.f32 %v1032_v21  ;;  %v863_v29 = vsub.f32 0.0, %v5105_v13  ;;  %v5143_v21 = vadd.f32 %v5043_v0, %v4702_v23 }
 0x13d   : > { %6955 = vst [vmem:[#allocation66_spill] sm:$0xff] %v5107_v36  ;;  %v5113_v31 = vpop.eup %3592  ;;  %v966_v36 = vmul.f32 1.442695, %v853_v59  ;;  %3624 = vrcp.f32 %v1033_v37  ;;  %v5136_v59 = vadd.f32 %v5065_v20, %v4708_v26  ;;  %v980_v49 = vmul.f32 1.442695, %v860_v3 }
 0x13e   : > { %6956 = vst [vmem:[#allocation67_spill] sm:$0xff] %v5113_v31  ;;  %v5119_v14 = vpop.eup %3594  ;;  %3626 = vpow2.f32 %v964_v45  ;;  %v866_v30 = vsub.f32 0.0, %v5117_v15  ;;  %v5148_v37 = vadd.f32 %v5011_v32, %v4702_v23  ;;  %v982_v26 = vmul.f32 1.442695, %v861_v7 }
 0x13f   : > { %v5125_v4 = vpop.eup %3596  ;;  %3628 = vpow2.f32 %v966_v36  ;;  %v865_v20 = vsub.f32 0.0, %v5123_v19  ;;  %v855_v45 = vsub.f32 0.0, %v5129_v42  ;;  %v986_v57 = vmul.f32 1.442695, %v863_v29 }
 0x140   : > { %v5132_v31 = vpop.eup %3598  ;;  %3630 = vpow2.f32 %v972_v39  ;;  %v5155_v0 = vadd.f32 %v801_v44, %v4704_v24  ;;  %v5159_v36 = vadd.f32 %v4969_v55, %v4706_v25  ;;  %v862_v23 = vsub.f32 0.0, %v5136_v59 }
 0x141   : > { %v5139_v18 = vpop.eup %3600  ;;  %3632 = vpow2.f32 %v974_v43  ;;  %v988_v32 = vmul.f32 1.442695, %v864_v22  ;;  %v859_v60 = vsub.f32 0.0, %v5143_v21  ;;  %v992_v27 = vmul.f32 1.442695, %v866_v30 }
 0x142   : > { %v3603_v48 = vpop.eup %3602  ;;  %3634 = vpow2.f32 %v980_v49  ;;  %v858_v29 = vsub.f32 0.0, %v5148_v37  ;;  %v990_v24 = vmul.f32 1.442695, %v865_v20  ;;  %v970_v5 = vmul.f32 1.442695, %v855_v45 }
 0x143   : > { %v5151_v40 = vpop.eup %3604  ;;  %3636 = vpow2.f32 %v982_v26  ;;  %v867_v25 = vsub.f32 0.0, %v5155_v0  ;;  %v854_v43 = vsub.f32 0.0, %v5159_v36  ;;  %v984_v22 = vmul.f32 1.442695, %v862_v23 }
 0x144   : > { %v3607_v3 = vpop.eup %3606  ;;  %3638 = vpow2.f32 %v986_v57  ;;  %v978_v49 = vmul.f32 1.442695, %v859_v60  ;;  %v976_v58 = vmul.f32 1.442695, %v858_v29  ;;  %v1036_v23 = vadd.f32 1.0, %v3603_v48 }
 0x145   : > { %v5162_v7 = vpop.eup %3608  ;;  %3640 = vpow2.f32 %v988_v32  ;;  %v994_v20 = vmul.f32 1.442695, %v867_v25  ;;  %v968_v45 = vmul.f32 1.442695, %v854_v43 }
 0x146   : > { %v3611_v39 = vpop.eup %3610  ;;  %3642 = vpow2.f32 %v992_v27 }
 0x147   : > { %v5166_v44 = vpop.eup %3612  ;;  %3644 = vpow2.f32 %v990_v24  ;;  %v1040_v27 = vadd.f32 1.0, %v3611_v39 }
 0x148   : > { %v3615_v55 = vpop.eup %3614  ;;  %3646 = vpow2.f32 %v970_v5 }
 0x149   : > { %v5170_v61 = vpop.eup %3616  ;;  %3648 = vpow2.f32 %v984_v22  ;;  %v1041_v24 = vadd.f32 1.0, %v3615_v55 }
 0x14a   : > { %6957 = vst [vmem:[#allocation68_spill] sm:$0xff] %v5170_v61  ;;  %v5172_v30 = vpop.eup %3618  ;;  %3650 = vpow2.f32 %v978_v49  ;;  %v1037_v61 = vadd.f32 1.0, %v3607_v3 }
 0x14b   : > { %6958 = vst [vmem:[#allocation69_spill] sm:$0xff] %v5172_v30  ;;  %v5174_v26 = vpop.eup %3620  ;;  %3652 = vpow2.f32 %v976_v58 }
 0x14c   : > { %v5176_v57 = vpop.eup %3622  ;;  %3654 = vpow2.f32 %v994_v20 }
 0x14d   : > { %6959 = vst [vmem:[#allocation70_spill] sm:$0xff] %v5176_v57  ;;  %v5178_v63 = vpop.eup %3624  ;;  %3656 = vpow2.f32 %v968_v45 }
 0x14e   : > { %v3627_v32 = vpop.eup %3626  ;;  %3658 = vrcp.f32 %v1036_v23 }
 0x14f   : > { %v3629_v60 = vpop.eup %3628  ;;  %v1044_v5 = vadd.f32 1.0, %v3627_v32  ;;  %3660 = vrcp.f32 %v1037_v61 }
 0x150   : > { %v3631_v29 = vpop.eup %3630  ;;  %v1045_v43 = vadd.f32 1.0, %v3629_v60  ;;  %3662 = vrcp.f32 %v1040_v27 }
 0x151   : > { %v3633_v30 = vpop.eup %3632  ;;  %v1048_v57 = vadd.f32 1.0, %v3631_v29  ;;  %3664 = vrcp.f32 %v1041_v24 }
 0x152   : > { %v3635_v25 = vpop.eup %3634  ;;  %3666 = vrcp.f32 %v1044_v5  ;;  %v1049_v23 = vadd.f32 1.0, %v3633_v30 }
 0x153   : > { %v3637_v22 = vpop.eup %3636  ;;  %3668 = vrcp.f32 %v1045_v43  ;;  %v1052_v55 = vadd.f32 1.0, %v3635_v25 }
 0x154   : > { %v3639_v48 = vpop.eup %3638  ;;  %v1053_v49 = vadd.f32 1.0, %v3637_v22  ;;  %3670 = vrcp.f32 %v1048_v57 }
 0x155   : > { %v3641_v3 = vpop.eup %3640  ;;  %v1055_v60 = vadd.f32 1.0, %v3639_v48 }
 0x156   : > { %v3643_v58 = vpop.eup %3642  ;;  %v1056_v39 = vadd.f32 1.0, %v3641_v3  ;;  %3672 = vrcp.f32 %v1053_v49 }
 0x157   : > { %v3645_v20 = vpop.eup %3644  ;;  %v1058_v29 = vadd.f32 1.0, %v3643_v58 }
 0x158   : > { %v3647_v45 = vpop.eup %3646  ;;  %v1057_v32 = vadd.f32 1.0, %v3645_v20  ;;  %3674 = vrcp.f32 %v1056_v39 }
 0x159   : > { %v3649_v61 = vpop.eup %3648  ;;  %v1047_v48 = vadd.f32 1.0, %v3647_v45  ;;  %v1038_v45 = vadd.f32 1.0, %v5151_v40 }
 0x15a   : > { %v3651_v27 = vpop.eup %3650  ;;  %3676 = vrcp.f32 %v1057_v32  ;;  %v1054_v5 = vadd.f32 1.0, %v3649_v61  ;;  %v1042_v32 = vadd.f32 1.0, %v5166_v44  ;;  %v1031_v44 = vadd.f32 1.0, %v5125_v4 }
 0x15b   : > { %v3653_v24 = vpop.eup %3652  ;;  %3678 = vrcp.f32 %v1052_v55  ;;  %v1051_v3 = vadd.f32 1.0, %v3651_v27  ;;  %v1043_v55 = vadd.f32 1.0, %v5174_v26  ;;  %v1034_v26 = vadd.f32 1.0, %v5132_v31 }
 0x15c   : > { %v3655_v22 = vpop.eup %3654  ;;  %3680 = vrcp.f32 %v1049_v23  ;;  %v1050_v30 = vadd.f32 1.0, %v3653_v24  ;;  %v1035_v24 = vadd.f32 1.0, %v5139_v18  ;;  %v1026_v31 = vadd.f32 1.0, %v5052_v53 }
 0x15d   : > { %v3657_v43 = vpop.eup %3656  ;;  %3682 = vrcp.f32 %v1055_v60  ;;  %v1059_v57 = vadd.f32 1.0, %v3655_v22  ;;  %v1039_v60 = vadd.f32 1.0, %v5162_v7  ;;  %v1030_v7 = vadd.f32 1.0, %v5119_v14 }
 0x15e   : > { %v5180_v25 = vpop.eup %3658  ;;  %3684 = vrcp.f32 %v1058_v29  ;;  %v1046_v58 = vadd.f32 1.0, %v3657_v43  ;;  %v1019_v53 = vadd.f32 1.0, %v5029_v33 }
 0x15f   : > { %v5182_v49 = vpop.eup %3660  ;;  %3686 = vrcp.f32 %v1059_v57  ;;  %v1027_v57 = vadd.f32 1.0, %v5067_v34  ;;  %v1022_v34 = vadd.f32 1.0, %v5036_v6 }
 0x160   : > { %v5184_v39 = vpop.eup %3662  ;;  %3688 = vrcp.f32 %v1054_v5 }
 0x161   : > { %v5186_v20 = vpop.eup %3664  ;;  %3690 = vrcp.f32 %v1051_v3 }
 0x162   : > { %v3667_v23 = vpop.eup %3666  ;;  %3692 = vrcp.f32 %v1050_v30 }
 0x163   : > { %v3669_v61 = vpop.eup %3668  ;;  %3694 = vrcp.f32 %v1047_v48  ;;  %v1172_v33 = vmul.f32 %v3667_v23, %v5074_v28  ;;  %v1168_v28 = vmul.f32 %v5184_v39, %v5034_v10  ;;  %v1010_v23 = vadd.f32 1.0, %v4918_v56 }
 0x164   : > { %v3671_v27 = vpop.eup %3670  ;;  %3696 = vrcp.f32 %v1046_v58  ;;  %v1023_v58 = vadd.f32 1.0, %v5045_v12  ;;  %v1164_v10 = vmul.f32 %v5180_v25, %v5002_v17  ;;  %v1006_v39 = vadd.f32 1.0, %v4900_v62  ;;  %v6960_v17 = vld [vmem:[#allocation47_spill] sm:$0xff]  ;;  %v6961_v25 = vld [vmem:[#allocation70_spill] sm:$0xff] }
 0x165   : > { %v3673_v29 = vpop.eup %3672  ;;  %3698 = vrcp.f32 %v1043_v55 }
 0x166   : > { %v3675_v22 = vpop.eup %3674  ;;  %3700 = vrcp.f32 %v1042_v32  ;;  %v1181_v48 = vmul.f32 %v3673_v29, %v5099_v46  ;;  %v1176_v46 = vmul.f32 %v3671_v27, %v5085_v52  ;;  %v1014_v27 = vadd.f32 1.0, %v5004_v41 }
 0x167   : > { %v3677_v5 = vpop.eup %3676  ;;  %3702 = vrcp.f32 %v1039_v60  ;;  %v1184_v18 = vmul.f32 %v3675_v22, %v5111_v38  ;;  %v1173_v60 = vmul.f32 %v3669_v61, %v5079_v50  ;;  %v6962_v61 = vld [vmem:[#allocation61_spill] sm:$0xff] }
 0x168   : > { %v3679_v43 = vpop.eup %3678  ;;  %3704 = vrcp.f32 %v1038_v45  ;;  %v1185_v3 = vmul.f32 %v3677_v5, %v5123_v19  ;;  %v1015_v45 = vadd.f32 1.0, %v5013_v16  ;;  %v1011_v16 = vadd.f32 1.0, %v4933_v11 }
 0x169   : > { %v3681_v40 = vpop.eup %3680  ;;  %3706 = vrcp.f32 %v1035_v24  ;;  %v1180_v14 = vmul.f32 %v3679_v43, %v5093_v51  ;;  %v1018_v51 = vadd.f32 1.0, %v5022_v8  ;;  %v1169_v8 = vmul.f32 %v5186_v20, %v5050_v1  ;;  %v6963_v24 = vld [vmem:[#allocation35_spill] sm:$0xff] }
 0x16a   : > { %v3683_v30 = vpop.eup %3682  ;;  %3708 = vrcp.f32 %v1034_v26  ;;  %1300 = vmatprep.subr.mxu0 %v1185_v3  ;;  %v1177_v38 = vmul.f32 %v3681_v40, %v5089_v47  ;;  %v1165_v1 = vmul.f32 %v5182_v49, %v5018_v54  ;;  %v1007_v20 = vadd.f32 1.0, %v4909_v9  ;;  %v6966_v26 = vld [vmem:[#allocation58_spill] sm:$0xff]  ;;  %v6969_v3 = vld [vmem:[#allocation68_spill] sm:$0xff] }
 0x16b   : > { %v3685_v4 = vpop.eup %3684  ;;  %3710 = vrcp.f32 %v1031_v44  ;;  %1301 = vmatpush1.msra.mxu0 %v1184_v18  ;;  %v1183_v52 = vmul.f32 %v3683_v30, %v5105_v13  ;;  %v1161_v54 = vmul.f32 %v5178_v63, %v4962_v35  ;;  %v1003_v49 = vadd.f32 1.0, %v4893_v2  ;;  %v6964_v63 = vld [vmem:[#allocation45_spill] sm:$0xff] }
 0x16c   : > { %v3687_v19 = vpop.eup %3686  ;;  %3712 = vrcp.f32 %v1030_v7  ;;  %1302 = vmatprep.subr.mxu0 %v1181_v48  ;;  %v1186_v6 = vmul.f32 %v3685_v4, %v5117_v15  ;;  %v1002_v22 = vadd.f32 1.0, %v6963_v24  ;;  %v6965_v35 = vld [vmem:[#allocation69_spill] sm:$0xff]  ;;  %v6968_v7 = vld [vmem:[#allocation44_spill] sm:$0xff] }
 0x16d   : > { %v3689_v55 = vpop.eup %3688  ;;  %3714 = vrcp.f32 %v1027_v57  ;;  %v1187_v32 = vmul.f32 %v3687_v19, %v5155_v0  ;;  %1303 = vmatpush1.msra.mxu0 %v1180_v14  ;;  %v6967_v44 = vld [vmem:[#allocation33_spill] sm:$0xff]  ;;  %v1156_v40 = vmul.f32 %v6969_v3, %v6968_v7  ;;  %v6974_v19 = vld [vmem:[#allocation56_spill] sm:$0xff] }
 0x16e   : > { %v3691_v12 = vpop.eup %3690  ;;  %3716 = vrcp.f32 %v1026_v31  ;;  %1304 = vmatprep.subr.mxu0 %v1177_v38  ;;  %v1182_v50 = vmul.f32 %v3689_v55, %v5136_v59  ;;  %v999_v43 = vadd.f32 1.0, %v6967_v44  ;;  %v6970_v57 = vld [vmem:[#allocation57_spill] sm:$0xff]  ;;  %v6971_v31 = vld [vmem:[#allocation31_spill] sm:$0xff]  ;;  %v6975_v55 = vld [vmem:[#allocation28_spill] sm:$0xff] }
 0x16f   : > { %v3693_v47 = vpop.eup %3692  ;;  %3718 = vrcp.f32 %v1023_v58  ;;  %1461 = vmatprep.subr.mxu1 %v1187_v32  ;;  %1305 = vmatpush1.msra.mxu0 %v1176_v46  ;;  %v1179_v13 = vmul.f32 %v3691_v12, %v5143_v21  ;;  %v998_v48 = vadd.f32 1.0, %v6971_v31  ;;  %v6972_v4 = vld [vmem:[#allocation29_spill] sm:$0xff]  ;;  %v6973_v58 = vld [vmem:[#allocation67_spill] sm:$0xff]  ;;  %v6999_v44 = vld [vmem:[#allocation12_spill] sm:$0xff] }
 0x170   : > { %v3695_v0 = vpop.eup %3694  ;;  %3720 = vrcp.f32 %v1022_v34  ;;  %1462 = vmatpush1.msra.mxu1 %v1186_v6  ;;  %1306 = vmatprep.subr.mxu0 %v1173_v60  ;;  %v1178_v59 = vmul.f32 %v3693_v47, %v5148_v37  ;;  %v1153_v14 = vmul.f32 %v6973_v58, %v6972_v4  ;;  %v6977_v32 = vld [vmem:[#allocation55_spill] sm:$0xff]  ;;  %v6979_v6 = vld [vmem:[#allocation65_spill] sm:$0xff]  ;;  %v7001_v3 = vld [vmem:[#allocation36_spill] sm:$0xff] }
 0x171   : > { %v3697_v15 = vpop.eup %3696  ;;  %3722 = vrcp.f32 %v1019_v53  ;;  %1463 = vmatprep.subr.mxu1 %v1183_v52  ;;  %1307 = vmatpush1.msra.mxu0 %v1172_v33  ;;  %v1175_v21 = vmul.f32 %v3695_v0, %v5129_v42  ;;  %v1160_v42 = vmul.f32 %v6961_v25, %v6960_v17  ;;  %v6976_v53 = vld [vmem:[#allocation66_spill] sm:$0xff]  ;;  %v6978_v60 = vld [vmem:[#allocation27_spill] sm:$0xff] }
 0x172   : > { %v3699_v41 = vpop.eup %3698  ;;  %3724 = vrcp.f32 %v1018_v51  ;;  %1464 = vmatpush1.msra.mxu1 %v1182_v50  ;;  %1308 = vmatprep.subr.mxu0 %v1169_v8  ;;  %v1174_v37 = vmul.f32 %v3697_v15, %v5159_v36  ;;  %v1157_v36 = vmul.f32 %v6965_v35, %v6964_v63  ;;  %v1152_v46 = vmul.f32 %v6976_v53, %v6975_v55  ;;  %v6981_v0 = vld [vmem:[#allocation26_spill] sm:$0xff]  ;;  %v6983_v50 = vld [vmem:[#allocation53_spill] sm:$0xff]  ;;  %v6997_v35 = vld [vmem:[#allocation51_spill] sm:$0xff] }
 0x173   : > { %v3701_v11 = vpop.eup %3700  ;;  %3726 = vrcp.f32 %v1015_v45  ;;  %1465 = vmatprep.subr.mxu1 %v1179_v13  ;;  %1309 = vmatpush1.msra.mxu0 %v1168_v28  ;;  %v1171_v29 = vmul.f32 %v3699_v41, %v6962_v61  ;;  %v1149_v47 = vmul.f32 %v6979_v6, %v6978_v60  ;;  %v6980_v45 = vld [vmem:[#allocation54_spill] sm:$0xff]  ;;  %v6984_v28 = vld [vmem:[#allocation25_spill] sm:$0xff]  ;;  %v6985_v13 = vld [vmem:[#allocation63_spill] sm:$0xff] }
 0x174   : > { %v3703_v56 = vpop.eup %3702  ;;  %3728 = vrcp.f32 %v1014_v27  ;;  %1466 = vmatpush1.msra.mxu1 %v1178_v59  ;;  %1310 = vmatprep.subr.mxu0 %v1165_v1  ;;  %v1170_v5 = vmul.f32 %v3701_v11, %v6966_v26  ;;  %v6982_v27 = vld [vmem:[#allocation64_spill] sm:$0xff]  ;;  %v1145_v41 = vmul.f32 %v6985_v13, %v6984_v28  ;;  %v6994_v61 = vld [vmem:[#allocation59_spill] sm:$0xff]  ;;  %v6996_v63 = vld [vmem:[#allocation13_spill] sm:$0xff] }
 0x175   : > { %v3705_v9 = vpop.eup %3704  ;;  %3730 = vrcp.f32 %v1011_v16  ;;  %1467 = vmatprep.subr.mxu1 %v1175_v21  ;;  %1311 = vmatpush1.msra.mxu0 %v1164_v10  ;;  %v1167_v18 = vmul.f32 %v3703_v56, %v6970_v57  ;;  %v1148_v8 = vmul.f32 %v6982_v27, %v6981_v0  ;;  %v6987_v11 = vld [vmem:[#allocation24_spill] sm:$0xff]  ;;  %v6989_v21 = vld [vmem:[#allocation42_spill] sm:$0xff]  ;;  %v6998_v26 = vld [vmem:[#allocation37_spill] sm:$0xff] }
 0x176   : > { %v3707_v62 = vpop.eup %3706  ;;  %3732 = vrcp.f32 %v1010_v23  ;;  %1468 = vmatpush1.msra.mxu1 %v1174_v37  ;;  %1312 = vmatprep.subr.mxu0 %v1161_v54  ;;  %v1166_v34 = vmul.f32 %v3705_v9, %v6974_v19  ;;  %v6986_v23 = vld [vmem:[#allocation52_spill] sm:$0xff]  ;;  %v6990_v54 = vld [vmem:[#allocation23_spill] sm:$0xff] }
 0x177   : > { %v3709_v2 = vpop.eup %3708  ;;  %3734 = vrcp.f32 %v1007_v20  ;;  %1469 = vmatprep.subr.mxu1 %v1171_v29  ;;  %1313 = vmatpush1.msra.mxu0 %v1160_v42  ;;  %v1163_v12 = vmul.f32 %v3707_v62, %v6977_v32  ;;  %v6988_v20 = vld [vmem:[#allocation62_spill] sm:$0xff]  ;;  %v6991_v37 = vld [vmem:[#allocation60_spill] sm:$0xff] }
 0x178   : > { %v3711_v30 = vpop.eup %3710  ;;  %3736 = vrcp.f32 %v1006_v39  ;;  %1470 = vmatpush1.msra.mxu1 %v1170_v5  ;;  %1314 = vmatprep.subr.mxu0 %v1157_v36  ;;  %v1162_v33 = vmul.f32 %v3709_v2, %v6980_v45  ;;  %v1144_v10 = vmul.f32 %v6988_v20, %v6987_v11  ;;  %v1141_v9 = vmul.f32 %v6991_v37, %v6990_v54  ;;  %v6993_v42 = vld [vmem:[#allocation22_spill] sm:$0xff]  ;;  %v7006_v19 = vld [vmem:[#allocation48_spill] sm:$0xff]  ;;  %v7012_v45 = vld [vmem:[#allocation43_spill] sm:$0xff] }
 0x179   : > { %v3713_v38 = vpop.eup %3712  ;;  %3738 = vrcp.f32 %v1003_v49  ;;  %1471 = vmatprep.subr.mxu1 %v1167_v18  ;;  %1315 = vmatpush1.msra.mxu0 %v1156_v40  ;;  %v1159_v15 = vmul.f32 %v3711_v30, %v6983_v50  ;;  %v6992_v49 = vld [vmem:[#allocation39_spill] sm:$0xff]  ;;  %v1140_v29 = vmul.f32 %v6994_v61, %v6993_v42  ;;  %v6995_v62 = vld [vmem:[#allocation38_spill] sm:$0xff]  ;;  %v1137_v36 = vmul.f32 %v6997_v35, %v6996_v63  ;;  %v7003_v30 = vld [vmem:[#allocation49_spill] sm:$0xff] }
 0x17a   : > { %v3715_v51 = vpop.eup %3714  ;;  %3740 = vrcp.f32 %v1002_v22  ;;  %1472 = vmatpush1.msra.mxu1 %v1166_v34  ;;  %1316 = vmatprep.subr.mxu0 %v1153_v14  ;;  %v1158_v1 = vmul.f32 %v3713_v38, %v6986_v23  ;;  %v7002_v18 = vld [vmem:[#allocation11_spill] sm:$0xff]  ;;  %v7005_v14 = vld [vmem:[#allocation10_spill] sm:$0xff]  ;;  %v7007_v38 = vld [vmem:[#allocation32_spill] sm:$0xff]  ;;  %v7024_v42 = vmov 0.0  }
 0x17b   : > { %v3717_v52 = vpop.eup %3716  ;;  %3742 = vrcp.f32 %v999_v43  ;;  %1473 = vmatprep.subr.mxu1 %v1163_v12  ;;  %1317 = vmatpush1.msra.mxu0 %v1152_v46  ;;  %v1155_v56 = vmul.f32 %v3715_v51, %v6989_v21  ;;  %v7000_v43 = vld [vmem:[#allocation50_spill] sm:$0xff]  ;;  %v1133_v31 = vmul.f32 %v7003_v30, %v7002_v18  ;;  %v1132_v34 = vmul.f32 %v7006_v19, %v7005_v14  ;;  %v7008_v46 = vld [vmem:[#allocation9_spill] sm:$0xff]  ;;  %v7018_v23 = vld [vmem:[#allocation40_spill] sm:$0xff]  ;;  %v5380_v18 = vpop.permute.xlu1 %1292 }
 0x17c   : > { %v3719_v16 = vpop.eup %3718  ;;  %3744 = vrcp.f32 %v998_v48  ;;  %1474 = vmatpush1.msra.mxu1 %v1162_v33  ;;  %1318 = vmatprep.subr.mxu0 %v1149_v47  ;;  %v1154_v17 = vmul.f32 %v3717_v52, %v6992_v49  ;;  %v1136_v7 = vmul.f32 %v7000_v43, %v6999_v44  ;;  %v7004_v48 = vld [vmem:[#allocation34_spill] sm:$0xff]  ;;  %v7011_v47 = vld [vmem:[#allocation8_spill] sm:$0xff]  ;;  %v7013_v52 = vld [vmem:[#allocation21_spill] sm:$0xff]  ;;  %v5382_v30 = vpop.permute.xlu0 %1297 }
 0x17d   : > { %v3721_v59 = vpop.eup %3720  ;;  %1475 = vmatprep.subr.mxu1 %v1159_v15  ;;  %1319 = vmatpush1.msra.mxu0 %v1148_v8  ;;  %v1151_v24 = vmul.f32 %v3719_v16, %v6995_v62  ;;  %v7009_v32 = vld [vmem:[#allocation46_spill] sm:$0xff]  ;;  %v1128_v33 = vmul.f32 %v7012_v45, %v7011_v47  ;;  %v7014_v8 = vld [vmem:[#allocation7_spill] sm:$0xff]  ;;  %v7015_v50 = vld [vmem:[#allocation41_spill] sm:$0xff] }
 0x17e   : > { %v3723_v39 = vpop.eup %3722  ;;  %1476 = vmatpush1.msra.mxu1 %v1158_v1  ;;  %1320 = vmatprep.subr.mxu0 %v1145_v41  ;;  %v1150_v5 = vmul.f32 %v3721_v59, %v6998_v26  ;;  %v1129_v12 = vmul.f32 %v7009_v32, %v7008_v46  ;;  %v7010_v51 = vld [vmem:[#allocation30_spill] sm:$0xff]  ;;  %v1125_v15 = vmul.f32 %v7015_v50, %v7014_v8  ;;  %v7016_v16 = vld [vmem:[#allocation20_spill] sm:$0xff]  ;;  %v7019_v59 = vld [vmem:[#allocation19_spill] sm:$0xff] }
 0x17f   : > { %v3725_v25 = vpop.eup %3724  ;;  %1477 = vmatprep.subr.mxu1 %v1155_v56  ;;  %1321 = vmatpush1.msra.mxu0 %v1144_v10  ;;  %v1147_v40 = vmul.f32 %v3723_v39, %v7001_v3  ;;  %v7017_v41 = vld [vmem:[#allocation6_spill] sm:$0xff]  ;;  %v1188_v20 = vld [vmem:[%s6753_s3] sm:$0xff]  ;;  %v7021_v54 = vld [vmem:[#allocation17_spill] sm:$0xff] }
 0x180   : > { %v3727_v22 = vpop.eup %3726  ;;  %1478 = vmatpush1.msra.mxu1 %v1154_v17  ;;  %1322 = vmatprep.subr.mxu0 %v1141_v9  ;;  %v1146_v4 = vmul.f32 %v3725_v25, %v7004_v48  ;;  %v1124_v1 = vmul.f32 %v7018_v23, %v7017_v41  ;;  %v7020_v21 = vld [vmem:[#allocation18_spill] sm:$0xff]  ;;  %v7022_v9 = vld [vmem:[#allocation16_spill] sm:$0xff]  ;;  %v7023_v17 = vld [vmem:[#allocation15_spill] sm:$0xff]  ;;  %v5386_v48 = vpop.permute.xlu0 %1287 }
 0x181   : > { %v3729_v2 = vpop.eup %3728  ;;  %1479 = vmatprep.subr.mxu1 %v1151_v24  ;;  %1323 = vmatpush1.msra.mxu0 %v1140_v29  ;;  %v1143_v55 = vmul.f32 %v3727_v22, %v7007_v38  ;;  %v1189_v61 = vld [vmem:[%s6753_s3 + $0x8] sm:$0xff]  ;;  %v7025_v29 = vld [vmem:[#allocation14_spill] sm:$0xff]  ;;  %v1191_v22 = vld [vmem:[%s6753_s3 + $0x18] sm:$0xff] }
 0x182   : > { %v3731_v57 = vpop.eup %3730  ;;  %1480 = vmatpush1.msra.mxu1 %v1150_v5  ;;  %1324 = vmatprep.subr.mxu0 %v1137_v36  ;;  %v1142_v60 = vmul.f32 %v3729_v2, %v7010_v51  ;;  %v1190_v24 = vld [vmem:[%s6753_s3 + $0x10] sm:$0xff]  ;;  %v1192_v63 = vld [vmem:[%s6753_s3 + $0x20] sm:$0xff]  ;;  %v1193_v35 = vld [vmem:[%s6753_s3 + $0x28] sm:$0xff] }
 0x183   : > { %v3733_v58 = vpop.eup %3732  ;;  %1481 = vmatprep.subr.mxu1 %v1147_v40  ;;  %1325 = vmatpush1.msra.mxu0 %v1136_v7  ;;  %v1139_v0 = vmul.f32 %v3731_v57, %v7013_v52  ;;  %v1194_v36 = vld [vmem:[%s6753_s3 + $0x30] sm:$0xff]  ;;  %v1195_v26 = vld [vmem:[%s6753_s3 + $0x38] sm:$0xff]  ;;  %v1196_v5 = vld [vmem:[%s6753_s3 + $0x40] sm:$0xff] }
 0x184   : > { %v3735_v53 = vpop.eup %3734  ;;  %1482 = vmatpush1.msra.mxu1 %v1146_v4  ;;  %1326 = vmatprep.subr.mxu0 %v1133_v31  ;;  %v1138_v28 = vmul.f32 %v3733_v58, %v7016_v16  ;;  %v1197_v2 = vld [vmem:[%s6753_s3 + $0x48] sm:$0xff]  ;;  %v1198_v44 = vld [vmem:[%s6753_s3 + $0x50] sm:$0xff]  ;;  %v1199_v43 = vld [vmem:[%s6753_s3 + $0x58] sm:$0xff]  ;;  %v5384_v31 = vpop.permute.xlu1 %1282 }
 0x185   : > { %v3737_v6 = vpop.eup %3736  ;;  %1483 = vmatprep.subr.mxu1 %v1143_v55  ;;  %1327 = vmatpush1.msra.mxu0 %v1132_v34  ;;  %v1135_v11 = vmul.f32 %v3735_v53, %v7019_v59  ;;  %v1200_v7 = vld [vmem:[%s6753_s3 + $0x60] sm:$0xff]  ;;  %v1201_v3 = vld [vmem:[%s6753_s3 + $0x68] sm:$0xff]  ;;  %v1202_v40 = vld [vmem:[%s6753_s3 + $0x70] sm:$0xff]  ;;  %v5390_v58 = vpop.permute.xlu0 %1277 }
 0x186   : > { %v3739_v27 = vpop.eup %3738  ;;  %1484 = vmatpush1.msra.mxu1 %v1142_v60  ;;  %1328 = vmatprep.subr.mxu0 %v1129_v12  ;;  %v1134_v56 = vmul.f32 %v3737_v6, %v7020_v21  ;;  %v1203_v57 = vld [vmem:[%s6753_s3 + $0x78] sm:$0xff] }
 0x187   : > { %v3741_v13 = vpop.eup %3740  ;;  %1485 = vmatprep.subr.mxu1 %v1139_v0  ;;  %1329 = vmatpush1.msra.mxu0 %v1128_v33  ;;  %v1131_v37 = vmul.f32 %v3739_v27, %v7021_v54 }
 0x188   : > { %v3743_v10 = vpop.eup %3742  ;;  %1486 = vmatpush1.msra.mxu1 %v1138_v28  ;;  %1330 = vmatprep.subr.mxu0 %v1125_v15  ;;  %v1130_v49 = vmul.f32 %v3741_v13, %v7022_v9  ;;  %v5388_v4 = vpop.permute.xlu1 %1272 }
 0x189   : > { %v3745_v39 = vpop.eup %3744  ;;  %1487 = vmatprep.subr.mxu1 %v1135_v11  ;;  %1331 = vmatpush1.msra.mxu0 %v1124_v1  ;;  %v1127_v25 = vmul.f32 %v3743_v10, %v7023_v17  ;;  %v5394_v19 = vpop.permute.xlu0 %1267 }
 0x18a   : > { %1488 = vmatpush1.msra.mxu1 %v1134_v56  ;;  %1365 = vmatmul.mubr.f32.vlgmr.msra.gmra.mxu0 %v1188_v20  ;;  %v1126_v62 = vmul.f32 %v3745_v39, %v7025_v29 }
 0x18b   : > { %1489 = vmatprep.subr.mxu1 %v1131_v37  ;;  %1370 = vmatprep.mubr.f32.mxu0 %v7024_v42 }
 0x18c   : > { %1490 = vmatpush1.msra.mxu1 %v1130_v49  ;;  %v5392_v14 = vpop.permute.xlu1 %1262 }
 0x18d   : > { %1491 = vmatprep.subr.mxu1 %v1127_v25  ;;  %v5398_v32 = vpop.permute.xlu0 %1257 }
 0x18e   : > { %1492 = vmatpush1.msra.mxu1 %v1126_v62  ;;  %1371 = vmatmul.mubr.f32.gmra.mxu0 %v1189_v61 }
 0x18f   : > { %1526 = vmatmul.mubr.f32.vlgmr.msra.gmra.mxu1 %v1188_v20  ;;  %1376 = vmatprep.mubr.f32.mxu0 %v7024_v42 }
 0x190   : > { %1531 = vmatprep.mubr.f32.mxu1 %v7024_v42  ;;  %v5396_v38 = vpop.permute.xlu1 %1252 }
 0x191   : > { %v5402_v52 = vpop.permute.xlu0 %1247 }
 0x192   : > { %1377 = vmatmul.mubr.f32.gmra.mxu0 %v1190_v24 }
 0x193   : > { %1532 = vmatmul.mubr.f32.gmra.mxu1 %v1189_v61  ;;  %1382 = vmatprep.mubr.f32.mxu0 %v7024_v42 }
 0x194   : > { %1537 = vmatprep.mubr.f32.mxu1 %v7024_v42  ;;  %v5400_v60 = vpop.permute.xlu1 %1242 }
 0x195   : > { %v5406_v13 = vpop.permute.xlu0 %1237 }
 0x196   : > { %1383 = vmatmul.mubr.f32.gmra.mxu0 %v1191_v22 }
 0x197   : > { %1538 = vmatmul.mubr.f32.gmra.mxu1 %v1190_v24  ;;  %1388 = vmatprep.mubr.f32.mxu0 %v7024_v42 }
 0x198   : > { %1543 = vmatprep.mubr.f32.mxu1 %v7024_v42  ;;  %v1233_v8 = vpop.permute.xlu1 %1232 }
 0x199   : > { %v1228_v21 = vpop.permute.xlu0 %1227 }
 0x19a   : > { %1389 = vmatmul.mubr.f32.gmra.mxu0 %v1192_v63 }
 0x19b   : > { %1544 = vmatmul.mubr.f32.gmra.mxu1 %v1191_v22  ;;  %1394 = vmatprep.mubr.f32.mxu0 %v7024_v42 }
 0x19c   : > { %1549 = vmatprep.mubr.f32.mxu1 %v7024_v42  ;;  %v1223_v1 = vpop.permute.xlu1 %1222 }
 0x19e   : > { %1395 = vmatmul.mubr.f32.gmra.mxu0 %v1193_v35 }
 0x19f   : > { %1550 = vmatmul.mubr.f32.gmra.mxu1 %v1192_v63  ;;  %1400 = vmatprep.mubr.f32.mxu0 %v7024_v42 }
 0x1a0   : > { %1555 = vmatprep.mubr.f32.mxu1 %v7024_v42 }
 0x1a2   : > { %1401 = vmatmul.mubr.f32.gmra.mxu0 %v1194_v36 }
 0x1a3   : > { %1556 = vmatmul.mubr.f32.gmra.mxu1 %v1193_v35  ;;  %1406 = vmatprep.mubr.f32.mxu0 %v7024_v42 }
 0x1a4   : > { %1561 = vmatprep.mubr.f32.mxu1 %v7024_v42 }
 0x1a6   : > { %1407 = vmatmul.mubr.f32.gmra.mxu0 %v1195_v26 }
 0x1a7   : > { %1562 = vmatmul.mubr.f32.gmra.mxu1 %v1194_v36  ;;  %1412 = vmatprep.mubr.f32.mxu0 %v7024_v42 }
 0x1a8   : > { %1567 = vmatprep.mubr.f32.mxu1 %v7024_v42 }
 0x1aa   : > { %1413 = vmatmul.mubr.f32.gmra.mxu0 %v1196_v5 }
 0x1ab   : > { %1568 = vmatmul.mubr.f32.gmra.mxu1 %v1195_v26  ;;  %1418 = vmatprep.mubr.f32.mxu0 %v7024_v42 }
 0x1ac   : > { %1573 = vmatprep.mubr.f32.mxu1 %v7024_v42 }
 0x1ae   : > { %1419 = vmatmul.mubr.f32.gmra.mxu0 %v1197_v2 }
 0x1af   : > { %1574 = vmatmul.mubr.f32.gmra.mxu1 %v1196_v5  ;;  %1424 = vmatprep.mubr.f32.mxu0 %v7024_v42 }
 0x1b0   : > { %1579 = vmatprep.mubr.f32.mxu1 %v7024_v42 }
 0x1b2   : > { %1425 = vmatmul.mubr.f32.gmra.mxu0 %v1198_v44 }
 0x1b3   : > { %1580 = vmatmul.mubr.f32.gmra.mxu1 %v1197_v2  ;;  %1430 = vmatprep.mubr.f32.mxu0 %v7024_v42 }
 0x1b4   : > { %1585 = vmatprep.mubr.f32.mxu1 %v7024_v42 }
 0x1b6   : > { %1431 = vmatmul.mubr.f32.gmra.mxu0 %v1199_v43 }
 0x1b7   : > { %1586 = vmatmul.mubr.f32.gmra.mxu1 %v1198_v44  ;;  %1436 = vmatprep.mubr.f32.mxu0 %v7024_v42 }
 0x1b8   : > { %1591 = vmatprep.mubr.f32.mxu1 %v7024_v42 }
 0x1ba   : > { %1437 = vmatmul.mubr.f32.gmra.mxu0 %v1200_v7 }
 0x1bb   : > { %1592 = vmatmul.mubr.f32.gmra.mxu1 %v1199_v43  ;;  %1442 = vmatprep.mubr.f32.mxu0 %v7024_v42 }
 0x1bc   : > { %1597 = vmatprep.mubr.f32.mxu1 %v7024_v42 }
 0x1be   : > { %1443 = vmatmul.mubr.f32.gmra.mxu0 %v1201_v3 }
 0x1bf   : > { %1598 = vmatmul.mubr.f32.gmra.mxu1 %v1200_v7  ;;  %1448 = vmatprep.mubr.f32.mxu0 %v7024_v42 }
 0x1c0   : > { %1603 = vmatprep.mubr.f32.mxu1 %v7024_v42 }
 0x1c2   : > { %1449 = vmatmul.mubr.f32.gmra.mxu0 %v1202_v40 }
 0x1c3   : > { %1604 = vmatmul.mubr.f32.gmra.mxu1 %v1201_v3  ;;  %1454 = vmatprep.mubr.f32.mxu0 %v7024_v42 }
 0x1c4   : > { %1609 = vmatprep.mubr.f32.mxu1 %v7024_v42 }
 0x1c6   : > { %1455 = vmatmul.mubr.f32.gmra.mxu0 %v1203_v57 }
 0x1c7   : > { %1610 = vmatmul.mubr.f32.gmra.mxu1 %v1202_v40  ;;  %2184 = vmatprep.mubr.f32.mxu0 %v7024_v42 }
 0x1c8   : > { %1615 = vmatprep.mubr.f32.mxu1 %v7024_v42 }
 0x1cb   : > { %1616 = vmatmul.mubr.f32.gmra.mxu1 %v1203_v57 }
 0x1cc   : > { %2345 = vmatprep.mubr.f32.mxu1 %v7024_v42 }
 0x24a   : > { %v1366_v34 = vpop.f32.mrf.mxu0 }
 0x24b   : > { %v5414_v20 = vadd.f32 %v1366_v34, %v1223_v1 }
 0x24c   : > { %v1368_v55 = vpop.f32.mrf.mxu0 }
 0x24d   : > { %7026 = vst [vmem:[#allocation47_spill] sm:$0xff] %v5414_v20  ;;  %v5418_v56 = vadd.f32 %v1368_v55, %v1223_v1  ;;  %v1622_v37 = vsub.f32 0.0, %v5414_v20 }
 0x24e   : > { %v1372_v53 = vpop.f32.mrf.mxu0 }
 0x24f   : > { %v1527_v46 = vpop.f32.mrf.mxu1  ;;  %7027 = vst [vmem:[#allocation70_spill] sm:$0xff] %v5418_v56  ;;  %v5425_v9 = vadd.f32 %v1372_v53, %v1228_v21  ;;  %v1623_v17 = vsub.f32 0.0, %v5418_v56  ;;  %v1686_v29 = vmul.f32 1.442695, %v1622_v37 }
 0x250   : > { %v1374_v12 = vpop.f32.mrf.mxu0  ;;  %v5453_v3 = vadd.f32 %v1527_v46, %v1223_v1 }
 0x251   : > { %v1529_v51 = vpop.f32.mrf.mxu1  ;;  %7028 = vst [vmem:[#allocation61_spill] sm:$0xff] %v5425_v9  ;;  %v5430_v25 = vadd.f32 %v1374_v12, %v1228_v21  ;;  %v1626_v62 = vsub.f32 0.0, %v5425_v9  ;;  %v1688_v63 = vmul.f32 1.442695, %v1623_v17  ;;  %3746 = vpow2.f32 %v1686_v29 }
 0x252   : > { %v1378_v6 = vpop.f32.mrf.mxu0  ;;  %7034 = vst [vmem:[#allocation44_spill] sm:$0xff] %v5453_v3  ;;  %v5455_v57 = vadd.f32 %v1529_v51, %v1223_v1 }
 0x253   : > { %v1533_v47 = vpop.f32.mrf.mxu1  ;;  %7029 = vst [vmem:[#allocation35_spill] sm:$0xff] %v5430_v25  ;;  %v5435_v24 = vadd.f32 %v1378_v6, %v1233_v8  ;;  %v1627_v35 = vsub.f32 0.0, %v5430_v25  ;;  %v1694_v5 = vmul.f32 1.442695, %v1626_v62  ;;  %3748 = vpow2.f32 %v1688_v63 }
 0x254   : > { %v1380_v45 = vpop.f32.mrf.mxu0  ;;  %7035 = vst [vmem:[#allocation68_spill] sm:$0xff] %v5455_v57  ;;  %v5460_v53 = vadd.f32 %v1533_v47, %v1228_v21  ;;  %v1625_v1 = vsub.f32 0.0, %v5455_v57 }
 0x255   : > { %v1535_v33 = vpop.f32.mrf.mxu1  ;;  %7030 = vst [vmem:[#allocation45_spill] sm:$0xff] %v5435_v24  ;;  %v5440_v36 = vadd.f32 %v1380_v45, %v1233_v8  ;;  %v1630_v2 = vsub.f32 0.0, %v5435_v24  ;;  %v1696_v40 = vmul.f32 1.442695, %v1627_v35  ;;  %3750 = vpow2.f32 %v1694_v5 }
 0x256   : > { %v1384_v0 = vpop.f32.mrf.mxu0  ;;  %7036 = vst [vmem:[#allocation57_spill] sm:$0xff] %v5460_v53  ;;  %v5463_v45 = vadd.f32 %v1535_v33, %v1228_v21  ;;  %v1628_v29 = vsub.f32 0.0, %v5460_v53 }
 0x257   : > { %v1539_v27 = vpop.f32.mrf.mxu1  ;;  %7031 = vst [vmem:[#allocation69_spill] sm:$0xff] %v5440_v36  ;;  %v5446_v44 = vadd.f32 %v1384_v0, %v5406_v13  ;;  %v1631_v34 = vsub.f32 0.0, %v5440_v36  ;;  %v1702_v12 = vmul.f32 1.442695, %v1630_v2  ;;  %3752 = vpow2.f32 %v1696_v40 }
 0x258   : > { %v1386_v50 = vpop.f32.mrf.mxu0  ;;  %7037 = vst [vmem:[#allocation31_spill] sm:$0xff] %v5463_v45  ;;  %v5469_v51 = vadd.f32 %v1539_v27, %v1233_v8  ;;  %v1629_v21 = vsub.f32 0.0, %v5463_v45  ;;  %v1692_v2 = vmul.f32 1.442695, %v1625_v1 }
 0x259   : > { %v1541_v15 = vpop.f32.mrf.mxu1  ;;  %7032 = vst [vmem:[#allocation58_spill] sm:$0xff] %v5446_v44  ;;  %v5449_v43 = vadd.f32 %v1386_v50, %v5406_v13  ;;  %v1634_v6 = vsub.f32 0.0, %v5446_v44  ;;  %v1624_v50 = vsub.f32 0.0, %v5453_v3  ;;  %v1704_v37 = vmul.f32 1.442695, %v1631_v34 }
 0x25a   : > { %v5404_v16 = vpop.f32.mrf.mxu0  ;;  %7038 = vst [vmem:[#allocation29_spill] sm:$0xff] %v5469_v51  ;;  %v5472_v17 = vadd.f32 %v1541_v15, %v1233_v8  ;;  %3754 = vpow2.f32 %v1702_v12  ;;  %v1632_v5 = vsub.f32 0.0, %v5469_v51  ;;  %v1698_v34 = vmul.f32 1.442695, %v1628_v29 }
 0x25b   : > { %v1545_v28 = vpop.f32.mrf.mxu1  ;;  %7033 = vst [vmem:[#allocation33_spill] sm:$0xff] %v5449_v43  ;;  %v1635_v0 = vsub.f32 0.0, %v5449_v43  ;;  %v1710_v33 = vmul.f32 1.442695, %v1634_v6  ;;  %v1690_v27 = vmul.f32 1.442695, %v1624_v50  ;;  %3756 = vpow2.f32 %v1704_v37 }
 0x25c   : > { %v5408_v41 = vpop.f32.mrf.mxu0  ;;  %7039 = vst [vmem:[#allocation67_spill] sm:$0xff] %v5472_v17  ;;  %v5479_v62 = vadd.f32 %v1545_v28, %v5406_v13  ;;  %v1633_v8 = vsub.f32 0.0, %v5472_v17  ;;  %v1700_v28 = vmul.f32 1.442695, %v1629_v21  ;;  %v1706_v1 = vmul.f32 1.442695, %v1632_v5 }
 0x25d   : > { %v1547_v23 = vpop.f32.mrf.mxu1  ;;  %v1712_v63 = vmul.f32 1.442695, %v1635_v0  ;;  %3758 = vpow2.f32 %v1710_v33  ;;  %v5493_v0 = vadd.f32 %v5404_v16, %v5400_v60  ;;  %v5500_v29 = vadd.f32 %v5408_v41, %v5400_v60 }
 0x25e   : > { %v5412_v11 = vpop.f32.mrf.mxu0  ;;  %7040 = vst [vmem:[#allocation56_spill] sm:$0xff] %v5479_v62  ;;  %v5486_v15 = vadd.f32 %v1547_v23, %v5406_v13  ;;  %v3747_v12 = vpop.eup %3746  ;;  %v1636_v6 = vsub.f32 0.0, %v5479_v62  ;;  %v1708_v13 = vmul.f32 1.442695, %v1633_v8 }
 0x25f   : > { %v5410_v59 = vpop.f32.mrf.mxu1  ;;  %3760 = vpow2.f32 %v1712_v63  ;;  %7042 = vst [vmem:[#allocation66_spill] sm:$0xff] %v5493_v0  ;;  %7043 = vst [vmem:[#allocation55_spill] sm:$0xff] %v5500_v29  ;;  %v1814_v21 = vadd.f32 1.0, %v3747_v12  ;;  %v1638_v42 = vsub.f32 0.0, %v5493_v0  ;;  %v1639_v12 = vsub.f32 0.0, %v5500_v29 }
 0x260   : > { %v5422_v54 = vpop.f32.mrf.mxu0  ;;  %7041 = vst [vmem:[#allocation28_spill] sm:$0xff] %v5486_v15  ;;  %3762 = vpow2.f32 %v1690_v27  ;;  %v3749_v37 = vpop.eup %3748  ;;  %v1637_v23 = vsub.f32 0.0, %v5486_v15  ;;  %v1714_v16 = vmul.f32 1.442695, %v1636_v6  ;;  %v5507_v27 = vadd.f32 %v5412_v11, %v5402_v52 }
 0x261   : > { %v5416_v10 = vpop.f32.mrf.mxu1  ;;  %3764 = vpow2.f32 %v1692_v2  ;;  %v1815_v2 = vadd.f32 1.0, %v3749_v37  ;;  %v5513_v41 = vadd.f32 %v5422_v54, %v5402_v52  ;;  %v1718_v11 = vmul.f32 1.442695, %v1638_v42 }
 0x262   : > { %v5432_v61 = vpop.f32.mrf.mxu0  ;;  %3766 = vpow2.f32 %v1698_v34  ;;  %v3751_v63 = vpop.eup %3750  ;;  %7044 = vst [vmem:[#allocation27_spill] sm:$0xff] %v5507_v27  ;;  %v1716_v34 = vmul.f32 1.442695, %v1637_v23  ;;  %v1642_v57 = vsub.f32 0.0, %v5507_v27  ;;  %v1720_v23 = vmul.f32 1.442695, %v1639_v12 }
 0x263   : > { %v5420_v39 = vpop.f32.mrf.mxu1  ;;  %3768 = vpow2.f32 %v1700_v28  ;;  %7045 = vst [vmem:[#allocation65_spill] sm:$0xff] %v5513_v41  ;;  %v1818_v6 = vadd.f32 1.0, %v3751_v63  ;;  %v1643_v54 = vsub.f32 0.0, %v5513_v41  ;;  %v5544_v12 = vadd.f32 %v5410_v59, %v5400_v60 }
 0x264   : > { %v5442_v26 = vpop.f32.mrf.mxu0  ;;  %3770 = vpow2.f32 %v1706_v1  ;;  %v3753_v8 = vpop.eup %3752  ;;  %v1726_v53 = vmul.f32 1.442695, %v1642_v57  ;;  %v5551_v57 = vadd.f32 %v5416_v10, %v5400_v60 }
 0x265   : > { %v5427_v49 = vpop.f32.mrf.mxu1  ;;  %3772 = vpow2.f32 %v1708_v13  ;;  %v1819_v1 = vadd.f32 1.0, %v3753_v8  ;;  %v5524_v13 = vadd.f32 %v5432_v61, %v5396_v38  ;;  %7050 = vst [vmem:[#allocation25_spill] sm:$0xff] %v5544_v12 }
 0x266   : > { %v5458_v55 = vpop.f32.mrf.mxu0  ;;  %3774 = vrcp.f32 %v1814_v21  ;;  %v5528_v21 = vadd.f32 %v5442_v26, %v5396_v38  ;;  %7052 = vst [vmem:[#allocation52_spill] sm:$0xff] %v5551_v57  ;;  %v5567_v60 = vadd.f32 %v5427_v49, %v5402_v52 }
 0x267   : > { %v5437_v22 = vpop.f32.mrf.mxu1  ;;  %v3755_v3 = vpop.eup %3754  ;;  %3776 = vpow2.f32 %v1714_v16  ;;  %7046 = vst [vmem:[#allocation54_spill] sm:$0xff] %v5524_v13 }
 0x268   : > { %v5474_v47 = vpop.f32.mrf.mxu0  ;;  %3778 = vrcp.f32 %v1815_v2  ;;  %7047 = vst [vmem:[#allocation26_spill] sm:$0xff] %v5528_v21  ;;  %v3757_v42 = vpop.eup %3756  ;;  %v1822_v16 = vadd.f32 1.0, %v3755_v3  ;;  %v5534_v2 = vadd.f32 %v5458_v55, %v5398_v32  ;;  %v1728_v3 = vmul.f32 1.442695, %v1643_v54  ;;  %7055 = vst [vmem:[#allocation42_spill] sm:$0xff] %v5567_v60 }
 0x269   : > { %v5451_v7 = vpop.f32.mrf.mxu1  ;;  %3780 = vpow2.f32 %v1716_v34  ;;  %v5538_v61 = vadd.f32 %v5474_v47, %v5398_v32  ;;  %v1823_v20 = vadd.f32 1.0, %v3757_v42  ;;  %v1647_v47 = vsub.f32 0.0, %v5528_v21 }
 0x26a   : > { %v5488_v40 = vpop.f32.mrf.mxu0  ;;  %3782 = vrcp.f32 %v1818_v6  ;;  %7048 = vst [vmem:[#allocation64_spill] sm:$0xff] %v5534_v2  ;;  %v3759_v8 = vpop.eup %3758  ;;  %v1646_v6 = vsub.f32 0.0, %v5524_v13  ;;  %v5560_v54 = vadd.f32 %v5420_v39, %v5402_v52  ;;  %v1650_v45 = vsub.f32 0.0, %v5534_v2 }
 0x26b   : > { %v5466_v46 = vpop.f32.mrf.mxu1  ;;  %3784 = vpow2.f32 %v1718_v11  ;;  %7049 = vst [vmem:[#allocation53_spill] sm:$0xff] %v5538_v61  ;;  %v1826_v59 = vadd.f32 1.0, %v3759_v8  ;;  %v1651_v10 = vsub.f32 0.0, %v5538_v61  ;;  %v1640_v8 = vsub.f32 0.0, %v5544_v12 }
 0x26c   : > { %v5502_v33 = vpop.f32.mrf.mxu0  ;;  %v3761_v26 = vpop.eup %3760  ;;  %3786 = vrcp.f32 %v1819_v1  ;;  %7054 = vst [vmem:[#allocation62_spill] sm:$0xff] %v5560_v54  ;;  %v1734_v39 = vmul.f32 1.442695, %v1646_v6  ;;  %v5577_v51 = vadd.f32 %v5437_v22, %v5396_v38  ;;  %v1641_v52 = vsub.f32 0.0, %v5551_v57 }
 0x26d   : > { %v5481_v35 = vpop.f32.mrf.mxu1  ;;  %v5547_v55 = vpop.eup %3762  ;;  %3788 = vpow2.f32 %v1720_v23  ;;  %v1827_v23 = vadd.f32 1.0, %v3761_v26  ;;  %v1736_v49 = vmul.f32 1.442695, %v1647_v47  ;;  %v1742_v6 = vmul.f32 1.442695, %v1650_v45 }
 0x26e   : > { %v5516_v28 = vpop.f32.mrf.mxu0  ;;  %7051 = vst [vmem:[#allocation63_spill] sm:$0xff] %v5547_v55  ;;  %v5556_v1 = vpop.eup %3764  ;;  %3790 = vrcp.f32 %v1822_v16  ;;  %7056 = vst [vmem:[#allocation23_spill] sm:$0xff] %v5577_v51  ;;  %v5593_v22 = vadd.f32 %v5466_v46, %v5398_v32  ;;  %v1645_v47 = vsub.f32 0.0, %v5567_v60  ;;  %v1744_v25 = vmul.f32 1.442695, %v1651_v10 }
 0x26f   : > { %v5495_v50 = vpop.f32.mrf.mxu1  ;;  %7053 = vst [vmem:[#allocation24_spill] sm:$0xff] %v5556_v1  ;;  %v5563_v42 = vpop.eup %3766  ;;  %3792 = vpow2.f32 %v1726_v53  ;;  %v5584_v53 = vadd.f32 %v5451_v7, %v5396_v38  ;;  %v1722_v62 = vmul.f32 1.442695, %v1640_v8  ;;  %v5605_v45 = vadd.f32 %v5481_v35, %v5398_v32 }
 0x270   : > { %v5530_v63 = vpop.f32.mrf.mxu0  ;;  %v5572_v16 = vpop.eup %3768  ;;  %3794 = vpow2.f32 %v1728_v3  ;;  %v1644_v3 = vsub.f32 0.0, %v5560_v54  ;;  %7058 = vst [vmem:[#allocation39_spill] sm:$0xff] %v5593_v22  ;;  %v1724_v24 = vmul.f32 1.442695, %v1641_v52  ;;  %v1652_v8 = vsub.f32 0.0, %v5593_v22 }
 0x271   : > { %v5509_v5 = vpop.f32.mrf.mxu1  ;;  %v5579_v26 = vpop.eup %3770  ;;  %3796 = vrcp.f32 %v1823_v20  ;;  %7057 = vst [vmem:[#allocation60_spill] sm:$0xff] %v5584_v53  ;;  %7060 = vst [vmem:[#allocation59_spill] sm:$0xff] %v5605_v45  ;;  %v1732_v35 = vmul.f32 1.442695, %v1645_v47  ;;  %v1653_v36 = vsub.f32 0.0, %v5605_v45  ;;  %v5660_v54 = vadd.f32 %v5495_v50, %v5392_v14 }
 0x272   : > { %v5554_v11 = vpop.f32.mrf.mxu0  ;;  %v5588_v17 = vpop.eup %3772  ;;  %3798 = vrcp.f32 %v1826_v59  ;;  %v1648_v59 = vsub.f32 0.0, %v5577_v51  ;;  %v1730_v15 = vmul.f32 1.442695, %v1644_v3 }
 0x273   : > { %v5519_v37 = vpop.f32.mrf.mxu1  ;;  %v5595_v20 = vpop.eup %3774  ;;  %3800 = vrcp.f32 %v1827_v23  ;;  %v1649_v23 = vsub.f32 0.0, %v5584_v53  ;;  %7072 = vst [vmem:[#allocation48_spill] sm:$0xff] %v5660_v54 }
 0x274   : > { %v5586_v9 = vpop.f32.mrf.mxu0  ;;  %7059 = vst [vmem:[#allocation22_spill] sm:$0xff] %v5595_v20  ;;  %v5600_v7 = vpop.eup %3776  ;;  %3802 = vpow2.f32 %v1734_v39  ;;  %v5617_v39 = vadd.f32 %v5488_v40, %v5392_v14 }
 0x275   : > { %v5540_v34 = vpop.f32.mrf.mxu1  ;;  %v5607_v46 = vpop.eup %3778  ;;  %3804 = vpow2.f32 %v1736_v49  ;;  %v1740_v3 = vmul.f32 1.442695, %v1649_v23 }
 0x276   : > { %7061 = vst [vmem:[#allocation38_spill] sm:$0xff] %v5607_v46  ;;  %v5610_v20 = vpop.f32.mrf.mxu0  ;;  %v5612_v10 = vpop.eup %3780  ;;  %3806 = vpow2.f32 %v1742_v6  ;;  %7062 = vst [vmem:[#allocation13_spill] sm:$0xff] %v5617_v39  ;;  %v1738_v46 = vmul.f32 1.442695, %v1648_v59  ;;  %v5628_v6 = vadd.f32 %v5502_v33, %v5392_v14  ;;  %v1654_v47 = vsub.f32 0.0, %v5617_v39 }
 0x277   : > { %v5570_v56 = vpop.f32.mrf.mxu1  ;;  %v5619_v32 = vpop.eup %3782  ;;  %3808 = vpow2.f32 %v1744_v25  ;;  %v1746_v25 = vmul.f32 1.442695, %v1652_v8 }
 0x278   : > { %7063 = vst [vmem:[#allocation51_spill] sm:$0xff] %v5619_v32  ;;  %v3785_v49 = vpop.eup %3784  ;;  %3810 = vpow2.f32 %v1722_v62  ;;  %7065 = vst [vmem:[#allocation12_spill] sm:$0xff] %v5628_v6  ;;  %v5630_v40 = vpop.f32.mrf.mxu0  ;;  %v5635_v62 = vadd.f32 %v5516_v28, %v5394_v19  ;;  %v1655_v57 = vsub.f32 0.0, %v5628_v6 }
 0x279   : > { %v5598_v38 = vpop.f32.mrf.mxu1  ;;  %v5624_v12 = vpop.eup %3786  ;;  %3812 = vpow2.f32 %v1724_v24  ;;  %v5641_v24 = vadd.f32 %v5530_v63, %v5394_v19 }
 0x27a   : > { %7064 = vst [vmem:[#allocation37_spill] sm:$0xff] %v5624_v12  ;;  %v3789_v32 = vpop.eup %3788  ;;  %3814 = vpow2.f32 %v1730_v15  ;;  %7066 = vst [vmem:[#allocation50_spill] sm:$0xff] %v5635_v62  ;;  %v1830_v12 = vadd.f32 1.0, %v3785_v49  ;;  %v1748_v15 = vmul.f32 1.442695, %v1653_v36  ;;  %v5646_v28 = vpop.f32.mrf.mxu0  ;;  %v1658_v49 = vsub.f32 0.0, %v5635_v62 }
 0x27b   : > { %v5621_v52 = vpop.f32.mrf.mxu1  ;;  %v5637_v59 = vpop.eup %3790  ;;  %3816 = vpow2.f32 %v1732_v35  ;;  %7068 = vst [vmem:[#allocation11_spill] sm:$0xff] %v5641_v24  ;;  %v1831_v44 = vadd.f32 1.0, %v3789_v32  ;;  %v1750_v35 = vmul.f32 1.442695, %v1654_v47  ;;  %v1752_v47 = vmul.f32 1.442695, %v1655_v57 }
 0x27c   : > { %7067 = vst [vmem:[#allocation36_spill] sm:$0xff] %v5637_v59  ;;  %v3793_v23 = vpop.eup %3792  ;;  %3818 = vpow2.f32 %v1738_v46  ;;  %v1659_v46 = vsub.f32 0.0, %v5641_v24 }
 0x27d   : > { %v5643_v33 = vpop.f32.mrf.mxu1  ;;  %v3795_v8 = vpop.eup %3794  ;;  %3820 = vpow2.f32 %v1740_v3  ;;  %v1834_v59 = vadd.f32 1.0, %v3793_v23 }
 0x27e   : > { %v5648_v43 = vpop.eup %3796  ;;  %3822 = vpow2.f32 %v1746_v25  ;;  %v1835_v3 = vadd.f32 1.0, %v3795_v8  ;;  %v5670_v8 = vadd.f32 %v5519_v37, %v5394_v19  ;;  %v1760_v50 = vmul.f32 1.442695, %v1659_v46 }
 0x27f   : > { %7069 = vst [vmem:[#allocation49_spill] sm:$0xff] %v5648_v43  ;;  %v5651_v63 = vpop.eup %3798  ;;  %3824 = vrcp.f32 %v1830_v12  ;;  %v5654_v36 = vpop.f32.mrf.mxu1  ;;  %v5664_v43 = vadd.f32 %v5509_v5, %v5392_v14 }
 0x280   : > { %7070 = vst [vmem:[#allocation34_spill] sm:$0xff] %v5651_v63  ;;  %v5656_v32 = vpop.eup %3800  ;;  %3826 = vpow2.f32 %v1748_v15  ;;  %v5666_v12 = vpop.f32.mrf.mxu0  ;;  %v1758_v63 = vmul.f32 1.442695, %v1658_v49  ;;  %7074 = vst [vmem:[#allocation9_spill] sm:$0xff] %v5670_v8 }
 0x281   : > { %7071 = vst [vmem:[#allocation10_spill] sm:$0xff] %v5656_v32  ;;  %v3803_v25 = vpop.eup %3802  ;;  %3828 = vrcp.f32 %v1831_v44  ;;  %7073 = vst [vmem:[#allocation32_spill] sm:$0xff] %v5664_v43  ;;  %v5674_v44 = vadd.f32 %v5540_v34, %v5394_v19  ;;  %v5676_v57 = vpop.f32.mrf.mxu1  ;;  %v1656_v32 = vsub.f32 0.0, %v5660_v54  ;;  %v5688_v19 = vadd.f32 %v5570_v56, %v5388_v4 }
 0x282   : > { %v3805_v23 = vpop.eup %3804  ;;  %3830 = vpow2.f32 %v1750_v35  ;;  %v1838_v5 = vadd.f32 1.0, %v3803_v25  ;;  %v5681_v35 = vadd.f32 %v5554_v11, %v5388_v4  ;;  %v5690_v34 = vpop.f32.mrf.mxu0  ;;  %v1660_v25 = vsub.f32 0.0, %v5670_v8 }
 0x283   : > { %v3807_v15 = vpop.eup %3806  ;;  %3832 = vrcp.f32 %v1834_v59  ;;  %7075 = vst [vmem:[#allocation46_spill] sm:$0xff] %v5674_v44  ;;  %v1839_v49 = vadd.f32 1.0, %v3805_v23  ;;  %v1657_v59 = vsub.f32 0.0, %v5664_v43  ;;  %7077 = vst [vmem:[#allocation8_spill] sm:$0xff] %v5688_v19  ;;  %v5697_v11 = vadd.f32 %v5586_v9, %v5388_v4  ;;  %v5706_v60 = vpop.f32.mrf.mxu1 }
 0x284   : > { %v3809_v14 = vpop.eup %3808  ;;  %3834 = vrcp.f32 %v1835_v3  ;;  %7076 = vst [vmem:[#allocation30_spill] sm:$0xff] %v5681_v35  ;;  %v1842_v3 = vadd.f32 1.0, %v3807_v15  ;;  %v1661_v0 = vsub.f32 0.0, %v5674_v44  ;;  %v5704_v56 = vadd.f32 %v5598_v38, %v5388_v4  ;;  %v1446_v38 = vpop.f32.mrf.mxu0 }
 0x285   : > { %v5683_v37 = vpop.eup %3810  ;;  %3836 = vpow2.f32 %v1752_v47  ;;  %v1843_v47 = vadd.f32 1.0, %v3809_v14  ;;  %v1662_v29 = vsub.f32 0.0, %v5681_v35  ;;  %v5713_v9 = vadd.f32 %v5610_v20, %v5390_v58  ;;  %v1607_v41 = vpop.f32.mrf.mxu1 }
 0x286   : > { %v5692_v46 = vpop.eup %3812  ;;  %3838 = vpow2.f32 %v1758_v63  ;;  %7078 = vst [vmem:[#allocation43_spill] sm:$0xff] %v5704_v56  ;;  %v1754_v63 = vmul.f32 1.442695, %v1656_v32  ;;  %v1664_v51 = vsub.f32 0.0, %v5688_v19  ;;  %v5720_v4 = vadd.f32 %v5621_v52, %v5390_v58  ;;  %v1450_v45 = vpop.f32.mrf.mxu0 }
 0x287   : > { %v5699_v23 = vpop.eup %3814  ;;  %3840 = vpow2.f32 %v1760_v50  ;;  %v1756_v50 = vmul.f32 1.442695, %v1657_v59  ;;  %v1762_v32 = vmul.f32 1.442695, %v1660_v25  ;;  %v1764_v20 = vmul.f32 1.442695, %v1661_v0  ;;  %v1611_v54 = vpop.f32.mrf.mxu1 }
 0x288   : > { %v5708_v15 = vpop.eup %3816  ;;  %3842 = vrcp.f32 %v1838_v5  ;;  %7079 = vst [vmem:[#allocation21_spill] sm:$0xff] %v5720_v4  ;;  %v1663_v5 = vsub.f32 0.0, %v5697_v11  ;;  %v5730_v59 = vadd.f32 %v5630_v40, %v5390_v58  ;;  %v1766_v22 = vmul.f32 1.442695, %v1662_v29 }
 0x289   : > { %v5715_v14 = vpop.eup %3818  ;;  %3844 = vrcp.f32 %v1839_v49  ;;  %v1665_v49 = vsub.f32 0.0, %v5704_v56  ;;  %v5737_v25 = vadd.f32 %v5643_v33, %v5390_v58  ;;  %v1770_v0 = vmul.f32 1.442695, %v1664_v51 }
 0x28a   : > { %v5722_v27 = vpop.eup %3820  ;;  %3846 = vrcp.f32 %v1842_v3  ;;  %v1666_v3 = vsub.f32 0.0, %v5713_v9  ;;  %v1768_v21 = vmul.f32 1.442695, %v1663_v5  ;;  %v5750_v51 = vadd.f32 %v5646_v28, %v5384_v31 }
 0x28b   : > { %v5725_v53 = vpop.eup %3822  ;;  %3848 = vrcp.f32 %v1843_v47  ;;  %v1668_v47 = vsub.f32 0.0, %v5720_v4  ;;  %v1772_v29 = vmul.f32 1.442695, %v1665_v49  ;;  %v1669_v33 = vsub.f32 0.0, %v5737_v25 }
 0x28c   : > { %v5732_v52 = vpop.eup %3824  ;;  %3850 = vpow2.f32 %v1754_v63  ;;  %v1667_v63 = vsub.f32 0.0, %v5730_v59  ;;  %v1774_v58 = vmul.f32 1.442695, %v1666_v3  ;;  %v5756_v5 = vadd.f32 %v5666_v12, %v5384_v31 }
 0x28d   : > { %7080 = vst [vmem:[#allocation7_spill] sm:$0xff] %v5732_v52  ;;  %v5739_v13 = vpop.eup %3826  ;;  %3852 = vpow2.f32 %v1756_v50  ;;  %v1670_v12 = vsub.f32 0.0, %v5750_v51  ;;  %v5780_v61 = vadd.f32 %v1607_v41, %v5386_v48 }
 0x28e   : > { %v5742_v40 = vpop.eup %3828  ;;  %3854 = vpow2.f32 %v1762_v32  ;;  %v1778_v32 = vmul.f32 1.442695, %v1668_v47  ;;  %v1776_v28 = vmul.f32 1.442695, %v1667_v63  ;;  %v5774_v63 = vadd.f32 %v1450_v45, %v5380_v18 }
 0x28f   : > { %7081 = vst [vmem:[#allocation41_spill] sm:$0xff] %v5742_v40  ;;  %v3831_v52 = vpop.eup %3830  ;;  %3856 = vpow2.f32 %v1764_v20  ;;  %v1452_v20 = vpop.f32.mrf.mxu0 }
 0x290   : > { %v5745_v2 = vpop.eup %3832  ;;  %3858 = vpow2.f32 %v1766_v22  ;;  %v1846_v40 = vadd.f32 1.0, %v3831_v52  ;;  %v5760_v22 = vadd.f32 %v5690_v34, %v5386_v48  ;;  %v5768_v52 = vadd.f32 %v5676_v57, %v5384_v31 }
 0x291   : > { %7082 = vst [vmem:[#allocation20_spill] sm:$0xff] %v5745_v2  ;;  %v5752_v50 = vpop.eup %3834  ;;  %3860 = vpow2.f32 %v1770_v0  ;;  %v5763_v2 = vadd.f32 %v1446_v38, %v5386_v48  ;;  %v1613_v0 = vpop.f32.mrf.mxu1 }
 0x292   : > { %7083 = vst [vmem:[#allocation6_spill] sm:$0xff] %v5752_v50  ;;  %v3837_v49 = vpop.eup %3836  ;;  %3862 = vpow2.f32 %v1768_v21  ;;  %v1780_v50 = vmul.f32 1.442695, %v1669_v33  ;;  %v1456_v38 = vpop.f32.mrf.mxu0  ;;  %v1674_v33 = vsub.f32 0.0, %v5760_v22 }
 0x293   : > { %v3839_v3 = vpop.eup %3838  ;;  %3864 = vpow2.f32 %v1772_v29  ;;  %v1847_v34 = vadd.f32 1.0, %v3837_v49  ;;  %v1671_v29 = vsub.f32 0.0, %v5756_v5  ;;  %v5786_v49 = vadd.f32 %v1452_v20, %v5380_v18  ;;  %v1617_v45 = vpop.f32.mrf.mxu1 }
 0x294   : > { %v3841_v47 = vpop.eup %3840  ;;  %3866 = vpow2.f32 %v1774_v58  ;;  %v1850_v58 = vadd.f32 1.0, %v3839_v3  ;;  %v1673_v3 = vsub.f32 0.0, %v5768_v52  ;;  %v1458_v20 = vpop.f32.mrf.mxu0 }
 0x295   : > { %v5770_v21 = vpop.eup %3842  ;;  %3868 = vpow2.f32 %v1778_v32  ;;  %v1675_v32 = vsub.f32 0.0, %v5763_v2  ;;  %v1619_v44 = vpop.f32.mrf.mxu1  ;;  %v5816_v19 = vadd.f32 %v1458_v20, %v5382_v30 }
 0x296   : > { %7084 = vst [vmem:[#allocation40_spill] sm:$0xff] %v5770_v21  ;;  %v5776_v43 = vpop.eup %3844  ;;  %3870 = vrcp.f32 %v1846_v40  ;;  %v1851_v21 = vadd.f32 1.0, %v3841_v47  ;;  %v1782_v40 = vmul.f32 1.442695, %v1670_v12  ;;  %v1784_v47 = vmul.f32 1.442695, %v1671_v29 }
 0x297   : > { %7085 = vst [vmem:[#allocation19_spill] sm:$0xff] %v5776_v43  ;;  %v5782_v57 = vpop.eup %3846  ;;  %3872 = vpow2.f32 %v1776_v28  ;;  %v5792_v43 = vadd.f32 %v1613_v0, %v5380_v18  ;;  %v1678_v28 = vsub.f32 0.0, %v5774_v63  ;;  %v1677_v12 = vsub.f32 0.0, %v5780_v61 }
 0x298   : > { %7086 = vst [vmem:[#allocation18_spill] sm:$0xff] %v5782_v57  ;;  %v5788_v8 = vpop.eup %3848  ;;  %3874 = vpow2.f32 %v1780_v50  ;;  %v5798_v57 = vadd.f32 %v1456_v38, %v5382_v30  ;;  %v1790_v50 = vmul.f32 1.442695, %v1674_v33  ;;  %v5809_v29 = vadd.f32 %v1611_v54, %v5380_v18 }
 0x299   : > { %7087 = vst [vmem:[#allocation17_spill] sm:$0xff] %v5788_v8  ;;  %v5794_v41 = vpop.eup %3850  ;;  %3876 = vrcp.f32 %v1847_v34  ;;  %v5804_v8 = vadd.f32 %v1617_v45, %v5382_v30  ;;  %v1792_v34 = vmul.f32 1.442695, %v1675_v32  ;;  %v1679_v38 = vsub.f32 0.0, %v5786_v49 }
 0x29a   : > { %v5800_v39 = vpop.eup %3852  ;;  %3878 = vrcp.f32 %v1850_v58  ;;  %v1788_v58 = vmul.f32 1.442695, %v1673_v3  ;;  %v1681_v33 = vsub.f32 0.0, %v5792_v43  ;;  %v1798_v18 = vmul.f32 1.442695, %v1678_v28 }
 0x29b   : > { %v5806_v0 = vpop.eup %3854  ;;  %3880 = vrcp.f32 %v1851_v21  ;;  %v5820_v21 = vadd.f32 %v5706_v60, %v5386_v48  ;;  %v1682_v54 = vsub.f32 0.0, %v5798_v57  ;;  %v1796_v62 = vmul.f32 1.442695, %v1677_v12 }
 0x29c   : > { %v5812_v6 = vpop.eup %3856  ;;  %3882 = vpow2.f32 %v1782_v40  ;;  %v1684_v40 = vsub.f32 0.0, %v5804_v8  ;;  %v5827_v3 = vadd.f32 %v1619_v44, %v5382_v30  ;;  %v1680_v48 = vsub.f32 0.0, %v5809_v29 }
 0x29d   : > { %v3859_v45 = vpop.eup %3858  ;;  %3884 = vpow2.f32 %v1784_v47  ;;  %v5831_v47 = vadd.f32 %v5654_v36, %v5384_v31  ;;  %v1800_v60 = vmul.f32 1.442695, %v1679_v38  ;;  %v1804_v55 = vmul.f32 1.442695, %v1681_v33 }
 0x29e   : > { %v5823_v32 = vpop.eup %3860  ;;  %3886 = vpow2.f32 %v1790_v50  ;;  %v1683_v50 = vsub.f32 0.0, %v5816_v19  ;;  %v1676_v56 = vsub.f32 0.0, %v5820_v21  ;;  %v1806_v30 = vmul.f32 1.442695, %v1682_v54 }
 0x29f   : > { %v3863_v20 = vpop.eup %3862  ;;  %3888 = vpow2.f32 %v1792_v34  ;;  %v1810_v31 = vmul.f32 1.442695, %v1684_v40  ;;  %v1685_v36 = vsub.f32 0.0, %v5827_v3  ;;  %v1672_v38 = vsub.f32 0.0, %v5831_v47 }
 0x2a0   : > { %v5834_v28 = vpop.eup %3864  ;;  %3890 = vpow2.f32 %v1788_v58  ;;  %v1802_v24 = vmul.f32 1.442695, %v1680_v48  ;;  %v1808_v33 = vmul.f32 1.442695, %v1683_v50  ;;  %v1794_v4 = vmul.f32 1.442695, %v1676_v56 }
 0x2a1   : > { %v3867_v12 = vpop.eup %3866  ;;  %3892 = vpow2.f32 %v1798_v18  ;;  %v1786_v40 = vmul.f32 1.442695, %v1672_v38  ;;  %v1854_v35 = vadd.f32 1.0, %v3859_v45 }
 0x2a2   : > { %v5838_v44 = vpop.eup %3868  ;;  %3894 = vpow2.f32 %v1796_v62  ;;  %v1812_v62 = vmul.f32 1.442695, %v1685_v36  ;;  %v1858_v50 = vadd.f32 1.0, %v3867_v12 }
 0x2a3   : > { %v5841_v34 = vpop.eup %3870  ;;  %3896 = vpow2.f32 %v1800_v60  ;;  %v1855_v60 = vadd.f32 1.0, %v3863_v20 }
 0x2a4   : > { %7088 = vst [vmem:[#allocation16_spill] sm:$0xff] %v5841_v34  ;;  %v3873_v58 = vpop.eup %3872  ;;  %3898 = vpow2.f32 %v1804_v55 }
 0x2a5   : > { %v5844_v1 = vpop.eup %3874  ;;  %3900 = vpow2.f32 %v1806_v30  ;;  %v1859_v30 = vadd.f32 1.0, %v3873_v58 }
 0x2a6   : > { %v5846_v18 = vpop.eup %3876  ;;  %3902 = vpow2.f32 %v1810_v31 }
 0x2a7   : > { %7089 = vst [vmem:[#allocation15_spill] sm:$0xff] %v5846_v18  ;;  %v5848_v54 = vpop.eup %3878  ;;  %3904 = vpow2.f32 %v1802_v24 }
 0x2a8   : > { %7090 = vst [vmem:[#allocation14_spill] sm:$0xff] %v5848_v54  ;;  %v5850_v34 = vpop.eup %3880  ;;  %3906 = vpow2.f32 %v1808_v33 }
 0x2a9   : > { %v3883_v48 = vpop.eup %3882  ;;  %3908 = vpow2.f32 %v1794_v4 }
 0x2aa   : > { %v3885_v55 = vpop.eup %3884  ;;  %3910 = vpow2.f32 %v1812_v62  ;;  %v1862_v31 = vadd.f32 1.0, %v3883_v48 }
 0x2ab   : > { %v3887_v56 = vpop.eup %3886  ;;  %3912 = vpow2.f32 %v1786_v40  ;;  %v1863_v38 = vadd.f32 1.0, %v3885_v55 }
 0x2ac   : > { %v3889_v18 = vpop.eup %3888  ;;  %3914 = vrcp.f32 %v1854_v35  ;;  %v1866_v54 = vadd.f32 1.0, %v3887_v56 }
 0x2ad   : > { %v3891_v36 = vpop.eup %3890  ;;  %3916 = vrcp.f32 %v1855_v60  ;;  %v1867_v33 = vadd.f32 1.0, %v3889_v18 }
 0x2ae   : > { %v3893_v24 = vpop.eup %3892  ;;  %3918 = vrcp.f32 %v1858_v50 }
 0x2af   : > { %v3895_v45 = vpop.eup %3894  ;;  %3920 = vrcp.f32 %v1859_v30  ;;  %v1870_v4 = vadd.f32 1.0, %v3893_v24 }
 0x2b0   : > { %v3897_v20 = vpop.eup %3896  ;;  %3922 = vrcp.f32 %v1862_v31 }
 0x2b1   : > { %v3899_v12 = vpop.eup %3898  ;;  %3924 = vrcp.f32 %v1863_v38  ;;  %v1871_v62 = vadd.f32 1.0, %v3897_v20  ;;  %v1869_v38 = vadd.f32 1.0, %v3895_v45 }
 0x2b2   : > { %v3901_v58 = vpop.eup %3900  ;;  %3926 = vrcp.f32 %v1866_v54  ;;  %v1873_v40 = vadd.f32 1.0, %v3899_v12 }
 0x2b3   : > { %v3903_v35 = vpop.eup %3902  ;;  %3928 = vrcp.f32 %v1867_v33  ;;  %v1874_v48 = vadd.f32 1.0, %v3901_v58 }
 0x2b4   : > { %v3905_v60 = vpop.eup %3904  ;;  %3930 = vrcp.f32 %v1870_v4  ;;  %v1876_v50 = vadd.f32 1.0, %v3903_v35  ;;  %v1865_v4 = vadd.f32 1.0, %v3891_v36  ;;  %v1861_v35 = vadd.f32 1.0, %v5844_v1 }
 0x2b5   : > { %v3907_v55 = vpop.eup %3906  ;;  %3932 = vrcp.f32 %v1871_v62  ;;  %v1872_v31 = vadd.f32 1.0, %v3905_v60  ;;  %v1852_v1 = vadd.f32 1.0, %v5806_v0  ;;  %v1841_v0 = vadd.f32 1.0, %v5722_v27 }
 0x2b6   : > { %v3909_v56 = vpop.eup %3908  ;;  %3934 = vrcp.f32 %v1873_v40  ;;  %v1875_v18 = vadd.f32 1.0, %v3907_v55  ;;  %v1857_v55 = vadd.f32 1.0, %v5834_v28  ;;  %v1848_v28 = vadd.f32 1.0, %v5794_v41 }
 0x2b7   : > { %v3911_v30 = vpop.eup %3910  ;;  %3936 = vrcp.f32 %v1874_v48  ;;  %v1868_v12 = vadd.f32 1.0, %v3909_v56  ;;  %v1860_v48 = vadd.f32 1.0, %v5838_v44  ;;  %v1849_v44 = vadd.f32 1.0, %v5800_v39 }
 0x2b8   : > { %v3913_v24 = vpop.eup %3912  ;;  %3938 = vrcp.f32 %v1875_v18  ;;  %v1877_v20 = vadd.f32 1.0, %v3911_v30  ;;  %v1853_v18 = vadd.f32 1.0, %v5812_v6  ;;  %v1844_v6 = vadd.f32 1.0, %v5725_v53 }
 0x2b9   : > { %v5852_v54 = vpop.eup %3914  ;;  %3940 = vrcp.f32 %v1876_v50  ;;  %v1864_v58 = vadd.f32 1.0, %v3913_v24  ;;  %v1856_v50 = vadd.f32 1.0, %v5823_v32  ;;  %v1845_v32 = vadd.f32 1.0, %v5739_v13 }
 0x2ba   : > { %v5854_v33 = vpop.eup %3916  ;;  %3942 = vrcp.f32 %v1877_v20  ;;  %v1837_v13 = vadd.f32 1.0, %v5708_v15  ;;  %v1836_v27 = vadd.f32 1.0, %v5699_v23 }
 0x2bb   : > { %v5856_v62 = vpop.eup %3918  ;;  %3944 = vrcp.f32 %v1872_v31 }
 0x2bc   : > { %v5858_v40 = vpop.eup %3920  ;;  %3946 = vrcp.f32 %v1869_v38 }
 0x2bd   : > { %v5861_v45 = vpop.eup %3922  ;;  %3948 = vrcp.f32 %v1868_v12 }
 0x2be   : > { %v3925_v60 = vpop.eup %3924  ;;  %3950 = vrcp.f32 %v1865_v4 }
 0x2bf   : > { %v3927_v36 = vpop.eup %3926  ;;  %3952 = vrcp.f32 %v1864_v58  ;;  %v1840_v58 = vadd.f32 1.0, %v5715_v14 }
 0x2c0   : > { %v3929_v56 = vpop.eup %3928  ;;  %3954 = vrcp.f32 %v1861_v35  ;;  %v1994_v23 = vmul.f32 %v3927_v36, %v5760_v22  ;;  %v1990_v22 = vmul.f32 %v5861_v45, %v5750_v51  ;;  %v1986_v51 = vmul.f32 %v5856_v62, %v5713_v9  ;;  %v7091_v9 = vld [vmem:[#allocation30_spill] sm:$0xff]  ;;  %v7092_v62 = vld [vmem:[#allocation21_spill] sm:$0xff] }
 0x2c1   : > { %v3931_v30 = vpop.eup %3930  ;;  %3956 = vrcp.f32 %v1860_v48  ;;  %v1995_v15 = vmul.f32 %v3929_v56, %v5763_v2  ;;  %v1991_v2 = vmul.f32 %v3925_v60, %v5756_v5  ;;  %v1824_v60 = vadd.f32 1.0, %v5579_v26 }
 0x2c2   : > { %v3933_v31 = vpop.eup %3932  ;;  %3958 = vrcp.f32 %v1857_v55  ;;  %v1821_v45 = vadd.f32 1.0, %v5572_v16 }
 0x2c3   : > { %v3935_v24 = vpop.eup %3934  ;;  %3960 = vrcp.f32 %v1856_v50  ;;  %v1999_v48 = vmul.f32 %v3933_v31, %v5786_v49 }
 0x2c4   : > { %v3937_v38 = vpop.eup %3936  ;;  %3962 = vrcp.f32 %v1853_v18  ;;  %v2001_v49 = vmul.f32 %v3935_v24, %v5792_v43  ;;  %v1832_v18 = vadd.f32 1.0, %v5683_v37  ;;  %v1828_v37 = vadd.f32 1.0, %v5600_v7  ;;  %v7096_v24 = vld [vmem:[#allocation63_spill] sm:$0xff] }
 0x2c5   : > { %v3939_v20 = vpop.eup %3938  ;;  %3964 = vrcp.f32 %v1852_v1  ;;  %v2002_v41 = vmul.f32 %v3937_v38, %v5798_v57  ;;  %v1833_v57 = vadd.f32 1.0, %v5692_v46  ;;  %v1829_v46 = vadd.f32 1.0, %v5612_v10  ;;  %v7093_v1 = vld [vmem:[#allocation24_spill] sm:$0xff]  ;;  %v7098_v38 = vld [vmem:[#allocation14_spill] sm:$0xff] }
 0x2c6   : > { %v3941_v12 = vpop.eup %3940  ;;  %3966 = vrcp.f32 %v1849_v44  ;;  %v2003_v4 = vmul.f32 %v3939_v20, %v5816_v19  ;;  %v1998_v19 = vmul.f32 %v3931_v30, %v5774_v63  ;;  %v1825_v10 = vadd.f32 1.0, %v5588_v17  ;;  %v7099_v20 = vld [vmem:[#allocation8_spill] sm:$0xff] }
 0x2c7   : > { %v3943_v39 = vpop.eup %3942  ;;  %3968 = vrcp.f32 %v1848_v28  ;;  %v2004_v14 = vmul.f32 %v3941_v12, %v5804_v8  ;;  %v1817_v31 = vadd.f32 1.0, %v7093_v1  ;;  %v1816_v28 = vadd.f32 1.0, %v7096_v24  ;;  %v7125_v1 = vld [vmem:[#allocation41_spill] sm:$0xff] }
 0x2c8   : > { %v3945_v35 = vpop.eup %3944  ;;  %3970 = vrcp.f32 %v1845_v32  ;;  %v2005_v53 = vmul.f32 %v3943_v39, %v5827_v3  ;;  %2120 = vmatprep.subr.mxu0 %v2003_v4  ;;  %v7101_v4 = vld [vmem:[#allocation15_spill] sm:$0xff]  ;;  %v7102_v39 = vld [vmem:[#allocation46_spill] sm:$0xff] }
 0x2c9   : > { %v3947_v55 = vpop.eup %3946  ;;  %3972 = vrcp.f32 %v1844_v6  ;;  %2121 = vmatpush1.msra.mxu0 %v2002_v41  ;;  %v2000_v63 = vmul.f32 %v3945_v35, %v5809_v29  ;;  %v7103_v35 = vld [vmem:[#allocation13_spill] sm:$0xff] }
 0x2ca   : > { %v3949_v50 = vpop.eup %3948  ;;  %3974 = vrcp.f32 %v1841_v0  ;;  %2281 = vmatprep.subr.mxu1 %v2005_v53  ;;  %2122 = vmatprep.subr.mxu0 %v1999_v48  ;;  %v1997_v43 = vmul.f32 %v3947_v55, %v5780_v61  ;;  %v1987_v61 = vmul.f32 %v5858_v40, %v5730_v59  ;;  %v1983_v59 = vmul.f32 %v5854_v33, %v5697_v11  ;;  %v7094_v11 = vld [vmem:[#allocation11_spill] sm:$0xff]  ;;  %v7100_v0 = vld [vmem:[#allocation12_spill] sm:$0xff]  ;;  %v7105_v53 = vld [vmem:[#allocation9_spill] sm:$0xff] }
 0x2cb   : > { %v3951_v3 = vpop.eup %3950  ;;  %3976 = vrcp.f32 %v1840_v58  ;;  %2282 = vmatpush1.msra.mxu1 %v2004_v14  ;;  %2123 = vmatpush1.msra.mxu0 %v1998_v19  ;;  %v1996_v29 = vmul.f32 %v3949_v50, %v5820_v21  ;;  %v1820_v40 = vadd.f32 1.0, %v5563_v42  ;;  %v7095_v33 = vld [vmem:[#allocation43_spill] sm:$0xff]  ;;  %v7106_v19 = vld [vmem:[#allocation53_spill] sm:$0xff] }
 0x2cc   : > { %v3953_v8 = vpop.eup %3952  ;;  %3978 = vrcp.f32 %v1837_v13  ;;  %2283 = vmatprep.subr.mxu1 %v2001_v49  ;;  %2124 = vmatprep.subr.mxu0 %v1995_v15  ;;  %v1993_v5 = vmul.f32 %v3951_v3, %v5768_v52  ;;  %v7104_v13 = vld [vmem:[#allocation16_spill] sm:$0xff]  ;;  %v7107_v14 = vld [vmem:[#allocation17_spill] sm:$0xff] }
 0x2cd   : > { %v3955_v56 = vpop.eup %3954  ;;  %3980 = vrcp.f32 %v1836_v27  ;;  %2284 = vmatpush1.msra.mxu1 %v2000_v63  ;;  %2125 = vmatpush1.msra.mxu0 %v1994_v23  ;;  %v1992_v21 = vmul.f32 %v3953_v8, %v5831_v47  ;;  %v1982_v47 = vmul.f32 %v5852_v54, %v7091_v9  ;;  %v7097_v54 = vld [vmem:[#allocation50_spill] sm:$0xff]  ;;  %v1974_v48 = vmul.f32 %v7104_v13, %v7103_v35  ;;  %v7109_v3 = vld [vmem:[#allocation64_spill] sm:$0xff] }
 0x2ce   : > { %v3957_v36 = vpop.eup %3956  ;;  %3982 = vrcp.f32 %v1833_v57  ;;  %2285 = vmatprep.subr.mxu1 %v1997_v43  ;;  %2126 = vmatprep.subr.mxu0 %v1991_v2  ;;  %v1989_v52 = vmul.f32 %v3955_v56, %v5737_v25  ;;  %v1979_v25 = vmul.f32 %v5850_v34, %v7094_v11  ;;  %v1978_v32 = vmul.f32 %v7098_v38, %v7097_v54  ;;  %v7108_v57 = vld [vmem:[#allocation32_spill] sm:$0xff]  ;;  %v7112_v2 = vld [vmem:[#allocation26_spill] sm:$0xff]  ;;  %v7113_v43 = vld [vmem:[#allocation19_spill] sm:$0xff] }
 0x2cf   : > { %v3959_v7 = vpop.eup %3958  ;;  %3984 = vrcp.f32 %v1832_v18  ;;  %2286 = vmatpush1.msra.mxu1 %v1996_v29  ;;  %2127 = vmatpush1.msra.mxu0 %v1990_v22  ;;  %v1988_v30 = vmul.f32 %v3957_v36, %v7092_v62  ;;  %v1975_v34 = vmul.f32 %v7101_v4, %v7100_v0  ;;  %v1971_v50 = vmul.f32 %v7107_v14, %v7106_v19  ;;  %v7110_v18 = vld [vmem:[#allocation18_spill] sm:$0xff]  ;;  %v7111_v63 = vld [vmem:[#allocation48_spill] sm:$0xff] }
 0x2d0   : > { %v3961_v17 = vpop.eup %3960  ;;  %3986 = vrcp.f32 %v1829_v46  ;;  %2287 = vmatprep.subr.mxu1 %v1993_v5  ;;  %2128 = vmatprep.subr.mxu0 %v1987_v61  ;;  %v1985_v44 = vmul.f32 %v3959_v7, %v7095_v33  ;;  %v1970_v23 = vmul.f32 %v7110_v18, %v7109_v3  ;;  %v1967_v56 = vmul.f32 %v7113_v43, %v7112_v2  ;;  %v7115_v36 = vld [vmem:[#allocation54_spill] sm:$0xff]  ;;  %v7117_v5 = vld [vmem:[#allocation39_spill] sm:$0xff] }
 0x2d1   : > { %v3963_v26 = vpop.eup %3962  ;;  %3988 = vrcp.f32 %v1828_v37  ;;  %2288 = vmatpush1.msra.mxu1 %v1992_v21  ;;  %2129 = vmatpush1.msra.mxu0 %v1986_v51  ;;  %v1984_v6 = vmul.f32 %v3961_v17, %v7099_v20  ;;  %v7114_v37 = vld [vmem:[#allocation59_spill] sm:$0xff]  ;;  %v7118_v51 = vld [vmem:[#allocation65_spill] sm:$0xff]  ;;  %v7119_v21 = vld [vmem:[#allocation6_spill] sm:$0xff] }
 0x2d2   : > { %v3965_v16 = vpop.eup %3964  ;;  %3990 = vrcp.f32 %v1825_v10  ;;  %2289 = vmatprep.subr.mxu1 %v1989_v52  ;;  %2130 = vmatprep.subr.mxu0 %v1983_v59  ;;  %v1981_v58 = vmul.f32 %v3963_v26, %v7102_v39  ;;  %v7116_v10 = vld [vmem:[#allocation40_spill] sm:$0xff]  ;;  %v1963_v17 = vmul.f32 %v7119_v21, %v7118_v51  ;;  %v7121_v26 = vld [vmem:[#allocation27_spill] sm:$0xff]  ;;  %v7126_v11 = vld [vmem:[#allocation42_spill] sm:$0xff] }
 0x2d3   : > { %v3967_v42 = vpop.eup %3966  ;;  %3992 = vrcp.f32 %v1824_v60  ;;  %2290 = vmatpush1.msra.mxu1 %v1988_v30  ;;  %2131 = vmatpush1.msra.mxu0 %v1982_v47  ;;  %v1980_v55 = vmul.f32 %v3965_v16, %v7105_v53  ;;  %v1966_v61 = vmul.f32 %v7116_v10, %v7115_v36  ;;  %v7123_v47 = vld [vmem:[#allocation23_spill] sm:$0xff]  ;;  %v7131_v20 = vld [vmem:[#allocation10_spill] sm:$0xff]  ;;  %v7137_v53 = vld [vmem:[#allocation49_spill] sm:$0xff] }
 0x2d4   : > { %v3969_v12 = vpop.eup %3968  ;;  %3994 = vrcp.f32 %v1821_v45  ;;  %2291 = vmatprep.subr.mxu1 %v1985_v44  ;;  %2132 = vmatprep.subr.mxu0 %v1979_v25  ;;  %v1977_v15 = vmul.f32 %v3967_v42, %v7108_v57  ;;  %v7120_v45 = vld [vmem:[#allocation60_spill] sm:$0xff]  ;;  %v7124_v16 = vld [vmem:[#allocation55_spill] sm:$0xff]  ;;  %v7127_v44 = vld [vmem:[#allocation66_spill] sm:$0xff] }
 0x2d5   : > { %v3971_v41 = vpop.eup %3970  ;;  %3996 = vrcp.f32 %v1820_v40  ;;  %2292 = vmatpush1.msra.mxu1 %v1984_v6  ;;  %2133 = vmatpush1.msra.mxu0 %v1978_v32  ;;  %v1976_v8 = vmul.f32 %v3969_v12, %v7111_v63  ;;  %v7122_v40 = vld [vmem:[#allocation20_spill] sm:$0xff]  ;;  %v7128_v42 = vld [vmem:[#allocation7_spill] sm:$0xff]  ;;  %v7130_v32 = vld [vmem:[#allocation33_spill] sm:$0xff] }
 0x2d6   : > { %v3973_v27 = vpop.eup %3972  ;;  %3998 = vrcp.f32 %v1817_v31  ;;  %2293 = vmatprep.subr.mxu1 %v1981_v58  ;;  %2134 = vmatprep.subr.mxu0 %v1975_v34  ;;  %v1973_v22 = vmul.f32 %v3971_v41, %v7114_v37  ;;  %v1962_v9 = vmul.f32 %v7122_v40, %v7121_v26  ;;  %v1959_v31 = vmul.f32 %v7125_v1, %v7124_v16  ;;  %v7132_v12 = vld [vmem:[#allocation52_spill] sm:$0xff]  ;;  %v7133_v34 = vld [vmem:[#allocation58_spill] sm:$0xff]  ;;  %v7135_v41 = vld [vmem:[#allocation25_spill] sm:$0xff] }
 0x2d7   : > { %v3975_v49 = vpop.eup %3974  ;;  %4000 = vrcp.f32 %v1816_v28  ;;  %2294 = vmatpush1.msra.mxu1 %v1980_v55  ;;  %2135 = vmatpush1.msra.mxu0 %v1974_v48  ;;  %v1972_v7 = vmul.f32 %v3973_v27, %v7117_v5  ;;  %v1958_v24 = vmul.f32 %v7128_v42, %v7127_v44  ;;  %v7129_v28 = vld [vmem:[#allocation62_spill] sm:$0xff]  ;;  %v1955_v6 = vmul.f32 %v7131_v20, %v7130_v32  ;;  %v7136_v48 = vld [vmem:[#allocation69_spill] sm:$0xff]  ;;  %v7138_v27 = vld [vmem:[#allocation28_spill] sm:$0xff] }
 0x2d8   : > { %v3977_v46 = vpop.eup %3976  ;;  %2295 = vmatprep.subr.mxu1 %v1977_v15  ;;  %2136 = vmatprep.subr.mxu0 %v1971_v50  ;;  %v1969_v59 = vmul.f32 %v3975_v49, %v7120_v45  ;;  %v7134_v39 = vld [vmem:[#allocation34_spill] sm:$0xff]  ;;  %v1951_v55 = vmul.f32 %v7137_v53, %v7136_v48  ;;  %v7139_v50 = vld [vmem:[#allocation45_spill] sm:$0xff]  ;;  %v7140_v57 = vld [vmem:[#allocation36_spill] sm:$0xff] }
 0x2d9   : > { %v3979_v29 = vpop.eup %3978  ;;  %2296 = vmatpush1.msra.mxu1 %v1976_v8  ;;  %2137 = vmatpush1.msra.mxu0 %v1970_v23  ;;  %v1968_v62 = vmul.f32 %v3977_v46, %v7123_v47  ;;  %v1954_v58 = vmul.f32 %v7134_v39, %v7133_v34  ;;  %v1950_v15 = vmul.f32 %v7140_v57, %v7139_v50  ;;  %v7141_v49 = vld [vmem:[#allocation56_spill] sm:$0xff]  ;;  %v7142_v23 = vld [vmem:[#allocation35_spill] sm:$0xff]  ;;  %v7143_v63 = vld [vmem:[#allocation37_spill] sm:$0xff] }
 0x2da   : > { %v3981_v60 = vpop.eup %3980  ;;  %2297 = vmatprep.subr.mxu1 %v1973_v22  ;;  %2138 = vmatprep.subr.mxu0 %v1967_v56  ;;  %v1965_v25 = vmul.f32 %v3979_v29, %v7126_v11  ;;  %v1947_v8 = vmul.f32 %v7143_v63, %v7142_v23  ;;  %v7144_v46 = vld [vmem:[#allocation67_spill] sm:$0xff]  ;;  %v7145_v56 = vld [vmem:[#allocation61_spill] sm:$0xff]  ;;  %v7149_v5 = vld [vmem:[#allocation38_spill] sm:$0xff] }
 0x2db   : > { %v3983_v52 = vpop.eup %3982  ;;  %2298 = vmatpush1.msra.mxu1 %v1972_v7  ;;  %2139 = vmatpush1.msra.mxu0 %v1966_v61  ;;  %v1964_v54 = vmul.f32 %v3981_v60, %v7129_v28  ;;  %v7146_v37 = vld [vmem:[#allocation51_spill] sm:$0xff]  ;;  %v7147_v29 = vld [vmem:[#allocation29_spill] sm:$0xff]  ;;  %v7148_v61 = vld [vmem:[#allocation70_spill] sm:$0xff] }
 0x2dc   : > { %v3985_v30 = vpop.eup %3984  ;;  %2299 = vmatprep.subr.mxu1 %v1969_v59  ;;  %2140 = vmatprep.subr.mxu0 %v1963_v17  ;;  %v1961_v0 = vmul.f32 %v3983_v52, %v7132_v12  ;;  %v1946_v22 = vmul.f32 %v7146_v37, %v7145_v56  ;;  %v1943_v7 = vmul.f32 %v7149_v5, %v7148_v61  ;;  %v7150_v60 = vld [vmem:[#allocation31_spill] sm:$0xff]  ;;  %v7152_v17 = vld [vmem:[#allocation22_spill] sm:$0xff]  ;;  %v7153_v59 = vld [vmem:[#allocation57_spill] sm:$0xff]  ;;  %v6055_v12 = vpop.permute.xlu1 %2112 }
 0x2dd   : > { %v3987_v33 = vpop.eup %3986  ;;  %2300 = vmatpush1.msra.mxu1 %v1968_v62  ;;  %2141 = vmatpush1.msra.mxu0 %v1962_v9  ;;  %v1960_v35 = vmul.f32 %v3985_v30, %v7135_v41  ;;  %v7151_v21 = vld [vmem:[#allocation47_spill] sm:$0xff]  ;;  %v3400_v26 = vld [vmem:[%s6753_s3 + $0x80] sm:$0xff]  ;;  %v7156_v30 = vmov 0.0   ;;  %v3401_v16 = vld [vmem:[%s6753_s3 + $0x88] sm:$0xff] }
 0x2de   : > { %v3989_v38 = vpop.eup %3988  ;;  %2301 = vmatprep.subr.mxu1 %v1965_v25  ;;  %2142 = vmatprep.subr.mxu0 %v1959_v31  ;;  %v1957_v19 = vmul.f32 %v3987_v33, %v7138_v27  ;;  %v1942_v45 = vmul.f32 %v7152_v17, %v7151_v21  ;;  %v7154_v40 = vld [vmem:[#allocation68_spill] sm:$0xff]  ;;  %v3402_v1 = vld [vmem:[%s6753_s3 + $0x90] sm:$0xff]  ;;  %v3403_v31 = vld [vmem:[%s6753_s3 + $0x98] sm:$0xff] }
 0x2df   : > { %v3991_v4 = vpop.eup %3990  ;;  %2302 = vmatpush1.msra.mxu1 %v1964_v54  ;;  %2143 = vmatpush1.msra.mxu0 %v1958_v24  ;;  %v1956_v3 = vmul.f32 %v3989_v38, %v7141_v49  ;;  %v7155_v47 = vld [vmem:[#allocation44_spill] sm:$0xff]  ;;  %v3405_v25 = vld [vmem:[%s6753_s3 + $0xa8] sm:$0xff]  ;;  %v3406_v33 = vld [vmem:[%s6753_s3 + $0xb0] sm:$0xff] }
 0x2e0   : > { %v3993_v13 = vpop.eup %3992  ;;  %2303 = vmatprep.subr.mxu1 %v1961_v0  ;;  %2144 = vmatprep.subr.mxu0 %v1955_v6  ;;  %v1953_v2 = vmul.f32 %v3991_v4, %v7144_v46  ;;  %v3404_v11 = vld [vmem:[%s6753_s3 + $0xa0] sm:$0xff]  ;;  %v3407_v44 = vld [vmem:[%s6753_s3 + $0xb8] sm:$0xff]  ;;  %v3409_v24 = vld [vmem:[%s6753_s3 + $0xc8] sm:$0xff]  ;;  %v6057_v0 = vpop.permute.xlu0 %2117 }
 0x2e1   : > { %v3995_v14 = vpop.eup %3994  ;;  %2304 = vmatpush1.msra.mxu1 %v1960_v35  ;;  %2145 = vmatpush1.msra.mxu0 %v1954_v58  ;;  %v1952_v36 = vmul.f32 %v3993_v13, %v7147_v29  ;;  %v3408_v42 = vld [vmem:[%s6753_s3 + $0xc0] sm:$0xff]  ;;  %v3410_v28 = vld [vmem:[%s6753_s3 + $0xd0] sm:$0xff]  ;;  %v3411_v54 = vld [vmem:[%s6753_s3 + $0xd8] sm:$0xff]  ;;  %v6059_v4 = vpop.permute.xlu1 %2102 }
 0x2e2   : > { %v3997_v18 = vpop.eup %3996  ;;  %2305 = vmatprep.subr.mxu1 %v1957_v19  ;;  %2146 = vmatprep.subr.mxu0 %v1951_v55  ;;  %v1949_v51 = vmul.f32 %v3995_v14, %v7150_v60  ;;  %v3412_v38 = vld [vmem:[%s6753_s3 + $0xe0] sm:$0xff]  ;;  %v3413_v32 = vld [vmem:[%s6753_s3 + $0xe8] sm:$0xff]  ;;  %v3414_v20 = vld [vmem:[%s6753_s3 + $0xf0] sm:$0xff] }
 0x2e3   : > { %v3999_v43 = vpop.eup %3998  ;;  %2306 = vmatpush1.msra.mxu1 %v1956_v3  ;;  %2147 = vmatpush1.msra.mxu0 %v1950_v15  ;;  %v1948_v52 = vmul.f32 %v3997_v18, %v7153_v59  ;;  %v3415_v6 = vld [vmem:[%s6753_s3 + $0xf8] sm:$0xff] }
 0x2e4   : > { %v4001_v10 = vpop.eup %4000  ;;  %2307 = vmatprep.subr.mxu1 %v1953_v2  ;;  %2148 = vmatprep.subr.mxu0 %v1947_v8  ;;  %v1945_v9 = vmul.f32 %v3999_v43, %v7154_v40  ;;  %v6061_v34 = vpop.permute.xlu0 %2107 }
 0x2e5   : > { %2308 = vmatpush1.msra.mxu1 %v1952_v36  ;;  %2149 = vmatpush1.msra.mxu0 %v1946_v22  ;;  %v1944_v62 = vmul.f32 %v4001_v10, %v7155_v47  ;;  %v6063_v39 = vpop.permute.xlu1 %2092 }
 0x2e6   : > { %2309 = vmatprep.subr.mxu1 %v1949_v51  ;;  %2150 = vmatprep.subr.mxu0 %v1943_v7 }
 0x2e7   : > { %2310 = vmatpush1.msra.mxu1 %v1948_v52  ;;  %2151 = vmatpush1.msra.mxu0 %v1942_v45 }
 0x2e8   : > { %2311 = vmatprep.subr.mxu1 %v1945_v9  ;;  %2185 = vmatmul.mubr.f32.vlgmr.msra.gmra.mxu0 %v3400_v26  ;;  %v6065_v58 = vpop.permute.xlu0 %2097 }
 0x2e9   : > { %2312 = vmatpush1.msra.mxu1 %v1944_v62  ;;  %2190 = vmatprep.mubr.f32.mxu0 %v7156_v30  ;;  %v6067_v35 = vpop.permute.xlu1 %2082 }
 0x2ea   : > { %2346 = vmatmul.mubr.f32.vlgmr.msra.gmra.mxu1 %v3400_v26 }
 0x2eb   : > { %2351 = vmatprep.mubr.f32.mxu1 %v7156_v30 }
 0x2ec   : > { %2191 = vmatmul.mubr.f32.gmra.mxu0 %v3401_v16  ;;  %v6069_v53 = vpop.permute.xlu0 %2087 }
 0x2ed   : > { %2196 = vmatprep.mubr.f32.mxu0 %v7156_v30  ;;  %v6071_v50 = vpop.permute.xlu1 %2072 }
 0x2ee   : > { %2352 = vmatmul.mubr.f32.gmra.mxu1 %v3401_v16 }
 0x2ef   : > { %2357 = vmatprep.mubr.f32.mxu1 %v7156_v30 }
 0x2f0   : > { %2197 = vmatmul.mubr.f32.gmra.mxu0 %v3402_v1  ;;  %v6073_v49 = vpop.permute.xlu0 %2077 }
 0x2f1   : > { %2202 = vmatprep.mubr.f32.mxu0 %v7156_v30  ;;  %v6075_v8 = vpop.permute.xlu1 %2062 }
 0x2f2   : > { %2358 = vmatmul.mubr.f32.gmra.mxu1 %v3402_v1 }
 0x2f3   : > { %2363 = vmatprep.mubr.f32.mxu1 %v7156_v30 }
 0x2f4   : > { %2203 = vmatmul.mubr.f32.gmra.mxu0 %v3403_v31  ;;  %v6077_v43 = vpop.permute.xlu0 %2067 }
 0x2f5   : > { %2208 = vmatprep.mubr.f32.mxu0 %v7156_v30  ;;  %v2053_v36 = vpop.permute.xlu1 %2052 }
 0x2f6   : > { %2364 = vmatmul.mubr.f32.gmra.mxu1 %v3403_v31 }
 0x2f7   : > { %2369 = vmatprep.mubr.f32.mxu1 %v7156_v30 }
 0x2f8   : > { %2209 = vmatmul.mubr.f32.gmra.mxu0 %v3404_v11  ;;  %v6089_v61 = vpop.permute.xlu0 %2057 }
 0x2f9   : > { %2214 = vmatprep.mubr.f32.mxu0 %v7156_v30  ;;  %v2043_v60 = vpop.permute.xlu1 %2042 }
 0x2fa   : > { %2370 = vmatmul.mubr.f32.gmra.mxu1 %v3404_v11 }
 0x2fb   : > { %2375 = vmatprep.mubr.f32.mxu1 %v7156_v30 }
 0x2fc   : > { %2215 = vmatmul.mubr.f32.gmra.mxu0 %v3405_v25  ;;  %v2048_v17 = vpop.permute.xlu0 %2047 }
 0x2fd   : > { %2220 = vmatprep.mubr.f32.mxu0 %v7156_v30 }
 0x2fe   : > { %2376 = vmatmul.mubr.f32.gmra.mxu1 %v3405_v25 }
 0x2ff   : > { %2381 = vmatprep.mubr.f32.mxu1 %v7156_v30 }
 0x300   : > { %2221 = vmatmul.mubr.f32.gmra.mxu0 %v3406_v33 }
 0x301   : > { %2226 = vmatprep.mubr.f32.mxu0 %v7156_v30 }
 0x302   : > { %2382 = vmatmul.mubr.f32.gmra.mxu1 %v3406_v33 }
 0x303   : > { %2387 = vmatprep.mubr.f32.mxu1 %v7156_v30 }
 0x304   : > { %2227 = vmatmul.mubr.f32.gmra.mxu0 %v3407_v44 }
 0x305   : > { %2232 = vmatprep.mubr.f32.mxu0 %v7156_v30 }
 0x306   : > { %2388 = vmatmul.mubr.f32.gmra.mxu1 %v3407_v44 }
 0x307   : > { %2393 = vmatprep.mubr.f32.mxu1 %v7156_v30 }
 0x308   : > { %2233 = vmatmul.mubr.f32.gmra.mxu0 %v3408_v42 }
 0x309   : > { %2238 = vmatprep.mubr.f32.mxu0 %v7156_v30 }
 0x30a   : > { %2394 = vmatmul.mubr.f32.gmra.mxu1 %v3408_v42 }
 0x30b   : > { %2399 = vmatprep.mubr.f32.mxu1 %v7156_v30 }
 0x30c   : > { %2239 = vmatmul.mubr.f32.gmra.mxu0 %v3409_v24 }
 0x30d   : > { %2244 = vmatprep.mubr.f32.mxu0 %v7156_v30 }
 0x30e   : > { %2400 = vmatmul.mubr.f32.gmra.mxu1 %v3409_v24 }
 0x30f   : > { %2405 = vmatprep.mubr.f32.mxu1 %v7156_v30 }
 0x310   : > { %2245 = vmatmul.mubr.f32.gmra.mxu0 %v3410_v28 }
 0x311   : > { %2250 = vmatprep.mubr.f32.mxu0 %v7156_v30 }
 0x312   : > { %2406 = vmatmul.mubr.f32.gmra.mxu1 %v3410_v28 }
 0x313   : > { %2411 = vmatprep.mubr.f32.mxu1 %v7156_v30 }
 0x314   : > { %2251 = vmatmul.mubr.f32.gmra.mxu0 %v3411_v54 }
 0x315   : > { %2256 = vmatprep.mubr.f32.mxu0 %v7156_v30 }
 0x316   : > { %2412 = vmatmul.mubr.f32.gmra.mxu1 %v3411_v54 }
 0x317   : > { %2417 = vmatprep.mubr.f32.mxu1 %v7156_v30 }
 0x318   : > { %2257 = vmatmul.mubr.f32.gmra.mxu0 %v3412_v38 }
 0x319   : > { %2262 = vmatprep.mubr.f32.mxu0 %v7156_v30 }
 0x31a   : > { %2418 = vmatmul.mubr.f32.gmra.mxu1 %v3412_v38 }
 0x31b   : > { %2423 = vmatprep.mubr.f32.mxu1 %v7156_v30 }
 0x31c   : > { %2263 = vmatmul.mubr.f32.gmra.mxu0 %v3413_v32 }
 0x31d   : > { %2268 = vmatprep.mubr.f32.mxu0 %v7156_v30 }
 0x31e   : > { %2424 = vmatmul.mubr.f32.gmra.mxu1 %v3413_v32 }
 0x31f   : > { %2429 = vmatprep.mubr.f32.mxu1 %v7156_v30 }
 0x320   : > { %2269 = vmatmul.mubr.f32.gmra.mxu0 %v3414_v20 }
 0x321   : > { %2274 = vmatprep.mubr.f32.mxu0 %v7156_v30 }
 0x322   : > { %2430 = vmatmul.mubr.f32.gmra.mxu1 %v3414_v20 }
 0x323   : > { %2435 = vmatprep.mubr.f32.mxu1 %v7156_v30 }
 0x324   : > { %2275 = vmatmul.mubr.f32.gmra.mxu0 %v3415_v6 }
 0x325   : > { %2918 = vmatprep.mubr.f32.mxu0 %v7156_v30 }
 0x326   : > { %2436 = vmatmul.mubr.f32.gmra.mxu1 %v3415_v6 }
 0x327   : > { %3007 = vmatprep.mubr.f32.mxu1 %v7156_v30 }
 0x3a8   : > { %v2186_v41 = vpop.f32.mrf.mxu0 }
 0x3a9   : > { %v6097_v21 = vadd.f32 %v2186_v41, %v2043_v60 }
 0x3aa   : > { %v2347_v13 = vpop.f32.mrf.mxu1  ;;  %v2188_v48 = vpop.f32.mrf.mxu0 }
 0x3ab   : > { %7157 = vst [vmem:[#allocation30_spill] sm:$0xff] %v6097_v21  ;;  %v6099_v45 = vadd.f32 %v2188_v48, %v2043_v60  ;;  %v2442_v40 = vsub.f32 0.0, %v6097_v21  ;;  %v6132_v20 = vadd.f32 %v2347_v13, %v2043_v60 }
 0x3ac   : > { %v2349_v55 = vpop.f32.mrf.mxu1  ;;  %v2192_v27 = vpop.f32.mrf.mxu0 }
 0x3ad   : > { %7158 = vst [vmem:[#allocation21_spill] sm:$0xff] %v6099_v45  ;;  %v6101_v59 = vadd.f32 %v2192_v27, %v2048_v17  ;;  %v2443_v9 = vsub.f32 0.0, %v6099_v45  ;;  %v2506_v31 = vmul.f32 1.442695, %v2442_v40  ;;  %7165 = vst [vmem:[#allocation8_spill] sm:$0xff] %v6132_v20  ;;  %v6135_v41 = vadd.f32 %v2349_v55, %v2043_v60 }
 0x3ae   : > { %v2353_v19 = vpop.f32.mrf.mxu1  ;;  %v2194_v14 = vpop.f32.mrf.mxu0  ;;  %v2444_v40 = vsub.f32 0.0, %v6132_v20 }
 0x3af   : > { %7159 = vst [vmem:[#allocation24_spill] sm:$0xff] %v6101_v59  ;;  %v2446_v47 = vsub.f32 0.0, %v6101_v59  ;;  %v6112_v16 = vadd.f32 %v2194_v14, %v2048_v17  ;;  %v2508_v25 = vmul.f32 1.442695, %v2443_v9  ;;  %4002 = vpow2.f32 %v2506_v31  ;;  %7166 = vst [vmem:[#allocation12_spill] sm:$0xff] %v6135_v41 }
 0x3b0   : > { %v2355_v57 = vpop.f32.mrf.mxu1  ;;  %v2198_v15 = vpop.f32.mrf.mxu0  ;;  %v6140_v14 = vadd.f32 %v2353_v19, %v2048_v17  ;;  %v2445_v60 = vsub.f32 0.0, %v6135_v41 }
 0x3b1   : > { %7160 = vst [vmem:[#allocation11_spill] sm:$0xff] %v6112_v16  ;;  %v6116_v11 = vadd.f32 %v2198_v15, %v2053_v36  ;;  %v2514_v44 = vmul.f32 1.442695, %v2446_v47  ;;  %v2447_v28 = vsub.f32 0.0, %v6112_v16  ;;  %4004 = vpow2.f32 %v2508_v25 }
 0x3b2   : > { %v2359_v3 = vpop.f32.mrf.mxu1  ;;  %v2200_v18 = vpop.f32.mrf.mxu0  ;;  %7167 = vst [vmem:[#allocation15_spill] sm:$0xff] %v6140_v14  ;;  %v2448_v25 = vsub.f32 0.0, %v6140_v14 }
 0x3b3   : > { %7161 = vst [vmem:[#allocation43_spill] sm:$0xff] %v6116_v11  ;;  %v6118_v33 = vadd.f32 %v2200_v18, %v2053_v36  ;;  %v2450_v38 = vsub.f32 0.0, %v6116_v11  ;;  %4006 = vpow2.f32 %v2514_v44  ;;  %v2516_v15 = vmul.f32 1.442695, %v2447_v28 }
 0x3b4   : > { %v2361_v23 = vpop.f32.mrf.mxu1  ;;  %v2204_v63 = vpop.f32.mrf.mxu0  ;;  %v6148_v9 = vadd.f32 %v2359_v3, %v2053_v36  ;;  %v2510_v28 = vmul.f32 1.442695, %v2444_v40 }
 0x3b5   : > { %7162 = vst [vmem:[#allocation63_spill] sm:$0xff] %v6118_v33  ;;  %v6121_v42 = vadd.f32 %v2204_v63, %v6089_v61  ;;  %v2451_v6 = vsub.f32 0.0, %v6118_v33  ;;  %v6144_v63 = vadd.f32 %v2355_v57, %v2048_v17  ;;  %v6151_v47 = vadd.f32 %v2361_v23, %v2053_v36 }
 0x3b6   : > { %v2365_v46 = vpop.f32.mrf.mxu1  ;;  %v2206_v2 = vpop.f32.mrf.mxu0  ;;  %7169 = vst [vmem:[#allocation13_spill] sm:$0xff] %v6148_v9  ;;  %4008 = vpow2.f32 %v2516_v15  ;;  %v2512_v23 = vmul.f32 1.442695, %v2445_v60 }
 0x3b7   : > { %7163 = vst [vmem:[#allocation50_spill] sm:$0xff] %v6121_v42  ;;  %v6130_v32 = vadd.f32 %v2206_v2, %v6089_v61  ;;  %v2454_v48 = vsub.f32 0.0, %v6121_v42  ;;  %7168 = vst [vmem:[#allocation46_spill] sm:$0xff] %v6144_v63  ;;  %v2522_v2 = vmul.f32 1.442695, %v2450_v38  ;;  %v6157_v57 = vadd.f32 %v2365_v46, %v6089_v61 }
 0x3b8   : > { %v6079_v56 = vpop.f32.mrf.mxu1  ;;  %v6081_v37 = vpop.f32.mrf.mxu0  ;;  %v2524_v55 = vmul.f32 1.442695, %v2451_v6  ;;  %7170 = vst [vmem:[#allocation16_spill] sm:$0xff] %v6151_v47  ;;  %v2449_v44 = vsub.f32 0.0, %v6144_v63  ;;  %v2452_v38 = vsub.f32 0.0, %v6148_v9  ;;  %v2453_v36 = vsub.f32 0.0, %v6151_v47 }
 0x3b9   : > { %7164 = vst [vmem:[#allocation14_spill] sm:$0xff] %v6130_v32  ;;  %v2455_v13 = vsub.f32 0.0, %v6130_v32  ;;  %v2530_v31 = vmul.f32 1.442695, %v2454_v48  ;;  %7171 = vst [vmem:[#allocation9_spill] sm:$0xff] %v6157_v57  ;;  %4010 = vpow2.f32 %v2522_v2  ;;  %v2456_v46 = vsub.f32 0.0, %v6157_v57 }
 0x3ba   : > { %v6083_v22 = vpop.f32.mrf.mxu1  ;;  %v6085_v29 = vpop.f32.mrf.mxu0  ;;  %4012 = vpow2.f32 %v2524_v55  ;;  %v2518_v48 = vmul.f32 1.442695, %v2448_v25  ;;  %v6169_v15 = vadd.f32 %v6079_v56, %v6089_v61  ;;  %v2520_v2 = vmul.f32 1.442695, %v2449_v44 }
 0x3bb   : > { %v2532_v3 = vmul.f32 1.442695, %v2455_v13  ;;  %4014 = vpow2.f32 %v2530_v31  ;;  %v6175_v13 = vadd.f32 %v6081_v37, %v6075_v8  ;;  %v2526_v55 = vmul.f32 1.442695, %v2452_v38 }
 0x3bc   : > { %v6087_v10 = vpop.f32.mrf.mxu1  ;;  %v6091_v5 = vpop.f32.mrf.mxu0  ;;  %7172 = vst [vmem:[#allocation53_spill] sm:$0xff] %v6169_v15  ;;  %v6179_v60 = vadd.f32 %v6085_v29, %v6075_v8  ;;  %v2528_v25 = vmul.f32 1.442695, %v2453_v36  ;;  %v2534_v37 = vmul.f32 1.442695, %v2456_v46 }
 0x3bd   : > { %4016 = vpow2.f32 %v2532_v3  ;;  %7173 = vst [vmem:[#allocation17_spill] sm:$0xff] %v6175_v13  ;;  %v4003_v40 = vpop.eup %4002  ;;  %v6183_v56 = vadd.f32 %v6091_v5, %v6077_v43  ;;  %v2457_v3 = vsub.f32 0.0, %v6169_v15  ;;  %v2458_v29 = vsub.f32 0.0, %v6175_v13 }
 0x3be   : > { %v6093_v7 = vpop.f32.mrf.mxu1  ;;  %v6095_v51 = vpop.f32.mrf.mxu0  ;;  %4018 = vpow2.f32 %v2510_v28  ;;  %7174 = vst [vmem:[#allocation32_spill] sm:$0xff] %v6179_v60  ;;  %v2634_v38 = vadd.f32 1.0, %v4003_v40 }
 0x3bf   : > { %v4005_v31 = vpop.eup %4004  ;;  %4020 = vpow2.f32 %v2512_v23  ;;  %7175 = vst [vmem:[#allocation64_spill] sm:$0xff] %v6183_v56  ;;  %v2459_v23 = vsub.f32 0.0, %v6179_v60  ;;  %v2462_v5 = vsub.f32 0.0, %v6183_v56  ;;  %v6197_v46 = vadd.f32 %v6095_v51, %v6077_v43 }
 0x3c0   : > { %v6103_v52 = vpop.f32.mrf.mxu1  ;;  %v6105_v26 = vpop.f32.mrf.mxu0  ;;  %4022 = vpow2.f32 %v2518_v48  ;;  %v2635_v30 = vadd.f32 1.0, %v4005_v31  ;;  %v2536_v48 = vmul.f32 1.442695, %v2457_v3  ;;  %v2538_v31 = vmul.f32 1.442695, %v2458_v29 }
 0x3c1   : > { %v4007_v44 = vpop.eup %4006  ;;  %4024 = vpow2.f32 %v2520_v2  ;;  %7176 = vst [vmem:[#allocation18_spill] sm:$0xff] %v6197_v46  ;;  %v2540_v14 = vmul.f32 1.442695, %v2459_v23 }
 0x3c2   : > { %v6110_v62 = vpop.f32.mrf.mxu1  ;;  %v6114_v1 = vpop.f32.mrf.mxu0  ;;  %4026 = vpow2.f32 %v2526_v55  ;;  %v2638_v36 = vadd.f32 1.0, %v4007_v44 }
 0x3c3   : > { %4028 = vpow2.f32 %v2528_v25  ;;  %v4009_v2 = vpop.eup %4008  ;;  %v6203_v25 = vadd.f32 %v6105_v26, %v6071_v50  ;;  %v6207_v3 = vadd.f32 %v6114_v1, %v6071_v50  ;;  %v6257_v57 = vadd.f32 %v6110_v62, %v6071_v50 }
 0x3c4   : > { %v6123_v24 = vpop.f32.mrf.mxu1  ;;  %v6126_v54 = vpop.f32.mrf.mxu0  ;;  %4030 = vpow2.f32 %v2534_v37  ;;  %v2546_v37 = vmul.f32 1.442695, %v2462_v5  ;;  %v2639_v9 = vadd.f32 1.0, %v4009_v2  ;;  %v6224_v5 = vadd.f32 %v6083_v22, %v6075_v8 }
 0x3c5   : > { %4032 = vrcp.f32 %v2634_v38  ;;  %7177 = vst [vmem:[#allocation48_spill] sm:$0xff] %v6203_v25  ;;  %7178 = vst [vmem:[#allocation26_spill] sm:$0xff] %v6207_v3  ;;  %v2463_v38 = vsub.f32 0.0, %v6197_v46  ;;  %v6240_v22 = vadd.f32 %v6093_v7, %v6077_v43  ;;  %v2468_v16 = vsub.f32 0.0, %v6257_v57 }
 0x3c6   : > { %v6138_v27 = vpop.f32.mrf.mxu1  ;;  %v6142_v18 = vpop.f32.mrf.mxu0  ;;  %4034 = vrcp.f32 %v2635_v30  ;;  %v6214_v30 = vadd.f32 %v6126_v54, %v6073_v49  ;;  %7181 = vst [vmem:[#allocation54_spill] sm:$0xff] %v6224_v5  ;;  %v2460_v7 = vsub.f32 0.0, %v6224_v5  ;;  %7188 = vst [vmem:[#allocation20_spill] sm:$0xff] %v6257_v57 }
 0x3c7   : > { %v4011_v55 = vpop.eup %4010  ;;  %4036 = vrcp.f32 %v2638_v36  ;;  %v6220_v23 = vadd.f32 %v6142_v18, %v6073_v49  ;;  %v2467_v18 = vsub.f32 0.0, %v6207_v3  ;;  %7185 = vst [vmem:[#allocation6_spill] sm:$0xff] %v6240_v22  ;;  %v6273_v62 = vadd.f32 %v6138_v27, %v6073_v49 }
 0x3c8   : > { %v6153_v19 = vpop.f32.mrf.mxu1  ;;  %v6159_v17 = vpop.f32.mrf.mxu0  ;;  %4038 = vpow2.f32 %v2536_v48  ;;  %7179 = vst [vmem:[#allocation19_spill] sm:$0xff] %v6214_v30  ;;  %v2642_v29 = vadd.f32 1.0, %v4011_v55  ;;  %v2466_v48 = vsub.f32 0.0, %v6203_v25  ;;  %v6231_v55 = vadd.f32 %v6087_v10, %v6075_v8 }
 0x3c9   : > { %v4013_v44 = vpop.eup %4012  ;;  %4040 = vpow2.f32 %v2538_v31  ;;  %7180 = vst [vmem:[#allocation59_spill] sm:$0xff] %v6220_v23  ;;  %v2470_v47 = vsub.f32 0.0, %v6214_v30  ;;  %v6249_v10 = vadd.f32 %v6103_v52, %v6077_v43  ;;  %v6264_v43 = vadd.f32 %v6123_v24, %v6071_v50  ;;  %7190 = vst [vmem:[#allocation55_spill] sm:$0xff] %v6273_v62 }
 0x3ca   : > { %v6164_v6 = vpop.f32.mrf.mxu1  ;;  %v6171_v20 = vpop.f32.mrf.mxu0  ;;  %v2643_v36 = vadd.f32 1.0, %v4013_v44  ;;  %4042 = vpow2.f32 %v2540_v14  ;;  %7183 = vst [vmem:[#allocation39_spill] sm:$0xff] %v6231_v55  ;;  %v2548_v14 = vmul.f32 1.442695, %v2463_v38  ;;  %v2554_v38 = vmul.f32 1.442695, %v2466_v48 }
 0x3cb   : > { %v4015_v63 = vpop.eup %4014  ;;  %4044 = vpow2.f32 %v2546_v37  ;;  %7187 = vst [vmem:[#allocation27_spill] sm:$0xff] %v6249_v10  ;;  %v2471_v37 = vsub.f32 0.0, %v6220_v23  ;;  %7189 = vst [vmem:[#allocation23_spill] sm:$0xff] %v6264_v43  ;;  %v2464_v48 = vsub.f32 0.0, %v6240_v22  ;;  %v2562_v15 = vmul.f32 1.442695, %v2470_v47 }
 0x3cc   : > { %v6185_v61 = vpop.f32.mrf.mxu1  ;;  %v6188_v28 = vpop.f32.mrf.mxu0  ;;  %v2646_v54 = vadd.f32 1.0, %v4015_v63  ;;  %4046 = vrcp.f32 %v2639_v9  ;;  %v2465_v50 = vsub.f32 0.0, %v6249_v10  ;;  %v2542_v5 = vmul.f32 1.442695, %v2460_v7 }
 0x3cd   : > { %v4017_v1 = vpop.eup %4016  ;;  %4048 = vrcp.f32 %v2642_v29  ;;  %v2461_v29 = vsub.f32 0.0, %v6231_v55  ;;  %v2564_v24 = vmul.f32 1.442695, %v2471_v37  ;;  %v2469_v27 = vsub.f32 0.0, %v6264_v43 }
 0x3ce   : > { %v6193_v41 = vpop.f32.mrf.mxu1  ;;  %v6199_v40 = vpop.f32.mrf.mxu0  ;;  %v2647_v8 = vadd.f32 1.0, %v4017_v1  ;;  %v2556_v1 = vmul.f32 1.442695, %v2467_v18  ;;  %v2472_v37 = vsub.f32 0.0, %v6273_v62  ;;  %v6293_v7 = vadd.f32 %v6159_v17, %v6067_v35 }
 0x3cf   : > { %v6227_v2 = vpop.eup %4018  ;;  %4050 = vrcp.f32 %v2643_v36  ;;  %v2544_v47 = vmul.f32 1.442695, %v2461_v29  ;;  %v2552_v29 = vmul.f32 1.442695, %v2465_v50  ;;  %v2560_v17 = vmul.f32 1.442695, %v2469_v27 }
 0x3d0   : > { %v6209_v51 = vpop.f32.mrf.mxu1  ;;  %v6216_v26 = vpop.f32.mrf.mxu0  ;;  %7182 = vst [vmem:[#allocation40_spill] sm:$0xff] %v6227_v2  ;;  %7194 = vst [vmem:[#allocation7_spill] sm:$0xff] %v6293_v7  ;;  %v6309_v22 = vadd.f32 %v6188_v28, %v6069_v53  ;;  %v6321_v27 = vadd.f32 %v6199_v40, %v6069_v53 }
 0x3d1   : > { %v6236_v44 = vpop.eup %4020  ;;  %4052 = vrcp.f32 %v2646_v54 }
 0x3d2   : > { %v6234_v31 = vpop.f32.mrf.mxu1  ;;  %7184 = vst [vmem:[#allocation65_spill] sm:$0xff] %v6236_v44  ;;  %v6243_v63 = vpop.f32.mrf.mxu0  ;;  %7197 = vst [vmem:[#allocation10_spill] sm:$0xff] %v6309_v22 }
 0x3d3   : > { %v6245_v21 = vpop.eup %4022  ;;  %4054 = vpow2.f32 %v2548_v14 }
 0x3d4   : > { %7186 = vst [vmem:[#allocation60_spill] sm:$0xff] %v6245_v21  ;;  %v6252_v9 = vpop.eup %4024  ;;  %v6266_v52 = vpop.f32.mrf.mxu1  ;;  %4056 = vrcp.f32 %v2647_v8  ;;  %v2550_v8 = vmul.f32 1.442695, %v2464_v48  ;;  %v2558_v48 = vmul.f32 1.442695, %v2468_v16 }
 0x3d5   : > { %v6259_v45 = vpop.eup %4026  ;;  %v6275_v54 = vpop.f32.mrf.mxu0  ;;  %4058 = vpow2.f32 %v2554_v38  ;;  %v6386_v43 = vadd.f32 %v6266_v52, %v6063_v39 }
 0x3d6   : > { %v6268_v36 = vpop.eup %4028  ;;  %4060 = vpow2.f32 %v2556_v1  ;;  %v6286_v55 = vpop.f32.mrf.mxu1  ;;  %v6301_v1 = vadd.f32 %v6153_v19, %v6073_v49  ;;  %v2566_v49 = vmul.f32 1.442695, %v2472_v37  ;;  %v2474_v19 = vsub.f32 0.0, %v6293_v7 }
 0x3d7   : > { %v6277_v59 = vpop.eup %4030  ;;  %4062 = vpow2.f32 %v2562_v15  ;;  %v6295_v38 = vpop.f32.mrf.mxu0  ;;  %v6305_v15 = vadd.f32 %v6171_v20, %v6067_v35  ;;  %7208 = vst [vmem:[#allocation35_spill] sm:$0xff] %v6386_v43 }
 0x3d8   : > { %v6280_v18 = vpop.eup %4032  ;;  %4064 = vpow2.f32 %v2564_v24  ;;  %7195 = vst [vmem:[#allocation62_spill] sm:$0xff] %v6301_v1  ;;  %v6311_v50 = vpop.f32.mrf.mxu1  ;;  %v2570_v42 = vmul.f32 1.442695, %v2474_v19  ;;  %v6412_v56 = vadd.f32 %v6295_v38, %v6065_v58 }
 0x3d9   : > { %7191 = vst [vmem:[#allocation41_spill] sm:$0xff] %v6280_v18  ;;  %v6283_v14 = vpop.eup %4034  ;;  %4066 = vpow2.f32 %v2542_v5  ;;  %7196 = vst [vmem:[#allocation33_spill] sm:$0xff] %v6305_v15  ;;  %v6314_v5 = vpop.f32.mrf.mxu0  ;;  %v6426_v38 = vadd.f32 %v6311_v50, %v6065_v58 }
 0x3da   : > { %7192 = vst [vmem:[#allocation42_spill] sm:$0xff] %v6283_v14  ;;  %v6288_v11 = vpop.eup %4036  ;;  %4068 = vpow2.f32 %v2544_v47  ;;  %v2473_v47 = vsub.f32 0.0, %v6301_v1 }
 0x3db   : > { %7193 = vst [vmem:[#allocation66_spill] sm:$0xff] %v6288_v11  ;;  %v6297_v18 = vpop.eup %4038  ;;  %4070 = vpow2.f32 %v2550_v8  ;;  %v2475_v8 = vsub.f32 0.0, %v6305_v15  ;;  %v6333_v40 = vpop.f32.mrf.mxu0  ;;  %7213 = vst [vmem:[#allocation29_spill] sm:$0xff] %v6426_v38 }
 0x3dc   : > { %v4041_v14 = vpop.eup %4040  ;;  %4072 = vpow2.f32 %v2552_v29 }
 0x3dd   : > { %v4043_v11 = vpop.eup %4042  ;;  %v2650_v20 = vadd.f32 1.0, %v4041_v14  ;;  %4074 = vpow2.f32 %v2558_v48  ;;  %v6329_v14 = vpop.f32.mrf.mxu1  ;;  %v2479_v48 = vsub.f32 0.0, %v6321_v27 }
 0x3de   : > { %v4045_v24 = vpop.eup %4044  ;;  %v2651_v33 = vadd.f32 1.0, %v4043_v11  ;;  %4076 = vpow2.f32 %v2560_v17  ;;  %v2568_v11 = vmul.f32 1.442695, %v2473_v47  ;;  %v6340_v17 = vadd.f32 %v6164_v6, %v6067_v35 }
 0x3df   : > { %v6316_v16 = vpop.eup %4046  ;;  %v2654_v10 = vadd.f32 1.0, %v4045_v24  ;;  %4078 = vpow2.f32 %v2566_v49  ;;  %v2572_v24 = vmul.f32 1.442695, %v2475_v8  ;;  %v6344_v49 = vadd.f32 %v6185_v61, %v6067_v35 }
 0x3e0   : > { %7198 = vst [vmem:[#allocation52_spill] sm:$0xff] %v6316_v16  ;;  %v6323_v28 = vpop.eup %4048  ;;  %v2478_v16 = vsub.f32 0.0, %v6309_v22  ;;  %4080 = vrcp.f32 %v2650_v20  ;;  %7203 = vst [vmem:[#allocation49_spill] sm:$0xff] %v6340_v17  ;;  %v2580_v8 = vmul.f32 1.442695, %v2479_v48 }
 0x3e1   : > { %7199 = vst [vmem:[#allocation58_spill] sm:$0xff] %v6323_v28  ;;  %v6326_v37 = vpop.eup %4050  ;;  %4082 = vrcp.f32 %v2651_v33  ;;  %7204 = vst [vmem:[#allocation28_spill] sm:$0xff] %v6344_v49  ;;  %v6350_v33 = vadd.f32 %v6193_v41, %v6069_v53  ;;  %v2477_v32 = vsub.f32 0.0, %v6344_v49 }
 0x3e2   : > { %7200 = vst [vmem:[#allocation34_spill] sm:$0xff] %v6326_v37  ;;  %v6331_v29 = vpop.eup %4052  ;;  %4084 = vrcp.f32 %v2654_v10  ;;  %v2578_v19 = vmul.f32 1.442695, %v2478_v16  ;;  %v6356_v10 = vadd.f32 %v6209_v51, %v6069_v53  ;;  %v2476_v16 = vsub.f32 0.0, %v6340_v17 }
 0x3e3   : > { %7201 = vst [vmem:[#allocation25_spill] sm:$0xff] %v6331_v29  ;;  %v4055_v57 = vpop.eup %4054  ;;  %v6346_v29 = vpop.f32.mrf.mxu1  ;;  %4086 = vpow2.f32 %v2570_v42  ;;  %7205 = vst [vmem:[#allocation45_spill] sm:$0xff] %v6350_v33  ;;  %v6361_v42 = vadd.f32 %v6216_v26, %v6063_v39  ;;  %v2480_v48 = vsub.f32 0.0, %v6350_v33  ;;  %v6377_v26 = vadd.f32 %v6243_v63, %v6063_v39 }
 0x3e4   : > { %v6336_v28 = vpop.eup %4056  ;;  %v2655_v47 = vadd.f32 1.0, %v4055_v57  ;;  %4088 = vpow2.f32 %v2568_v11  ;;  %7206 = vst [vmem:[#allocation36_spill] sm:$0xff] %v6356_v10  ;;  %v6368_v11 = vadd.f32 %v6234_v31, %v6063_v39  ;;  %v2481_v31 = vsub.f32 0.0, %v6356_v10 }
 0x3e5   : > { %7202 = vst [vmem:[#allocation69_spill] sm:$0xff] %v6336_v28  ;;  %v4059_v37 = vpop.eup %4058  ;;  %v6352_v28 = vpop.f32.mrf.mxu0  ;;  %4090 = vpow2.f32 %v2572_v24  ;;  %v2482_v13 = vsub.f32 0.0, %v6361_v42  ;;  %v6393_v63 = vadd.f32 %v6275_v54, %v6065_v58  ;;  %v6400_v39 = vadd.f32 %v6286_v55, %v6065_v58 }
 0x3e6   : > { %v4061_v20 = vpop.eup %4060  ;;  %v2658_v61 = vadd.f32 1.0, %v4059_v37  ;;  %4092 = vpow2.f32 %v2578_v19  ;;  %7207 = vst [vmem:[#allocation56_spill] sm:$0xff] %v6368_v11  ;;  %v6370_v53 = vpop.f32.mrf.mxu1  ;;  %v2483_v60 = vsub.f32 0.0, %v6377_v26  ;;  %v6433_v33 = vadd.f32 %v6314_v5, %v6059_v4 }
 0x3e7   : > { %v4063_v6 = vpop.eup %4062  ;;  %v2659_v57 = vadd.f32 1.0, %v4061_v20  ;;  %4094 = vrcp.f32 %v2655_v47  ;;  %v6379_v24 = vpop.f32.mrf.mxu0  ;;  %7209 = vst [vmem:[#allocation37_spill] sm:$0xff] %v6400_v39  ;;  %v2586_v17 = vmul.f32 1.442695, %v2482_v13  ;;  %v2488_v49 = vsub.f32 0.0, %v6400_v39 }
 0x3e8   : > { %v4065_v35 = vpop.eup %4064  ;;  %v2662_v37 = vadd.f32 1.0, %v4063_v6  ;;  %4096 = vpow2.f32 %v2580_v8  ;;  %v2574_v6 = vmul.f32 1.442695, %v2476_v16  ;;  %v2576_v8 = vmul.f32 1.442695, %v2477_v32  ;;  %v6402_v52 = vpop.f32.mrf.mxu1 }
 0x3e9   : > { %v6363_v41 = vpop.eup %4066  ;;  %v2663_v19 = vadd.f32 1.0, %v4065_v35  ;;  %4098 = vrcp.f32 %v2658_v61  ;;  %v2484_v35 = vsub.f32 0.0, %v6368_v11  ;;  %v2582_v16 = vmul.f32 1.442695, %v2480_v48  ;;  %v2270_v54 = vpop.f32.mrf.mxu0 }
 0x3ea   : > { %v6372_v51 = vpop.eup %4068  ;;  %4100 = vrcp.f32 %v2659_v57  ;;  %v2584_v57 = vmul.f32 1.442695, %v2481_v31  ;;  %v2485_v32 = vsub.f32 0.0, %v6386_v43  ;;  %v2588_v25 = vmul.f32 1.442695, %v2483_v60 }
 0x3eb   : > { %v6381_v20 = vpop.eup %4070  ;;  %4102 = vrcp.f32 %v2662_v37  ;;  %v2486_v37 = vsub.f32 0.0, %v6393_v63  ;;  %v2590_v46 = vmul.f32 1.442695, %v2484_v35  ;;  %v2598_v60 = vmul.f32 1.442695, %v2488_v49 }
 0x3ec   : > { %v6388_v47 = vpop.eup %4072  ;;  %4104 = vrcp.f32 %v2663_v19  ;;  %v6420_v19 = vpop.f32.mrf.mxu1  ;;  %v6437_v58 = vadd.f32 %v6333_v40, %v6059_v4  ;;  %v6448_v49 = vadd.f32 %v6379_v24, %v6061_v34 }
 0x3ed   : > { %v6395_v62 = vpop.eup %4074  ;;  %4106 = vpow2.f32 %v2574_v6  ;;  %v2272_v6 = vpop.f32.mrf.mxu0  ;;  %v2594_v35 = vmul.f32 1.442695, %v2486_v37 }
 0x3ee   : > { %v6404_v61 = vpop.eup %4076  ;;  %4108 = vpow2.f32 %v2576_v8  ;;  %v2433_v50 = vpop.f32.mrf.mxu1 }
 0x3ef   : > { %v6407_v1 = vpop.eup %4078  ;;  %4110 = vpow2.f32 %v2582_v16  ;;  %v2276_v37 = vpop.f32.mrf.mxu0 }
 0x3f0   : > { %v6414_v55 = vpop.eup %4080  ;;  %4112 = vpow2.f32 %v2584_v57  ;;  %v6464_v30 = vadd.f32 %v2276_v37, %v6057_v0 }
 0x3f1   : > { %7210 = vst [vmem:[#allocation67_spill] sm:$0xff] %v6414_v55  ;;  %v6417_v48 = vpop.eup %4082  ;;  %v2592_v55 = vmul.f32 1.442695, %v2485_v32  ;;  %4114 = vpow2.f32 %v2586_v17  ;;  %v6442_v17 = vadd.f32 %v6352_v28, %v6061_v34 }
 0x3f2   : > { %7211 = vst [vmem:[#allocation61_spill] sm:$0xff] %v6417_v48  ;;  %v6422_v31 = vpop.eup %4084  ;;  %v2487_v48 = vsub.f32 0.0, %v6412_v56  ;;  %4116 = vpow2.f32 %v2590_v46 }
 0x3f3   : > { %7212 = vst [vmem:[#allocation51_spill] sm:$0xff] %v6422_v31  ;;  %v4087_v13 = vpop.eup %4086  ;;  %4118 = vpow2.f32 %v2588_v25  ;;  %v2489_v31 = vsub.f32 0.0, %v6426_v38  ;;  %v2490_v25 = vsub.f32 0.0, %v6433_v33 }
 0x3f4   : > { %v6429_v8 = vpop.eup %4088  ;;  %v2666_v32 = vadd.f32 1.0, %v4087_v13  ;;  %4120 = vpow2.f32 %v2592_v55  ;;  %v2596_v46 = vmul.f32 1.442695, %v2487_v48  ;;  %v6452_v13 = vadd.f32 %v2272_v6, %v6055_v12  ;;  %v2437_v48 = vpop.f32.mrf.mxu1 }
 0x3f5   : > { %v4091_v16 = vpop.eup %4090  ;;  %4122 = vpow2.f32 %v2594_v35  ;;  %v6458_v55 = vadd.f32 %v2270_v54, %v6055_v12  ;;  %v2494_v35 = vsub.f32 0.0, %v6442_v17  ;;  %v2278_v6 = vpop.f32.mrf.mxu0  ;;  %v6470_v54 = vadd.f32 %v2433_v50, %v6055_v12 }
 0x3f6   : > { %v4093_v57 = vpop.eup %4092  ;;  %v2667_v3 = vadd.f32 1.0, %v4091_v16  ;;  %4124 = vpow2.f32 %v2598_v60  ;;  %v2600_v16 = vmul.f32 1.442695, %v2489_v31  ;;  %v2495_v60 = vsub.f32 0.0, %v6448_v49  ;;  %v2439_v23 = vpop.f32.mrf.mxu1 }
 0x3f7   : > { %v6444_v5 = vpop.eup %4094  ;;  %v2670_v28 = vadd.f32 1.0, %v4093_v57  ;;  %4126 = vrcp.f32 %v2666_v32  ;;  %v2602_v32 = vmul.f32 1.442695, %v2490_v25  ;;  %v2499_v31 = vsub.f32 0.0, %v6452_v13 }
 0x3f8   : > { %7214 = vst [vmem:[#allocation70_spill] sm:$0xff] %v6444_v5  ;;  %v4097_v40 = vpop.eup %4096  ;;  %v2491_v5 = vsub.f32 0.0, %v6437_v58  ;;  %4128 = vpow2.f32 %v2596_v46  ;;  %v2498_v46 = vsub.f32 0.0, %v6458_v55  ;;  %v2610_v25 = vmul.f32 1.442695, %v2494_v35 }
 0x3f9   : > { %v6454_v10 = vpop.eup %4098  ;;  %v2671_v57 = vadd.f32 1.0, %v4097_v40  ;;  %4130 = vrcp.f32 %v2667_v3  ;;  %v6482_v40 = vadd.f32 %v2278_v6, %v6057_v0  ;;  %v6488_v3 = vadd.f32 %v6346_v29, %v6059_v4 }
 0x3fa   : > { %7215 = vst [vmem:[#allocation38_spill] sm:$0xff] %v6454_v10  ;;  %v6460_v24 = vpop.eup %4100  ;;  %4132 = vrcp.f32 %v2670_v28  ;;  %v2612_v28 = vmul.f32 1.442695, %v2495_v60  ;;  %v2501_v6 = vsub.f32 0.0, %v6470_v54  ;;  %v6502_v29 = vadd.f32 %v6402_v52, %v6061_v34 }
 0x3fb   : > { %7216 = vst [vmem:[#allocation31_spill] sm:$0xff] %v6460_v24  ;;  %v6466_v11 = vpop.eup %4102  ;;  %v6476_v24 = vadd.f32 %v2437_v48, %v6057_v0  ;;  %4134 = vpow2.f32 %v2600_v16  ;;  %v2502_v48 = vsub.f32 0.0, %v6464_v30  ;;  %v2620_v16 = vmul.f32 1.442695, %v2499_v31 }
 0x3fc   : > { %7217 = vst [vmem:[#allocation47_spill] sm:$0xff] %v6466_v11  ;;  %v6472_v10 = vpop.eup %4104  ;;  %v2604_v11 = vmul.f32 1.442695, %v2491_v5  ;;  %4136 = vrcp.f32 %v2671_v57  ;;  %v6495_v5 = vadd.f32 %v6420_v19, %v6055_v12  ;;  %v6507_v57 = vadd.f32 %v6370_v53, %v6061_v34 }
 0x3fd   : > { %7218 = vst [vmem:[#allocation22_spill] sm:$0xff] %v6472_v10  ;;  %v6478_v37 = vpop.eup %4106  ;;  %4138 = vpow2.f32 %v2602_v32  ;;  %v2504_v35 = vsub.f32 0.0, %v6476_v24  ;;  %v2618_v12 = vmul.f32 1.442695, %v2498_v46  ;;  %v2503_v19 = vsub.f32 0.0, %v6482_v40 }
 0x3fe   : > { %v6484_v50 = vpop.eup %4108  ;;  %4140 = vpow2.f32 %v2604_v11  ;;  %v2493_v32 = vsub.f32 0.0, %v6488_v3  ;;  %v2626_v7 = vmul.f32 1.442695, %v2502_v48  ;;  %v6514_v52 = vadd.f32 %v2439_v23, %v6057_v0 }
 0x3ff   : > { %v6491_v10 = vpop.eup %4110  ;;  %4142 = vpow2.f32 %v2610_v25  ;;  %v6518_v11 = vadd.f32 %v6329_v14, %v6059_v4  ;;  %v2500_v34 = vsub.f32 0.0, %v6495_v5  ;;  %v2624_v53 = vmul.f32 1.442695, %v2501_v6 }
 0x400   : > { %v6498_v2 = vpop.eup %4112  ;;  %4144 = vpow2.f32 %v2612_v28  ;;  %v2497_v44 = vsub.f32 0.0, %v6502_v29  ;;  %v2630_v39 = vmul.f32 1.442695, %v2504_v35  ;;  %v2496_v48 = vsub.f32 0.0, %v6507_v57 }
 0x401   : > { %v4115_v43 = vpop.eup %4114  ;;  %4146 = vpow2.f32 %v2620_v16  ;;  %v2628_v0 = vmul.f32 1.442695, %v2503_v19  ;;  %v2608_v15 = vmul.f32 1.442695, %v2493_v32  ;;  %v2505_v4 = vsub.f32 0.0, %v6514_v52 }
 0x402   : > { %v6510_v60 = vpop.eup %4116  ;;  %4148 = vpow2.f32 %v2618_v12  ;;  %v2492_v28 = vsub.f32 0.0, %v6518_v11  ;;  %v2622_v6 = vmul.f32 1.442695, %v2500_v34  ;;  %v2616_v16 = vmul.f32 1.442695, %v2497_v44 }
 0x403   : > { %v4119_v31 = vpop.eup %4118  ;;  %4150 = vpow2.f32 %v2626_v7  ;;  %v2614_v38 = vmul.f32 1.442695, %v2496_v48  ;;  %v2632_v19 = vmul.f32 1.442695, %v2505_v4  ;;  %v2674_v22 = vadd.f32 1.0, %v4115_v43 }
 0x404   : > { %v6521_v46 = vpop.eup %4120  ;;  %4152 = vpow2.f32 %v2624_v53  ;;  %v2606_v32 = vmul.f32 1.442695, %v2492_v28  ;;  %v2675_v53 = vadd.f32 1.0, %v4119_v31 }
 0x405   : > { %v4123_v25 = vpop.eup %4122  ;;  %4154 = vpow2.f32 %v2630_v39 }
 0x406   : > { %v6525_v23 = vpop.eup %4124  ;;  %4156 = vpow2.f32 %v2628_v0  ;;  %v2678_v39 = vadd.f32 1.0, %v4123_v25 }
 0x407   : > { %v6528_v14 = vpop.eup %4126  ;;  %4158 = vpow2.f32 %v2608_v15 }
 0x408   : > { %7219 = vst [vmem:[#allocation57_spill] sm:$0xff] %v6528_v14  ;;  %v4129_v21 = vpop.eup %4128  ;;  %4160 = vpow2.f32 %v2622_v6 }
 0x409   : > { %v6531_v35 = vpop.eup %4130  ;;  %4162 = vpow2.f32 %v2616_v16  ;;  %v2679_v0 = vadd.f32 1.0, %v4129_v21 }
 0x40a   : > { %7220 = vst [vmem:[#allocation68_spill] sm:$0xff] %v6531_v35  ;;  %v6533_v12 = vpop.eup %4132  ;;  %4164 = vpow2.f32 %v2614_v38 }
 0x40b   : > { %7221 = vst [vmem:[#allocation44_spill] sm:$0xff] %v6533_v12  ;;  %v6535_v7 = vpop.eup %4134  ;;  %4166 = vpow2.f32 %v2632_v19 }
 0x40c   : > { %v6537_v14 = vpop.eup %4136  ;;  %4168 = vpow2.f32 %v2606_v32 }
 0x40d   : > { %v4139_v34 = vpop.eup %4138  ;;  %4170 = vrcp.f32 %v2674_v22 }
 0x40e   : > { %v4141_v44 = vpop.eup %4140  ;;  %v2682_v15 = vadd.f32 1.0, %v4139_v34  ;;  %4172 = vrcp.f32 %v2675_v53 }
 0x40f   : > { %v4143_v48 = vpop.eup %4142  ;;  %v2683_v28 = vadd.f32 1.0, %v4141_v44  ;;  %4174 = vrcp.f32 %v2678_v39 }
 0x410   : > { %v4145_v35 = vpop.eup %4144  ;;  %v2686_v12 = vadd.f32 1.0, %v4143_v48  ;;  %4176 = vrcp.f32 %v2679_v0 }
 0x411   : > { %v4147_v4 = vpop.eup %4146  ;;  %4178 = vrcp.f32 %v2682_v15  ;;  %v2687_v22 = vadd.f32 1.0, %v4145_v35 }
 0x412   : > { %v4149_v6 = vpop.eup %4148  ;;  %v2691_v16 = vadd.f32 1.0, %v4147_v4  ;;  %4180 = vrcp.f32 %v2683_v28 }
 0x413   : > { %v4151_v43 = vpop.eup %4150  ;;  %4182 = vrcp.f32 %v2686_v12  ;;  %v2690_v21 = vadd.f32 1.0, %v4149_v6 }
 0x414   : > { %v4153_v31 = vpop.eup %4152  ;;  %v2694_v38 = vadd.f32 1.0, %v4151_v43  ;;  %4184 = vrcp.f32 %v2691_v16 }
 0x415   : > { %v4155_v25 = vpop.eup %4154  ;;  %v2693_v44 = vadd.f32 1.0, %v4153_v31 }
 0x416   : > { %v4157_v19 = vpop.eup %4156  ;;  %4186 = vrcp.f32 %v2694_v38  ;;  %v2696_v48 = vadd.f32 1.0, %v4155_v25 }
 0x417   : > { %v4159_v32 = vpop.eup %4158  ;;  %v2695_v34 = vadd.f32 1.0, %v4157_v19 }
 0x418   : > { %v4161_v53 = vpop.eup %4160  ;;  %v2685_v31 = vadd.f32 1.0, %v4159_v32  ;;  %v2676_v32 = vadd.f32 1.0, %v6510_v60 }
 0x419   : > { %v4163_v39 = vpop.eup %4162  ;;  %4188 = vrcp.f32 %v2695_v34  ;;  %v2692_v15 = vadd.f32 1.0, %v4161_v53  ;;  %v2680_v34 = vadd.f32 1.0, %v6525_v23  ;;  %v2669_v23 = vadd.f32 1.0, %v6484_v50 }
 0x41a   : > { %v4165_v0 = vpop.eup %4164  ;;  %4190 = vrcp.f32 %v2690_v21  ;;  %v2689_v28 = vadd.f32 1.0, %v4163_v39  ;;  %v2681_v21 = vadd.f32 1.0, %v6535_v7  ;;  %v2672_v7 = vadd.f32 1.0, %v6491_v10 }
 0x41b   : > { %v4167_v4 = vpop.eup %4166  ;;  %4192 = vrcp.f32 %v2687_v22  ;;  %v2688_v35 = vadd.f32 1.0, %v4165_v0  ;;  %v2673_v0 = vadd.f32 1.0, %v6498_v2  ;;  %v2664_v10 = vadd.f32 1.0, %v6407_v1 }
 0x41c   : > { %v4169_v43 = vpop.eup %4168  ;;  %4194 = vrcp.f32 %v2693_v44  ;;  %v2697_v12 = vadd.f32 1.0, %v4167_v4  ;;  %v2677_v44 = vadd.f32 1.0, %v6521_v46  ;;  %v2668_v46 = vadd.f32 1.0, %v6478_v37 }
 0x41d   : > { %v6539_v6 = vpop.eup %4170  ;;  %4196 = vrcp.f32 %v2696_v48  ;;  %v2684_v25 = vadd.f32 1.0, %v4169_v43  ;;  %v2657_v1 = vadd.f32 1.0, %v6388_v47 }
 0x41e   : > { %v6541_v16 = vpop.eup %4172  ;;  %4198 = vrcp.f32 %v2697_v12  ;;  %v2665_v12 = vadd.f32 1.0, %v6429_v8  ;;  %v2660_v8 = vadd.f32 1.0, %v6395_v62 }
 0x41f   : > { %v6543_v38 = vpop.eup %4174  ;;  %4200 = vrcp.f32 %v2692_v15 }
 0x420   : > { %v6545_v19 = vpop.eup %4176  ;;  %4202 = vrcp.f32 %v2689_v28 }
 0x421   : > { %v4179_v22 = vpop.eup %4178  ;;  %4204 = vrcp.f32 %v2688_v35 }
 0x422   : > { %v4181_v53 = vpop.eup %4180  ;;  %4206 = vrcp.f32 %v2685_v31  ;;  %v2810_v47 = vmul.f32 %v4179_v22, %v6433_v33  ;;  %v2806_v33 = vmul.f32 %v6543_v38, %v6393_v63  ;;  %v2648_v22 = vadd.f32 1.0, %v6277_v59 }
 0x423   : > { %v4183_v39 = vpop.eup %4182  ;;  %4208 = vrcp.f32 %v2684_v25  ;;  %v2661_v25 = vadd.f32 1.0, %v6404_v61  ;;  %v2802_v63 = vmul.f32 %v6539_v6, %v6361_v42  ;;  %v2644_v38 = vadd.f32 1.0, %v6259_v45  ;;  %v7222_v42 = vld [vmem:[#allocation10_spill] sm:$0xff]  ;;  %v7223_v6 = vld [vmem:[#allocation44_spill] sm:$0xff] }
 0x424   : > { %v4185_v48 = vpop.eup %4184  ;;  %4210 = vrcp.f32 %v2681_v21 }
 0x425   : > { %v4187_v4 = vpop.eup %4186  ;;  %4212 = vrcp.f32 %v2680_v34  ;;  %v2819_v31 = vmul.f32 %v4185_v48, %v6452_v13  ;;  %v2814_v13 = vmul.f32 %v4183_v39, %v6442_v17  ;;  %v2652_v39 = vadd.f32 1.0, %v6363_v41 }
 0x426   : > { %v4189_v15 = vpop.eup %4188  ;;  %4214 = vrcp.f32 %v2677_v44  ;;  %v2822_v2 = vmul.f32 %v4187_v4, %v6464_v30  ;;  %v2811_v44 = vmul.f32 %v4181_v53, %v6437_v58  ;;  %v7224_v53 = vld [vmem:[#allocation29_spill] sm:$0xff] }
 0x427   : > { %v4191_v43 = vpop.eup %4190  ;;  %4216 = vrcp.f32 %v2676_v32  ;;  %v2823_v28 = vmul.f32 %v4189_v15, %v6482_v40  ;;  %v2653_v32 = vadd.f32 1.0, %v6372_v51  ;;  %v2649_v51 = vadd.f32 1.0, %v6297_v18 }
 0x428   : > { %v4193_v60 = vpop.eup %4192  ;;  %4218 = vrcp.f32 %v2673_v0  ;;  %v2818_v37 = vmul.f32 %v4191_v43, %v6458_v55  ;;  %v2656_v55 = vadd.f32 1.0, %v6381_v20  ;;  %v2807_v20 = vmul.f32 %v6545_v19, %v6412_v56  ;;  %v7225_v0 = vld [vmem:[#allocation60_spill] sm:$0xff] }
 0x429   : > { %v4195_v35 = vpop.eup %4194  ;;  %4220 = vrcp.f32 %v2672_v7  ;;  %2854 = vmatprep.subr.mxu0 %v2823_v28  ;;  %v2815_v30 = vmul.f32 %v4193_v60, %v6448_v49  ;;  %v2803_v56 = vmul.f32 %v6541_v16, %v6377_v26  ;;  %v2645_v19 = vadd.f32 1.0, %v6268_v36  ;;  %v7228_v7 = vld [vmem:[#allocation37_spill] sm:$0xff] }
 0x42a   : > { %v4197_v50 = vpop.eup %4196  ;;  %4222 = vrcp.f32 %v2669_v23  ;;  %2855 = vmatpush1.msra.mxu0 %v2822_v2  ;;  %v2821_v17 = vmul.f32 %v4195_v35, %v6470_v54  ;;  %v2799_v26 = vmul.f32 %v6537_v14, %v6321_v27  ;;  %v2641_v16 = vadd.f32 1.0, %v6252_v9  ;;  %v7226_v27 = vld [vmem:[#allocation33_spill] sm:$0xff]  ;;  %v7227_v14 = vld [vmem:[#allocation68_spill] sm:$0xff] }
 0x42b   : > { %v4199_v40 = vpop.eup %4198  ;;  %4224 = vrcp.f32 %v2668_v46  ;;  %2856 = vmatprep.subr.mxu0 %v2819_v31  ;;  %v2824_v62 = vmul.f32 %v4197_v50, %v6476_v24  ;;  %v2640_v4 = vadd.f32 1.0, %v7225_v0  ;;  %v7229_v23 = vld [vmem:[#allocation65_spill] sm:$0xff]  ;;  %v7230_v46 = vld [vmem:[#allocation7_spill] sm:$0xff] }
 0x42c   : > { %v4201_v21 = vpop.eup %4200  ;;  %4226 = vrcp.f32 %v2665_v12  ;;  %v2825_v34 = vmul.f32 %v4199_v40, %v6514_v52  ;;  %2857 = vmatpush1.msra.mxu0 %v2818_v37  ;;  %v2637_v43 = vadd.f32 1.0, %v7229_v23  ;;  %v7231_v28 = vld [vmem:[#allocation57_spill] sm:$0xff]  ;;  %v7232_v12 = vld [vmem:[#allocation35_spill] sm:$0xff]  ;;  %v7236_v40 = vld [vmem:[#allocation56_spill] sm:$0xff] }
 0x42d   : > { %v4203_v61 = vpop.eup %4202  ;;  %4228 = vrcp.f32 %v2664_v10  ;;  %2858 = vmatprep.subr.mxu0 %v2815_v30  ;;  %v2820_v58 = vmul.f32 %v4201_v21, %v6495_v5  ;;  %v2794_v60 = vmul.f32 %v7231_v28, %v7230_v46  ;;  %v7233_v10 = vld [vmem:[#allocation40_spill] sm:$0xff]  ;;  %v7234_v50 = vld [vmem:[#allocation59_spill] sm:$0xff]  ;;  %v7261_v23 = vld [vmem:[#allocation50_spill] sm:$0xff] }
 0x42e   : > { %v4205_v49 = vpop.eup %4204  ;;  %4230 = vrcp.f32 %v2661_v25  ;;  %2943 = vmatprep.subr.mxu1 %v2825_v34  ;;  %2859 = vmatpush1.msra.mxu0 %v2814_v13  ;;  %v2817_v54 = vmul.f32 %v4203_v61, %v6502_v29  ;;  %v2636_v31 = vadd.f32 1.0, %v7233_v10  ;;  %v7235_v25 = vld [vmem:[#allocation22_spill] sm:$0xff]  ;;  %v7237_v21 = vld [vmem:[#allocation19_spill] sm:$0xff]  ;;  %v7239_v34 = vld [vmem:[#allocation36_spill] sm:$0xff] }
 0x42f   : > { %v4207_v52 = vpop.eup %4206  ;;  %4232 = vrcp.f32 %v2660_v8  ;;  %2944 = vmatpush1.msra.mxu1 %v2824_v62  ;;  %2860 = vmatprep.subr.mxu0 %v2811_v44  ;;  %v2816_v5 = vmul.f32 %v4205_v49, %v6507_v57  ;;  %v2791_v37 = vmul.f32 %v7235_v25, %v7234_v50  ;;  %v7240_v44 = vld [vmem:[#allocation26_spill] sm:$0xff]  ;;  %v7241_v62 = vld [vmem:[#allocation31_spill] sm:$0xff] }
 0x430   : > { %v4209_v24 = vpop.eup %4208  ;;  %4234 = vrcp.f32 %v2657_v1  ;;  %2945 = vmatprep.subr.mxu1 %v2821_v17  ;;  %2861 = vmatpush1.msra.mxu0 %v2810_v47  ;;  %v2813_v29 = vmul.f32 %v4207_v52, %v6488_v3  ;;  %v2798_v3 = vmul.f32 %v7223_v6, %v7222_v42  ;;  %v7238_v1 = vld [vmem:[#allocation47_spill] sm:$0xff]  ;;  %v2787_v49 = vmul.f32 %v7241_v62, %v7240_v44  ;;  %v7243_v52 = vld [vmem:[#allocation48_spill] sm:$0xff] }
 0x431   : > { %v4211_v41 = vpop.eup %4210  ;;  %4236 = vrcp.f32 %v2656_v55  ;;  %2946 = vmatpush1.msra.mxu1 %v2820_v58  ;;  %2862 = vmatprep.subr.mxu0 %v2807_v20  ;;  %v2812_v57 = vmul.f32 %v4209_v24, %v6518_v11  ;;  %v2795_v11 = vmul.f32 %v7227_v14, %v7226_v27  ;;  %v2790_v13 = vmul.f32 %v7238_v1, %v7237_v21  ;;  %v7245_v58 = vld [vmem:[#allocation28_spill] sm:$0xff]  ;;  %v7258_v27 = vld [vmem:[#allocation14_spill] sm:$0xff]  ;;  %v7259_v14 = vld [vmem:[#allocation69_spill] sm:$0xff] }
 0x432   : > { %v4213_v18 = vpop.eup %4212  ;;  %4238 = vrcp.f32 %v2653_v32  ;;  %2947 = vmatprep.subr.mxu1 %v2817_v54  ;;  %2863 = vmatpush1.msra.mxu0 %v2806_v33  ;;  %v2809_v48 = vmul.f32 %v4211_v41, %v7224_v53  ;;  %v7242_v32 = vld [vmem:[#allocation45_spill] sm:$0xff]  ;;  %v7246_v33 = vld [vmem:[#allocation18_spill] sm:$0xff]  ;;  %v7256_v53 = vld [vmem:[#allocation67_spill] sm:$0xff] }
 0x433   : > { %v4215_v59 = vpop.eup %4214  ;;  %4240 = vrcp.f32 %v2652_v39  ;;  %2948 = vmatpush1.msra.mxu1 %v2816_v5  ;;  %2864 = vmatprep.subr.mxu0 %v2803_v56  ;;  %v2808_v15 = vmul.f32 %v4213_v18, %v7228_v7  ;;  %v7244_v39 = vld [vmem:[#allocation38_spill] sm:$0xff]  ;;  %v7249_v18 = vld [vmem:[#allocation64_spill] sm:$0xff]  ;;  %v7263_v28 = vld [vmem:[#allocation27_spill] sm:$0xff] }
 0x434   : > { %v4217_v36 = vpop.eup %4216  ;;  %4242 = vrcp.f32 %v2649_v51  ;;  %2949 = vmatprep.subr.mxu1 %v2813_v29  ;;  %2865 = vmatpush1.msra.mxu0 %v2802_v63  ;;  %v2805_v2 = vmul.f32 %v4215_v59, %v7232_v12  ;;  %v2786_v20 = vmul.f32 %v7244_v39, %v7243_v52  ;;  %v7247_v54 = vld [vmem:[#allocation70_spill] sm:$0xff]  ;;  %v7260_v7 = vld [vmem:[#allocation20_spill] sm:$0xff] }
 0x435   : > { %v4219_v45 = vpop.eup %4218  ;;  %4244 = vrcp.f32 %v2648_v22  ;;  %2950 = vmatpush1.msra.mxu1 %v2812_v57  ;;  %2866 = vmatprep.subr.mxu0 %v2799_v26  ;;  %v2804_v8 = vmul.f32 %v4217_v36, %v7236_v40  ;;  %v2783_v41 = vmul.f32 %v7247_v54, %v7246_v33  ;;  %v7248_v22 = vld [vmem:[#allocation49_spill] sm:$0xff]  ;;  %v7251_v29 = vld [vmem:[#allocation62_spill] sm:$0xff]  ;;  %v7252_v26 = vld [vmem:[#allocation32_spill] sm:$0xff] }
 0x436   : > { %v4221_v9 = vpop.eup %4220  ;;  %4246 = vrcp.f32 %v2645_v19  ;;  %2951 = vmatprep.subr.mxu1 %v2809_v48  ;;  %2867 = vmatpush1.msra.mxu0 %v2798_v3  ;;  %v2801_v61 = vmul.f32 %v4219_v45, %v7239_v34  ;;  %v7250_v19 = vld [vmem:[#allocation51_spill] sm:$0xff]  ;;  %v7253_v57 = vld [vmem:[#allocation61_spill] sm:$0xff]  ;;  %v7268_v40 = vld [vmem:[#allocation58_spill] sm:$0xff] }
 0x437   : > { %v4223_v35 = vpop.eup %4222  ;;  %4248 = vrcp.f32 %v2644_v38  ;;  %2952 = vmatpush1.msra.mxu1 %v2808_v15  ;;  %2868 = vmatprep.subr.mxu0 %v2795_v11  ;;  %v2800_v47 = vmul.f32 %v4221_v9, %v7242_v32  ;;  %v2782_v63 = vmul.f32 %v7250_v19, %v7249_v18  ;;  %v2779_v36 = vmul.f32 %v7253_v57, %v7252_v26  ;;  %v7255_v3 = vld [vmem:[#allocation17_spill] sm:$0xff]  ;;  %v7257_v45 = vld [vmem:[#allocation23_spill] sm:$0xff]  ;;  %v7271_v34 = vld [vmem:[#allocation52_spill] sm:$0xff] }
 0x438   : > { %v4225_v30 = vpop.eup %4224  ;;  %4250 = vrcp.f32 %v2641_v16  ;;  %2953 = vmatprep.subr.mxu1 %v2805_v2  ;;  %2869 = vmatpush1.msra.mxu0 %v2794_v60  ;;  %v2797_v24 = vmul.f32 %v4223_v35, %v7245_v58  ;;  %v7254_v16 = vld [vmem:[#allocation55_spill] sm:$0xff]  ;;  %v2778_v48 = vmul.f32 %v7256_v53, %v7255_v3  ;;  %v2775_v11 = vmul.f32 %v7259_v14, %v7258_v27  ;;  %v7265_v35 = vld [vmem:[#allocation34_spill] sm:$0xff]  ;;  %v2826_v19 = vld [vmem:[%s6755_s5] sm:$0xff] }
 0x439   : > { %v4227_v55 = vpop.eup %4226  ;;  %4252 = vrcp.f32 %v2640_v4  ;;  %2954 = vmatpush1.msra.mxu1 %v2804_v8  ;;  %2870 = vmatprep.subr.mxu0 %v2791_v37  ;;  %v2796_v56 = vmul.f32 %v4225_v30, %v7248_v22  ;;  %v7264_v2 = vld [vmem:[#allocation63_spill] sm:$0xff]  ;;  %v7274_v32 = vld [vmem:[#allocation66_spill] sm:$0xff]  ;;  %v7280_v22 = vld [vmem:[#allocation41_spill] sm:$0xff]  ;;  %v7286_v3 = vmov 0.0  }
 0x43a   : > { %v4229_v17 = vpop.eup %4228  ;;  %4254 = vrcp.f32 %v2637_v43  ;;  %2955 = vmatprep.subr.mxu1 %v2801_v61  ;;  %2871 = vmatpush1.msra.mxu0 %v2790_v13  ;;  %v2793_v59 = vmul.f32 %v4227_v55, %v7251_v29  ;;  %v7262_v43 = vld [vmem:[#allocation25_spill] sm:$0xff]  ;;  %v2771_v10 = vmul.f32 %v7265_v35, %v7264_v2  ;;  %v7267_v37 = vld [vmem:[#allocation43_spill] sm:$0xff]  ;;  %v7272_v55 = vld [vmem:[#allocation54_spill] sm:$0xff]  ;;  %v2847_v2 = vpop.permute.xlu1 %2846 }
 0x43b   : > { %v4231_v51 = vpop.eup %4230  ;;  %4256 = vrcp.f32 %v2636_v31  ;;  %2956 = vmatpush1.msra.mxu1 %v2800_v47  ;;  %2872 = vmatprep.subr.mxu0 %v2787_v49  ;;  %v2792_v42 = vmul.f32 %v4229_v17, %v7254_v16  ;;  %v2774_v46 = vmul.f32 %v7262_v43, %v7261_v23  ;;  %v7266_v31 = vld [vmem:[#allocation6_spill] sm:$0xff]  ;;  %v2770_v8 = vmul.f32 %v7268_v40, %v7267_v37  ;;  %v7269_v30 = vld [vmem:[#allocation39_spill] sm:$0xff]  ;;  %v7273_v49 = vld [vmem:[#allocation24_spill] sm:$0xff] }
 0x43c   : > { %v4233_v5 = vpop.eup %4232  ;;  %2957 = vmatprep.subr.mxu1 %v2797_v24  ;;  %2873 = vmatpush1.msra.mxu0 %v2786_v20  ;;  %v2789_v0 = vmul.f32 %v4231_v51, %v7257_v45  ;;  %v7270_v13 = vld [vmem:[#allocation11_spill] sm:$0xff]  ;;  %v2766_v47 = vmul.f32 %v7274_v32, %v7273_v49  ;;  %v7275_v17 = vld [vmem:[#allocation53_spill] sm:$0xff]  ;;  %v7277_v58 = vld [vmem:[#allocation42_spill] sm:$0xff] }
 0x43d   : > { %v4235_v38 = vpop.eup %4234  ;;  %2958 = vmatpush1.msra.mxu1 %v2796_v56  ;;  %2874 = vmatprep.subr.mxu0 %v2783_v41  ;;  %v2788_v15 = vmul.f32 %v4233_v5, %v7260_v7  ;;  %v2767_v61 = vmul.f32 %v7271_v34, %v7270_v13  ;;  %v7276_v20 = vld [vmem:[#allocation21_spill] sm:$0xff]  ;;  %v7279_v41 = vld [vmem:[#allocation30_spill] sm:$0xff]  ;;  %v7281_v5 = vld [vmem:[#allocation16_spill] sm:$0xff] }
 0x43e   : > { %v4237_v6 = vpop.eup %4236  ;;  %2959 = vmatprep.subr.mxu1 %v2793_v59  ;;  %2875 = vmatpush1.msra.mxu0 %v2782_v63  ;;  %v2785_v60 = vmul.f32 %v4235_v38, %v7263_v28  ;;  %v2763_v24 = vmul.f32 %v7277_v58, %v7276_v20  ;;  %v7278_v51 = vld [vmem:[#allocation9_spill] sm:$0xff]  ;;  %v2762_v56 = vmul.f32 %v7280_v22, %v7279_v41  ;;  %v7283_v26 = vld [vmem:[#allocation46_spill] sm:$0xff] }
 0x43f   : > { %v4239_v4 = vpop.eup %4238  ;;  %2960 = vmatpush1.msra.mxu1 %v2792_v42  ;;  %2876 = vmatprep.subr.mxu0 %v2779_v36  ;;  %v2784_v50 = vmul.f32 %v4237_v6, %v7266_v31  ;;  %v7282_v29 = vld [vmem:[#allocation13_spill] sm:$0xff]  ;;  %v7284_v36 = vld [vmem:[#allocation15_spill] sm:$0xff]  ;;  %v7285_v42 = vld [vmem:[#allocation12_spill] sm:$0xff] }
 0x440   : > { %v4241_v9 = vpop.eup %4240  ;;  %2961 = vmatprep.subr.mxu1 %v2789_v0  ;;  %2877 = vmatpush1.msra.mxu0 %v2778_v48  ;;  %v2781_v21 = vmul.f32 %v4239_v4, %v7269_v30  ;;  %v2827_v53 = vld [vmem:[%s6755_s5 + $0x8] sm:$0xff]  ;;  %v7287_v48 = vld [vmem:[#allocation8_spill] sm:$0xff]  ;;  %v2828_v0 = vld [vmem:[%s6755_s5 + $0x10] sm:$0xff] }
 0x441   : > { %v4243_v12 = vpop.eup %4242  ;;  %2962 = vmatpush1.msra.mxu1 %v2788_v15  ;;  %2878 = vmatprep.subr.mxu0 %v2775_v11  ;;  %v2780_v44 = vmul.f32 %v4241_v9, %v7272_v55  ;;  %v2829_v4 = vld [vmem:[%s6755_s5 + $0x18] sm:$0x1] }
 0x442   : > { %v4245_v25 = vpop.eup %4244  ;;  %2963 = vmatprep.subr.mxu1 %v2785_v60  ;;  %2879 = vmatpush1.msra.mxu0 %v2774_v46  ;;  %v2777_v52 = vmul.f32 %v4243_v12, %v7275_v17  ;;  %v2852_v46 = vpop.permute.xlu0 %2851  ;;  %v3032_v12 = vlaneseq }
 0x443   : > { %v4247_v1 = vpop.eup %4246  ;;  %2964 = vmatpush1.msra.mxu1 %v2784_v50  ;;  %2880 = vmatprep.subr.mxu0 %v2771_v10  ;;  %v2776_v33 = vmul.f32 %v4245_v25, %v7278_v51 }
 0x444   : > { %v4249_v62 = vpop.eup %4248  ;;  %2965 = vmatprep.subr.mxu1 %v2781_v21  ;;  %2881 = vmatpush1.msra.mxu0 %v2770_v8  ;;  %v2773_v18 = vmul.f32 %v4247_v1, %v7281_v5  ;;  %v3033_v8 = vand.u32 127, %v3032_v12 }
 0x445   : > { %v4251_v39 = vpop.eup %4250  ;;  %2966 = vmatpush1.msra.mxu1 %v2780_v44  ;;  %2882 = vmatprep.subr.mxu0 %v2767_v61  ;;  %v2772_v59 = vmul.f32 %v4249_v62, %v7282_v29  ;;  %v2837_v61 = vpop.permute.xlu1 %2836 }
 0x446   : > { %v4253_v54 = vpop.eup %4252  ;;  %2967 = vmatprep.subr.mxu1 %v2777_v52  ;;  %2883 = vmatpush1.msra.mxu0 %v2766_v47  ;;  %v2769_v57 = vmul.f32 %v4251_v39, %v7283_v26  ;;  %v2842_v30 = vpop.permute.xlu0 %2841  ;;  %vm3034_vm2 = vcmp.gt.s32.totalorder %v3033_v8, 0 }
 0x447   : > { %v4255_v63 = vpop.eup %4254  ;;  %2968 = vmatpush1.msra.mxu1 %v2776_v33  ;;  %2884 = vmatprep.subr.mxu0 %v2763_v24  ;;  %v2768_v16 = vmul.f32 %v4253_v54, %v7284_v36  ;;  %v3432_v5 = vsel %vm3034_vm2, 1.0, %v7286_v3 }
 0x448   : > { %v4257_v38 = vpop.eup %4256  ;;  %2969 = vmatprep.subr.mxu1 %v2773_v18  ;;  %2885 = vmatpush1.msra.mxu0 %v2762_v56  ;;  %v2765_v6 = vmul.f32 %v4255_v63, %v7285_v42 }
 0x449   : > { %2970 = vmatpush1.msra.mxu1 %v2772_v59  ;;  %2919 = vmatmul.mubr.f32.vlgmr.msra.gmra.mxu0 %v2826_v19  ;;  %v2764_v45 = vmul.f32 %v4257_v38, %v7287_v48 }
 0x44a   : > { %2971 = vmatprep.subr.mxu1 %v2769_v57  ;;  %2924 = vmatprep.mubr.f32.mxu0 %v7286_v3 }
 0x44b   : > { %2972 = vmatpush1.msra.mxu1 %v2768_v16 }
 0x44c   : > { %2973 = vmatprep.subr.mxu1 %v2765_v6 }
 0x44d   : > { %2974 = vmatpush1.msra.mxu1 %v2764_v45  ;;  %2925 = vmatmul.mubr.f32.gmra.mxu0 %v2827_v53 }
 0x44e   : > { %3008 = vmatmul.mubr.f32.vlgmr.msra.gmra.mxu1 %v2826_v19  ;;  %2930 = vmatprep.mubr.f32.mxu0 %v7286_v3 }
 0x44f   : > { %3013 = vmatprep.mubr.f32.mxu1 %v7286_v3 }
 0x451   : > { %2931 = vmatmul.mubr.f32.gmra.mxu0 %v2828_v0 }
 0x452   : > { %3014 = vmatmul.mubr.f32.gmra.mxu1 %v2827_v53  ;;  %2936 = vmatprep.mubr.f32.mxu0 %v7286_v3 }
 0x453   : > { %3019 = vmatprep.mubr.f32.mxu1 %v7286_v3 }
 0x455   : > { %2937 = vmatmul.mubr.f32.gmra.mxu0 %v2829_v4 }
 0x456   : > { %3020 = vmatmul.mubr.f32.gmra.mxu1 %v2828_v0  ;;  %3134 = vmatprep.mubr.f32.mxu0 %v7286_v3 }
 0x457   : > { %3025 = vmatprep.mubr.f32.mxu1 %v7286_v3 }
 0x45a   : > { %3026 = vmatmul.mubr.f32.gmra.mxu1 %v2829_v4  ;;  %v4330_v4 = vmov 1983009808  }
 0x45b   : > { %3205 = vmatprep.mubr.f32.mxu1 %v7286_v3 }
 0x509   : > { %v2920_v27 = vpop.f32.mrf.mxu0 }
 0x50a   : > { %v6683_v17 = vadd.f32 %v2920_v27, %v2837_v61  ;;  %v3263_v27 = vunpack.c.l.s4 %v4330_v4 }
 0x50b   : > { %v2922_v14 = vpop.f32.mrf.mxu0 }
 0x50c   : > { %v6680_v62 = vadd.f32 %v2922_v14, %v2837_v61  ;;  %v3037_v18 = vmul.f32 %v6683_v17, %v6683_v17 }
 0x50d   : > { %v2926_v11 = vpop.f32.mrf.mxu0 }
 0x50e   : > { %v3009_v7 = vpop.f32.mrf.mxu1  ;;  %v2927_v55 = vadd.f32 %v2926_v11, %v2842_v30  ;;  %v3038_v41 = vmul.f32 %v6680_v62, %v6680_v62 }
 0x50f   : > { %v2928_v15 = vpop.f32.mrf.mxu0  ;;  %v6695_v29 = vadd.f32 %v3009_v7, %v2837_v61 }
 0x510   : > { %v3011_v9 = vpop.f32.mrf.mxu1  ;;  %v2929_v1 = vadd.f32 %v2928_v15, %v2842_v30  ;;  %v3041_v51 = vmul.f32 %v2927_v55, %v2927_v55 }
 0x511   : > { %v2932_v23 = vpop.f32.mrf.mxu0  ;;  %v6692_v19 = vadd.f32 %v3011_v9, %v2837_v61  ;;  %v3039_v36 = vmul.f32 %v6695_v29, %v6695_v29 }
 0x512   : > { %v3015_v43 = vpop.f32.mrf.mxu1  ;;  %v2933_v21 = vadd.f32 %v2932_v23, %v2847_v2  ;;  %v3042_v58 = vmul.f32 %v2929_v1, %v2929_v1 }
 0x513   : > { %v2934_v28 = vpop.f32.mrf.mxu0  ;;  %v3016_v22 = vadd.f32 %v3015_v43, %v2842_v30  ;;  %v3040_v57 = vmul.f32 %v6692_v19, %v6692_v19 }
 0x514   : > { %v3017_v60 = vpop.f32.mrf.mxu1  ;;  %v2935_v25 = vadd.f32 %v2934_v28, %v2847_v2  ;;  %v3045_v52 = vmul.f32 %v2933_v21, %v2933_v21 }
 0x515   : > { %v2938_v35 = vpop.f32.mrf.mxu0  ;;  %v3018_v33 = vadd.f32 %v3017_v60, %v2842_v30  ;;  %v3043_v26 = vmul.f32 %v3016_v22, %v3016_v22  ;;  %v3264_v60 = vunpack.c.0.s8 %v3263_v27 }
 0x516   : > { %v3021_v10 = vpop.f32.mrf.mxu1  ;;  %v2939_v31 = vadd.f32 %v2938_v35, %v2852_v46  ;;  %v3046_v49 = vmul.f32 %v2935_v25, %v2935_v25 }
 0x517   : > { %v2940_v50 = vpop.f32.mrf.mxu0  ;;  %v3022_v24 = vadd.f32 %v3021_v10, %v2847_v2  ;;  %v3044_v38 = vmul.f32 %v3018_v33, %v3018_v33 }
 0x518   : > { %v3023_v37 = vpop.f32.mrf.mxu1  ;;  %v2941_v40 = vadd.f32 %v2940_v50, %v2852_v46  ;;  %v3049_v44 = vmul.f32 %v2939_v31, %v2939_v31  ;;  %v3266_v31 = vshrl.u32 %v3032_v12, 7 }
 0x519   : > { %v3024_v39 = vadd.f32 %v3023_v37, %v2847_v2  ;;  %v3047_v59 = vmul.f32 %v3022_v24, %v3022_v24 }
 0x51a   : > { %v3027_v13 = vpop.f32.mrf.mxu1  ;;  %v3050_v34 = vmul.f32 %v2941_v40, %v2941_v40 }
 0x51b   : > { %v3028_v32 = vadd.f32 %v3027_v13, %v2852_v46  ;;  %v3048_v63 = vmul.f32 %v3024_v39, %v3024_v39 }
 0x51c   : > { %v3029_v47 = vpop.f32.mrf.mxu1  ;;  %3433 = vmatprep.subr.msk.mxu0 %vm3057_vm1, %v3050_v34  ;;  %v3267_v34 = vsub.s32 %v3264_v60, %v3266_v31 }
 0x51d   : > { %v3030_v20 = vadd.f32 %v3029_v47, %v2852_v46  ;;  %3434 = vmatpush1.msk.msra.mxu0 %vm3057_vm1, %v3049_v44  ;;  %v3051_v56 = vmul.f32 %v3028_v32, %v3028_v32 }
 0x51e   : > { %3096 = vmatprep.subr.mxu0 %v3046_v49 }
 0x51f   : > { %v3052_v54 = vmul.f32 %v3030_v20, %v3030_v20  ;;  %3097 = vmatpush1.msra.mxu0 %v3045_v52 }
 0x520   : > { %3098 = vmatprep.subr.mxu0 %v3042_v58 }
 0x521   : > { %3436 = vmatprep.subr.msk.mxu1 %vm3057_vm1, %v3052_v54  ;;  %3099 = vmatpush1.msra.mxu0 %v3041_v51 }
 0x522   : > { %3437 = vmatpush1.msk.msra.mxu1 %vm3057_vm1, %v3051_v56  ;;  %3100 = vmatprep.subr.mxu0 %v3038_v41 }
 0x523   : > { %3167 = vmatprep.subr.mxu1 %v3048_v63  ;;  %3101 = vmatpush1.msra.mxu0 %v3037_v18 }
 0x524   : > { %3168 = vmatpush1.msra.mxu1 %v3047_v59  ;;  %3435 = vmatmul.mubr.msk.f32.vlgmr.msra.gmra.mxu0 %vm3053_vm3, %v3432_v5 }
 0x525   : > { %3169 = vmatprep.subr.mxu1 %v3044_v38 }
 0x526   : > { %3170 = vmatpush1.msra.mxu1 %v3043_v26 }
 0x527   : > { %3171 = vmatprep.subr.mxu1 %v3040_v57 }
 0x528   : > { %3172 = vmatpush1.msra.mxu1 %v3039_v36 }
 0x529   : > { %3438 = vmatmul.mubr.msk.f32.vlgmr.msra.gmra.mxu1 %vm3053_vm3, %v3432_v5 }
 0x5e4   : > { %v3136_v16 = vpop.f32.mrf.mxu0 }
 0x5e5   : > { %4258 = vrsqrt.f32 %v3136_v16  ;;  %vm3214_vm4 = vcmp.eq.f32.partialorder %v3136_v16, inf  ;;  %v3217_v0 = vand.u32 2147483648, %v3136_v16  ;;  %vm3216_vm5 = vcmp.eq.f32.partialorder %v3136_v16, 0.0 }
 0x5e6   : > { %v3138_v42 = vpop.f32.mrf.mxu0 }
 0x5e7   : > { %4260 = vrsqrt.f32 %v3138_v42  ;;  %vm3221_vm6 = vcmp.eq.f32.partialorder %v3138_v42, inf  ;;  %v3224_v15 = vand.u32 2147483648, %v3138_v42  ;;  %vm3223_vm7 = vcmp.eq.f32.partialorder %v3138_v42, 0.0 }
 0x5e9   : > { %v3207_v6 = vpop.f32.mrf.mxu1 }
 0x5ea   : > { %4262 = vrsqrt.f32 %v3207_v6  ;;  %vm3228_vm8 = vcmp.eq.f32.partialorder %v3207_v6, inf  ;;  %v3231_v35 = vand.u32 2147483648, %v3207_v6  ;;  %vm3230_vm9 = vcmp.eq.f32.partialorder %v3207_v6, 0.0 }
 0x5eb   : > { %v3209_v3 = vpop.f32.mrf.mxu1 }
 0x5ec   : > { %4264 = vrsqrt.f32 %v3209_v3  ;;  %vm3235_vm10 = vcmp.eq.f32.partialorder %v3209_v3, inf  ;;  %v3238_v40 = vand.u32 2147483648, %v3209_v3  ;;  %vm3237_vm11 = vcmp.eq.f32.partialorder %v3209_v3, 0.0 }
 0x5f2   : > { %v4259_v53 = vpop.eup %4258 }
 0x5f3   : > { %v3213_v48 = vmul.f32 %v4259_v53, %v3136_v16 }
 0x5f4   : > { %v4261_v45 = vpop.eup %4260 }
 0x5f5   : > { %v3215_v14 = vsel %vm3214_vm4, %v3136_v16, %v3213_v48  ;;  %v3220_v11 = vmul.f32 %v4261_v45, %v3138_v42 }
 0x5f6   : > { %v3218_v7 = vsel %vm3216_vm5, %v3217_v0, %v3215_v14 }
 0x5f7   : > { %v4263_v9 = vpop.eup %4262  ;;  %v3222_v23 = vsel %vm3221_vm6, %v3138_v42, %v3220_v11  ;;  %v3244_v43 = vrot.slane %v3218_v7, 7 }
 0x5f8   : > { %v3227_v46 = vmul.f32 %v4263_v9, %v3207_v6  ;;  %v3225_v28 = vsel %vm3223_vm7, %v3224_v15, %v3222_v23 }
 0x5f9   : > { %v4265_v2 = vpop.eup %4264  ;;  %v3245_v10 = vrot.slane %v3225_v28, 7  ;;  %v3252_v1 = vsel %vm3057_vm1, %v6683_v17, %v3244_v43 }
 0x5fa   : > { %v3229_v50 = vsel %vm3228_vm8, %v3207_v6, %v3227_v46  ;;  %v3234_v25 = vmul.f32 %v4265_v2, %v3209_v3 }
 0x5fb   : > { %v3232_v37 = vsel %vm3230_vm9, %v3231_v35, %v3229_v50  ;;  %v3253_v8 = vsel %vm3057_vm1, %v6680_v62, %v3245_v10 }
 0x5fc   : > { %v3246_v30 = vrot.slane %v3232_v37, 7  ;;  %v3236_v21 = vsel %vm3235_vm10, %v3209_v3, %v3234_v25  ;;  %v3260_v12 = vcombine.low %v3252_v1, %v3253_v8 }
 0x5fd   : > { %v3239_v13 = vsel %vm3237_vm11, %v3238_v40, %v3236_v21 }
 0x5fe   : > { %v3247_v61 = vrot.slane %v3239_v13, 7  ;;  %v3254_v55 = vsel %vm3057_vm1, %v6695_v29, %v3246_v30  ;;  %v3268_v49 = vrot.slane %v3260_v12, %v3267_v34 }
 0x600   : > { %v3255_v44 = vsel %vm3057_vm1, %v6692_v19, %v3247_v61 }
 0x601   : > { %v3261_v62 = vcombine.low %v3254_v55, %v3255_v44 }
 0x603   : > { %v3275_v32 = vrot.slane %v3261_v62, %v3267_v34 }
 0x605   : > { %v3276_v47 = vcombine.low %v3268_v49, %v3275_v32 }
 0x607   : > { %3278 = vst [vmem:[%s310_s8] sm:$0xff] %v3276_v47 }
 0x608   : > { %4279 = shalt.err (!%p4276_p5)
}
 0x609   : > { %s4280_s21 = scalar_lea.hbm %s3292_s15, 128  ;;  %s4284_s23 = scalar_lea.hbm %s6757_s7, 256 }
 0x60a   : > { %p4281_p7 = scmp.ne.s32.totalorder %s3292_s15, %s4280_s21  ;;  %p4285_p12 = scmp.lt.s32.totalorder %s3292_s15, %s6757_s7 }
 0x60b   : > { %p4286_p13 = scmp.lt.s32.totalorder %s4284_s23, %s4280_s21 }
 0x60c   : > { %p4282_p10 = pnand %p4281_p7, %p4410_p6 }
 0x60d   : > { %p4287_p0 = por %p4286_p13, %p4285_p12 }
 0x60e   : > { %p4283_p11 = pneg %p4282_p10 }
 0x610   : > { %p4288_p9 = pnand %p4287_p0, %p4283_p11 }
 0x612   : > { %4291 = shalt.err (!%p4288_p9)
}
 0x613   : > { %3446 = dma.vmem_to_hbm [thread:$0]  (%p4410_p6), %s3295_s9, 128, %s3292_s15, %s3280_s16  }
 0x614 PF: > { %s3306_s13 = sand.u32 1, %s4314_s24   ;;  %p7288_p1 = scmp.ge.s32.totalorder %s4326_s27, 2 }
 0x615   : > { %s3307_s14 = scalar_lea.sflag [#allocation4], %s3306_s13 }
 0x616   : > { %p3449_p2 = pnand %p7288_p1, %p4414_p8 }
 0x618   : > { %p3450_p3 = pneg %p3449_p2 }
 0x61a   : > { %4309 = dma.done.wait (%p3450_p3), %s3307_s14, 128  }
 0x61b   : > { %4311 = vsyncadd (%p3450_p3), %s3307_s14, 4294967168  ;;  %p17_p9 = scmp.ge.s32.totalorder %s4395_s30, 4   ;;  %s7289_s24 = smov %s4318_s25 }
 0x61c   : > { %s7290_s25 = smov %s4322_s26  ;;  %s7291_s26 = smov %s4408_s10 }
 0x61d   : > { %s7292_s27 = smov %s4395_s30  ;;  %19 = sbr.rel (!%p17_p9) target bundleno = 3 (0x3), region = 113 }
 0x622   :  { %3312 = vsyncpa [#allocation4], 1 }
 0x623   :  { %3314 = vsyncpa [#allocation4 + $0x1], 1 }

</bundles_post_ra>
